<compile_context>
chip_gen: v7x
topology: tpu7x:2x2x1
jax: 0.10.0
libtpu: 0.0.40
codegen_flags: <defaults>
</compile_context>

<pallas_src>
import functools
import math

import jax
import jax.numpy as jnp
from jax import lax
from jax.experimental import pallas as pl
from jax.experimental.pallas import tpu as pltpu


# --------------------------------- Pallas kernel --------------------------------- #

def _dense_agg_kernel(x_ref, w3_ref, s3_ref, sh3_ref, b3_ref,
                      so_ref, sho_ref, wo_ref, bo_ref,
                      o_ref,
                      pad_ref, cat_ref,
                      *, H, W, in_ch, base_ch, out_ch, dilations, P):
    """Fused DenseFeaureAggregation forward for one batch element (one grid step)."""
    HW = H * W
    cmax3 = in_ch + 4 * base_ch        # widest 3x3-conv input channel count

    # Zero only the vertical halo strips (top/bottom P rows of the flat buffer); the
    # interior is fully rewritten by every layer before it is read and there is no
    # horizontal halo in the flat (C, rows*W) layout. Both strips are 128-lane aligned.
    pad_ref[:, :P * W] = jnp.zeros((cmax3, P * W), jnp.float32)
    pad_ref[:, (P + H) * W:] = jnp.zeros((cmax3, P * W), jnp.float32)

    # Lane index -> image column, for masking horizontally out-of-image taps.
    col = lax.broadcasted_iota(jnp.int32, (1, HW), 1) % W

    # Persistent concat buffer, channel (sublane) layout matching torch.cat order:
    #   [ out1 (base_ch) | x (in_ch) | out2 | out3 | out4 | out5 ]
    cat_ref[base_ch:base_ch + in_ch, :] = x_ref[0]

    for i, d in enumerate(dilations):                 # 5 x (BN + ReLU + dilated 3x3 conv)
        cin = in_ch + i * base_ch
        if i == 0:
            xin = cat_ref[base_ch:base_ch + in_ch, :]          # conv1 sees x only
        else:
            xin = cat_ref[:cin, :]                             # running concat prefix
        # Folded BN (eval) + ReLU; scale/shift arrive pre-shaped (cin, 1) -> lane broadcast.
        xn = jnp.maximum(xin * s3_ref[i, :cin, :] + sh3_ref[i, :cin, :], 0.0)

        # Write the conv input into the interior of the vertically padded flat scratch
        # (interior start P*W is a multiple of 128 -> full-lane aligned store).
        pad_ref[:cin, P * W:P * W + HW] = xn

        acc = None
        for kj in range(3):            # group the 9 taps by horizontal offset -> 1 mask each
            dc = (kj - 1) * d
            tap = None
            for ki in range(3):
                dr = (ki - 1) * d
                if dr == 0 and dc == 0:
                    slab = xn                                  # reuse, skip the VMEM re-read
                else:
                    start = (P + dr) * W + dc
                    slab = pad_ref[:cin, start:start + HW]
                contrib = jnp.dot(w3_ref[i, 3 * ki + kj, :, :cin], slab,
                                  preferred_element_type=jnp.float32)
                tap = contrib if tap is None else tap + contrib
            if dc != 0:
                valid = jnp.logical_and(col + dc >= 0, col + dc < W)
                tap = jnp.where(valid, tap, 0.0)               # kill column-wrapped taps
            acc = tap if acc is None else acc + tap
        acc = acc + b3_ref[i]                                  # (base_ch, 1) bias

        # out1 -> channels [0:base_ch]; out_{i+1} (i>=1) appends right after its input prefix.
        c_out = 0 if i == 0 else cin
        cat_ref[c_out:c_out + base_ch, :] = acc

    # Final BN + ReLU + 1x1 conv over the full concat; the only HBM write of the kernel.
    xn = jnp.maximum(cat_ref[...] * so_ref[...] + sho_ref[...], 0.0)
    y = jnp.dot(wo_ref[...], xn, preferred_element_type=jnp.float32) + bo_ref[...]
    o_ref[0] = y.astype(o_ref.dtype)


# ------------------------------- pallas_call wrapper ------------------------------ #

def dense_feature_aggregation(x_nchw, params):
    N, in_ch, H, W = x_nchw.shape
    x = x_nchw.reshape(N, in_ch, H * W)                  # pure reshape of NCHW, no transpose
    base_ch = params["conv1"]["w"].shape[-1]
    out_ch = params["conv_out"]["w"].shape[-1]
    ctot = in_ch + 5 * base_ch
    cmax3 = in_ch + 4 * base_ch                          # widest 3x3-conv input
    names3 = ["conv1", "conv2", "conv3", "conv4", "conv5"]
    dilations = tuple(int(params[nm]["dilation"]) for nm in names3)
    maxd = max(dilations)

    # Vertical padding rows: enough that every shifted flat slice stays in-bounds
    # (maxd rows plus the column wrap), rounded up so P*W is a multiple of 128.
    p_min = maxd + -(-maxd // W)
    step = 128 // math.gcd(W, 128)
    P = -(-p_min // step) * step

    # Pack per-layer params (XLA-side, once). Weights are tap-major, output-channel-major:
    # (5, 9, base_ch, cmax3), zero-padded along cin so unused channels contribute nothing.
    w3 = jnp.stack([
        jnp.pad(jnp.transpose(params[nm]["w"], (0, 1, 3, 2)).reshape(9, base_ch, -1),
                ((0, 0), (0, 0), (0, cmax3 - (in_ch + i * base_ch))))
        for i, nm in enumerate(names3)])
    s3 = jnp.stack([jnp.pad(params[nm]["scale"],
                            (0, ctot - params[nm]["scale"].shape[0])) for nm in names3])
    s3 = s3.reshape(5, ctot, 1)
    sh3 = jnp.stack([jnp.pad(params[nm]["shift"],
                             (0, ctot - params[nm]["shift"].shape[0])) for nm in names3])
    sh3 = sh3.reshape(5, ctot, 1)
    b3 = jnp.stack([params[nm]["b"] for nm in names3]).reshape(5, base_ch, 1)
    po = params["conv_out"]
    s_out = po["scale"].reshape(ctot, 1)
    sh_out = po["shift"].reshape(ctot, 1)
    w_out = po["w"].reshape(ctot, out_ch).T              # (out_ch, ctot) — weight-LHS
    b_out = po["b"].reshape(out_ch, 1)

    kernel = functools.partial(_dense_agg_kernel, H=H, W=W, in_ch=in_ch,
                               base_ch=base_ch, out_ch=out_ch,
                               dilations=dilations, P=P)
    y = pl.pallas_call(
        kernel,
        out_shape=jax.ShapeDtypeStruct((N, out_ch, H * W), x.dtype),
        grid_spec=pltpu.PrefetchScalarGridSpec(
            num_scalar_prefetch=0,
            grid=(N,),
            in_specs=[
                pl.BlockSpec((1, in_ch, H * W), lambda n: (n, 0, 0)),        # x (lane-dense)
                pl.BlockSpec((5, 9, base_ch, cmax3), lambda n: (0, 0, 0, 0)),  # 3x3 weights
                pl.BlockSpec((5, ctot, 1), lambda n: (0, 0, 0)),             # BN scales
                pl.BlockSpec((5, ctot, 1), lambda n: (0, 0, 0)),             # BN shifts
                pl.BlockSpec((5, base_ch, 1), lambda n: (0, 0, 0)),          # conv biases
                pl.BlockSpec((ctot, 1), lambda n: (0, 0)),                   # out BN scale
                pl.BlockSpec((ctot, 1), lambda n: (0, 0)),                   # out BN shift
                pl.BlockSpec((out_ch, ctot), lambda n: (0, 0)),              # 1x1 weight
                pl.BlockSpec((out_ch, 1), lambda n: (0, 0)),                 # 1x1 bias
            ],
            out_specs=pl.BlockSpec((1, out_ch, H * W), lambda n: (n, 0, 0)),
            scratch_shapes=[
                pltpu.VMEM((cmax3, (H + 2 * P) * W), jnp.float32),   # padded conv input
                pltpu.VMEM((ctot, H * W), jnp.float32),              # running concat
            ],
        ),
        compiler_params=pltpu.CompilerParams(
            dimension_semantics=("parallel",)),           # v7x: one batch element per TC
    )(x, w3, s3, sh3, b3, s_out, sh_out, w_out, b_out)
    return y.reshape(N, out_ch, H, W)                     # pure reshape back to NCHW


# ------------------------------------ params -------------------------------------- #

def init_params(key, in_ch, out_ch, base_ch):
    """Deterministic parameter init matching the module's __init__ shapes."""
    cfg = [
        ("conv1", in_ch, base_ch, 3, 2),
        ("conv2", in_ch + base_ch, base_ch, 3, 3),
        ("conv3", in_ch + 2 * base_ch, base_ch, 3, 5),
        ("conv4", in_ch + 3 * base_ch, base_ch, 3, 7),
        ("conv5", in_ch + 4 * base_ch, base_ch, 3, 9),
        ("conv_out", in_ch + 5 * base_ch, out_ch, 1, 1),
    ]
    params = {}
    for name, cin, cout, k, dil in cfg:
        key, kg, kb, km, kv, kw, kbi = jax.random.split(key, 7)
        gamma = 1.0 + 0.1 * jax.random.normal(kg, (cin,), jnp.float32)
        beta = 0.1 * jax.random.normal(kb, (cin,), jnp.float32)
        rmean = 0.1 * jax.random.normal(km, (cin,), jnp.float32)
        rvar = 0.5 + jnp.abs(jax.random.normal(kv, (cin,), jnp.float32))
        scale = gamma / jnp.sqrt(rvar + 1e-5)      # fold BN (eval mode) into scale/shift
        shift = beta - rmean * scale
        w = 0.1 * jax.random.normal(kw, (k, k, cin, cout), jnp.float32)   # HWIO
        bias = 0.1 * jax.random.normal(kbi, (cout,), jnp.float32)
        params[name] = dict(scale=scale, shift=shift, w=w, b=bias, dilation=dil)
    return params


# -------------------------------- pure-JAX reference ------------------------------- #

def _ref_layer(x, scale, shift, w_hwio, b, dilation):
    xn = jnp.maximum(x * scale + shift, 0.0)
    kh = w_hwio.shape[0]
    pad = ((kh - 1) // 2) * dilation
    y = lax.conv_general_dilated(
        xn, w_hwio, window_strides=(1, 1),
        padding=[(pad, pad), (pad, pad)],
        rhs_dilation=(dilation, dilation),
        dimension_numbers=("NHWC", "HWIO", "NHWC"),
        precision=lax.Precision.HIGHEST)
    return y + b


def dense_feature_aggregation_ref(x_nchw, params):
    x = jnp.transpose(x_nchw, (0, 2, 3, 1))
    p = params["conv1"]
    out1 = _ref_layer(x, p["scale"], p["shift"], p["w"], p["b"], p["dilation"])
    cat = jnp.concatenate([out1, x], axis=-1)
    for name in ("conv2", "conv3", "conv4", "conv5"):
        p = params[name]
        o = _ref_layer(cat, p["scale"], p["shift"], p["w"], p["b"], p["dilation"])
        cat = jnp.concatenate([cat, o], axis=-1)
    p = params["conv_out"]
    y = _ref_layer(cat, p["scale"], p["shift"], p["w"], p["b"], p["dilation"])
    return jnp.transpose(y, (0, 3, 1, 2))


# -------------------------------------- main --------------------------------------- #

if __name__ == "__main__":
    in_ch, out_ch, base_ch = 4, 6, 8
    N, H, W = 2, 16, 16

    key = jax.random.PRNGKey(0)
    kx, kp = jax.random.split(key)
    x = jax.random.normal(kx, (N, in_ch, H, W), jnp.float32)   # NCHW like PyTorch
    params = init_params(kp, in_ch, out_ch, base_ch)

    out = dense_feature_aggregation(x, params)
    out = jax.block_until_ready(out)
    assert out.shape == (N, out_ch, H, W), out.shape

    ref = dense_feature_aggregation_ref(x, params)
    ref = jax.block_until_ready(ref)
    rel_err = float(jnp.max(jnp.abs(out - ref)) / (jnp.max(jnp.abs(ref)) + 1e-6))
    assert rel_err < 5e-2, f"max relative error too large: {rel_err}"

    print("KERNEL_OK")
</pallas_src>

<mosaic_0001>
module attributes {stable_mosaic.version = 11 : i64} {
  func.func @_dense_agg_kernel(%arg0: i32, %arg1: memref<1x4x256xf32, #tpu.memory_space<vmem>>, %arg2: memref<5x9x8x36xf32, #tpu.memory_space<vmem>>, %arg3: memref<5x44x1xf32, #tpu.memory_space<vmem>>, %arg4: memref<5x44x1xf32, #tpu.memory_space<vmem>>, %arg5: memref<5x8x1xf32, #tpu.memory_space<vmem>>, %arg6: memref<44x1xf32, #tpu.memory_space<vmem>>, %arg7: memref<44x1xf32, #tpu.memory_space<vmem>>, %arg8: memref<6x44xf32, #tpu.memory_space<vmem>>, %arg9: memref<6x1xf32, #tpu.memory_space<vmem>>, %arg10: memref<1x6x256xf32, #tpu.memory_space<vmem>>, %arg11: memref<36x768xf32, #tpu.memory_space<vmem>>, %arg12: memref<44x256xf32, #tpu.memory_space<vmem>>) attributes {dimension_semantics = [#tpu.dimension_semantics<parallel>], iteration_bounds = array<i64: 2>, scalar_prefetch = 0 : i64, scratch_operands = 2 : i64, tpu.core_type = #tpu.core_type<tc>, window_params = [{transform_indices = @transform_0, window_bounds = array<i64: 1, 4, 256>}, {pipeline_mode = #tpu.pipeline_mode<synchronous>, transform_indices = @transform_1, window_bounds = array<i64: 5, 9, 8, 36>}, {pipeline_mode = #tpu.pipeline_mode<synchronous>, transform_indices = @transform_2, window_bounds = array<i64: 5, 44, 1>}, {pipeline_mode = #tpu.pipeline_mode<synchronous>, transform_indices = @transform_3, window_bounds = array<i64: 5, 44, 1>}, {pipeline_mode = #tpu.pipeline_mode<synchronous>, transform_indices = @transform_4, window_bounds = array<i64: 5, 8, 1>}, {pipeline_mode = #tpu.pipeline_mode<synchronous>, transform_indices = @transform_5, window_bounds = array<i64: 44, 1>}, {pipeline_mode = #tpu.pipeline_mode<synchronous>, transform_indices = @transform_6, window_bounds = array<i64: 44, 1>}, {pipeline_mode = #tpu.pipeline_mode<synchronous>, transform_indices = @transform_7, window_bounds = array<i64: 6, 44>}, {pipeline_mode = #tpu.pipeline_mode<synchronous>, transform_indices = @transform_8, window_bounds = array<i64: 6, 1>}, {transform_indices = @transform_9, window_bounds = array<i64: 1, 6, 256>}]} {
    %cst = arith.constant 0.000000e+00 : f32
    %0 = vector.broadcast %cst : f32 to vector<36x256xf32>
    %c0 = arith.constant 0 : index
    %c0_0 = arith.constant 0 : index
    %1 = vector.load %arg11[%c0, %c0_0] : memref<36x768xf32, #tpu.memory_space<vmem>>, vector<36x256xf32>
    tpu.vector_store %arg11[%c0, %c0_0], %0 {strides = array<i32>} : memref<36x768xf32, #tpu.memory_space<vmem>>, vector<36x256xf32>,
    %cst_1 = arith.constant 0.000000e+00 : f32
    %2 = vector.broadcast %cst_1 : f32 to vector<36x256xf32>
    %c0_2 = arith.constant 0 : index
    %c512 = arith.constant 512 : index
    %3 = vector.load %arg11[%c0_2, %c512] : memref<36x768xf32, #tpu.memory_space<vmem>>, vector<36x256xf32>
    tpu.vector_store %arg11[%c0_2, %c512], %2 {strides = array<i32>} : memref<36x768xf32, #tpu.memory_space<vmem>>, vector<36x256xf32>,
    %4 = tpu.iota {dimensions = array<i32: 1>} : vector<1x256xi32>
    %c16_i32 = arith.constant 16 : i32
    %c0_i32 = arith.constant 0 : i32
    %5 = arith.cmpi eq, %c16_i32, %c0_i32 : i32
    %c1_i32 = arith.constant 1 : i32
    %6 = arith.select %5, %c1_i32, %c16_i32 : i32
    %7 = vector.broadcast %6 : i32 to vector<1x256xi32>
    %8 = arith.remsi %4, %7 : vector<1x256xi32>
    %c0_i32_3 = arith.constant 0 : i32
    %9 = vector.broadcast %c0_i32_3 : i32 to vector<1x256xi32>
    %10 = arith.cmpi ne, %8, %9 : vector<1x256xi32>
    %c0_i32_4 = arith.constant 0 : i32
    %11 = vector.broadcast %c0_i32_4 : i32 to vector<1x256xi32>
    %12 = arith.cmpi slt, %8, %11 : vector<1x256xi32>
    %c0_i32_5 = arith.constant 0 : i32
    %13 = arith.cmpi slt, %6, %c0_i32_5 : i32
    %14 = vector.broadcast %13 : i1 to vector<1x256xi1>
    %15 = vector.broadcast %14 : vector<1x256xi1> to vector<1x256xi1>
    %16 = arith.xori %12, %15 : vector<1x256xi1>
    %17 = arith.andi %16, %10 : vector<1x256xi1>
    %18 = vector.broadcast %6 : i32 to vector<1x256xi32>
    %19 = arith.addi %8, %18 : vector<1x256xi32>
    %20 = arith.select %17, %19, %8 : vector<1x256xi1>, vector<1x256xi32>
    %c0_6 = arith.constant 0 : index
    %c0_7 = arith.constant 0 : index
    %c0_8 = arith.constant 0 : index
    %21 = vector.load %arg1[%c0_6, %c0_7, %c0_8] : memref<1x4x256xf32, #tpu.memory_space<vmem>>, vector<1x4x256xf32>
    %22 = vector.shape_cast %21 : vector<1x4x256xf32> to vector<4x256xf32>
    %c8 = arith.constant 8 : index
    %c0_9 = arith.constant 0 : index
    %23 = vector.load %arg12[%c8, %c0_9] : memref<44x256xf32, #tpu.memory_space<vmem>>, vector<4x256xf32>
    tpu.vector_store %arg12[%c8, %c0_9], %22 {strides = array<i32>} : memref<44x256xf32, #tpu.memory_space<vmem>>, vector<4x256xf32>,
    %c8_10 = arith.constant 8 : index
    %c0_11 = arith.constant 0 : index
    %24 = vector.load %arg12[%c8_10, %c0_11] : memref<44x256xf32, #tpu.memory_space<vmem>>, vector<4x256xf32>
    %c0_12 = arith.constant 0 : index
    %c0_13 = arith.constant 0 : index
    %c0_14 = arith.constant 0 : index
    %25 = vector.load %arg3[%c0_12, %c0_13, %c0_14] : memref<5x44x1xf32, #tpu.memory_space<vmem>>, vector<1x4x1xf32>
    %26 = vector.shape_cast %25 : vector<1x4x1xf32> to vector<4x1xf32>
    %27 = vector.broadcast %26 : vector<4x1xf32> to vector<4x256xf32>
    %28 = arith.mulf %24, %27 : vector<4x256xf32>
    %c0_15 = arith.constant 0 : index
    %c0_16 = arith.constant 0 : index
    %c0_17 = arith.constant 0 : index
    %29 = vector.load %arg4[%c0_15, %c0_16, %c0_17] : memref<5x44x1xf32, #tpu.memory_space<vmem>>, vector<1x4x1xf32>
    %30 = vector.shape_cast %29 : vector<1x4x1xf32> to vector<4x1xf32>
    %31 = vector.broadcast %30 : vector<4x1xf32> to vector<4x256xf32>
    %32 = arith.addf %28, %31 : vector<4x256xf32>
    %cst_18 = arith.constant 0.000000e+00 : f32
    %33 = vector.broadcast %cst_18 : f32 to vector<4x256xf32>
    %34 = arith.maximumf %32, %33 : vector<4x256xf32>
    %c0_19 = arith.constant 0 : index
    %c256 = arith.constant 256 : index
    %35 = vector.load %arg11[%c0_19, %c256] : memref<36x768xf32, #tpu.memory_space<vmem>>, vector<4x256xf32>
    tpu.vector_store %arg11[%c0_19, %c256], %34 {strides = array<i32>} : memref<36x768xf32, #tpu.memory_space<vmem>>, vector<4x256xf32>,
    %c0_20 = arith.constant 0 : index
    %c222 = arith.constant 222 : index
    %36 = vector.load %arg11[%c0_20, %c222] : memref<36x768xf32, #tpu.memory_space<vmem>>, vector<4x256xf32>
    %c0_21 = arith.constant 0 : index
    %c0_22 = arith.constant 0 : index
    %c0_23 = arith.constant 0 : index
    %c0_24 = arith.constant 0 : index
    %37 = vector.load %arg2[%c0_21, %c0_22, %c0_23, %c0_24] : memref<5x9x8x36xf32, #tpu.memory_space<vmem>>, vector<1x1x8x4xf32>
    %38 = vector.shape_cast %37 : vector<1x1x8x4xf32> to vector<8x4xf32>
    %cst_25 = arith.constant dense<0.000000e+00> : vector<8x256xf32>
    %39 = tpu.matmul %38, %36, %cst_25 {dimension_numbers = #tpu.dot_dimension_numbers<[1], [0], [0], [1], [0, 0, 1, 1], [], []>} : vector<8x4xf32>, vector<4x256xf32>, vector<8x256xf32> -> vector<8x256xf32>
    %c0_26 = arith.constant 0 : index
    %c254 = arith.constant 254 : index
    %40 = vector.load %arg11[%c0_26, %c254] : memref<36x768xf32, #tpu.memory_space<vmem>>, vector<4x256xf32>
    %c0_27 = arith.constant 0 : index
    %c3 = arith.constant 3 : index
    %c0_28 = arith.constant 0 : index
    %c0_29 = arith.constant 0 : index
    %41 = vector.load %arg2[%c0_27, %c3, %c0_28, %c0_29] : memref<5x9x8x36xf32, #tpu.memory_space<vmem>>, vector<1x1x8x4xf32>
    %42 = vector.shape_cast %41 : vector<1x1x8x4xf32> to vector<8x4xf32>
    %cst_30 = arith.constant dense<0.000000e+00> : vector<8x256xf32>
    %43 = tpu.matmul %42, %40, %cst_30 {dimension_numbers = #tpu.dot_dimension_numbers<[1], [0], [0], [1], [0, 0, 1, 1], [], []>} : vector<8x4xf32>, vector<4x256xf32>, vector<8x256xf32> -> vector<8x256xf32>
    %44 = arith.addf %39, %43 : vector<8x256xf32>
    %c0_31 = arith.constant 0 : index
    %c286 = arith.constant 286 : index
    %45 = vector.load %arg11[%c0_31, %c286] : memref<36x768xf32, #tpu.memory_space<vmem>>, vector<4x256xf32>
    %c0_32 = arith.constant 0 : index
    %c6 = arith.constant 6 : index
    %c0_33 = arith.constant 0 : index
    %c0_34 = arith.constant 0 : index
    %46 = vector.load %arg2[%c0_32, %c6, %c0_33, %c0_34] : memref<5x9x8x36xf32, #tpu.memory_space<vmem>>, vector<1x1x8x4xf32>
    %47 = vector.shape_cast %46 : vector<1x1x8x4xf32> to vector<8x4xf32>
    %cst_35 = arith.constant dense<0.000000e+00> : vector<8x256xf32>
    %48 = tpu.matmul %47, %45, %cst_35 {dimension_numbers = #tpu.dot_dimension_numbers<[1], [0], [0], [1], [0, 0, 1, 1], [], []>} : vector<8x4xf32>, vector<4x256xf32>, vector<8x256xf32> -> vector<8x256xf32>
    %49 = arith.addf %44, %48 : vector<8x256xf32>
    %c-2_i32 = arith.constant -2 : i32
    %50 = vector.broadcast %c-2_i32 : i32 to vector<1x256xi32>
    %51 = arith.addi %20, %50 : vector<1x256xi32>
    %c0_i32_36 = arith.constant 0 : i32
    %52 = vector.broadcast %c0_i32_36 : i32 to vector<1x256xi32>
    %53 = arith.cmpi sge, %51, %52 : vector<1x256xi32>
    %c-2_i32_37 = arith.constant -2 : i32
    %54 = vector.broadcast %c-2_i32_37 : i32 to vector<1x256xi32>
    %55 = arith.addi %20, %54 : vector<1x256xi32>
    %c16_i32_38 = arith.constant 16 : i32
    %56 = vector.broadcast %c16_i32_38 : i32 to vector<1x256xi32>
    %57 = arith.cmpi slt, %55, %56 : vector<1x256xi32>
    %58 = arith.andi %53, %57 : vector<1x256xi1>
    %cst_39 = arith.constant 0.000000e+00 : f32
    %59 = vector.shape_cast %58 : vector<1x256xi1> to vector<1x256xi1>
    %60 = vector.broadcast %59 : vector<1x256xi1> to vector<8x256xi1>
    %61 = vector.broadcast %cst_39 : f32 to vector<8x256xf32>
    %62 = arith.select %60, %49, %61 : vector<8x256xi1>, vector<8x256xf32>
    %c0_40 = arith.constant 0 : index
    %c224 = arith.constant 224 : index
    %63 = vector.load %arg11[%c0_40, %c224] : memref<36x768xf32, #tpu.memory_space<vmem>>, vector<4x256xf32>
    %c0_41 = arith.constant 0 : index
    %c1 = arith.constant 1 : index
    %c0_42 = arith.constant 0 : index
    %c0_43 = arith.constant 0 : index
    %64 = vector.load %arg2[%c0_41, %c1, %c0_42, %c0_43] : memref<5x9x8x36xf32, #tpu.memory_space<vmem>>, vector<1x1x8x4xf32>
    %65 = vector.shape_cast %64 : vector<1x1x8x4xf32> to vector<8x4xf32>
    %cst_44 = arith.constant dense<0.000000e+00> : vector<8x256xf32>
    %66 = tpu.matmul %65, %63, %cst_44 {dimension_numbers = #tpu.dot_dimension_numbers<[1], [0], [0], [1], [0, 0, 1, 1], [], []>} : vector<8x4xf32>, vector<4x256xf32>, vector<8x256xf32> -> vector<8x256xf32>
    %c0_45 = arith.constant 0 : index
    %c4 = arith.constant 4 : index
    %c0_46 = arith.constant 0 : index
    %c0_47 = arith.constant 0 : index
    %67 = vector.load %arg2[%c0_45, %c4, %c0_46, %c0_47] : memref<5x9x8x36xf32, #tpu.memory_space<vmem>>, vector<1x1x8x4xf32>
    %68 = vector.shape_cast %67 : vector<1x1x8x4xf32> to vector<8x4xf32>
    %cst_48 = arith.constant dense<0.000000e+00> : vector<8x256xf32>
    %69 = tpu.matmul %68, %34, %cst_48 {dimension_numbers = #tpu.dot_dimension_numbers<[1], [0], [0], [1], [0, 0, 1, 1], [], []>} : vector<8x4xf32>, vector<4x256xf32>, vector<8x256xf32> -> vector<8x256xf32>
    %70 = arith.addf %66, %69 : vector<8x256xf32>
    %c0_49 = arith.constant 0 : index
    %c288 = arith.constant 288 : index
    %71 = vector.load %arg11[%c0_49, %c288] : memref<36x768xf32, #tpu.memory_space<vmem>>, vector<4x256xf32>
    %c0_50 = arith.constant 0 : index
    %c7 = arith.constant 7 : index
    %c0_51 = arith.constant 0 : index
    %c0_52 = arith.constant 0 : index
    %72 = vector.load %arg2[%c0_50, %c7, %c0_51, %c0_52] : memref<5x9x8x36xf32, #tpu.memory_space<vmem>>, vector<1x1x8x4xf32>
    %73 = vector.shape_cast %72 : vector<1x1x8x4xf32> to vector<8x4xf32>
    %cst_53 = arith.constant dense<0.000000e+00> : vector<8x256xf32>
    %74 = tpu.matmul %73, %71, %cst_53 {dimension_numbers = #tpu.dot_dimension_numbers<[1], [0], [0], [1], [0, 0, 1, 1], [], []>} : vector<8x4xf32>, vector<4x256xf32>, vector<8x256xf32> -> vector<8x256xf32>
    %75 = arith.addf %70, %74 : vector<8x256xf32>
    %76 = arith.addf %62, %75 : vector<8x256xf32>
    %c0_54 = arith.constant 0 : index
    %c226 = arith.constant 226 : index
    %77 = vector.load %arg11[%c0_54, %c226] : memref<36x768xf32, #tpu.memory_space<vmem>>, vector<4x256xf32>
    %c0_55 = arith.constant 0 : index
    %c2 = arith.constant 2 : index
    %c0_56 = arith.constant 0 : index
    %c0_57 = arith.constant 0 : index
    %78 = vector.load %arg2[%c0_55, %c2, %c0_56, %c0_57] : memref<5x9x8x36xf32, #tpu.memory_space<vmem>>, vector<1x1x8x4xf32>
    %79 = vector.shape_cast %78 : vector<1x1x8x4xf32> to vector<8x4xf32>
    %cst_58 = arith.constant dense<0.000000e+00> : vector<8x256xf32>
    %80 = tpu.matmul %79, %77, %cst_58 {dimension_numbers = #tpu.dot_dimension_numbers<[1], [0], [0], [1], [0, 0, 1, 1], [], []>} : vector<8x4xf32>, vector<4x256xf32>, vector<8x256xf32> -> vector<8x256xf32>
    %c0_59 = arith.constant 0 : index
    %c258 = arith.constant 258 : index
    %81 = vector.load %arg11[%c0_59, %c258] : memref<36x768xf32, #tpu.memory_space<vmem>>, vector<4x256xf32>
    %c0_60 = arith.constant 0 : index
    %c5 = arith.constant 5 : index
    %c0_61 = arith.constant 0 : index
    %c0_62 = arith.constant 0 : index
    %82 = vector.load %arg2[%c0_60, %c5, %c0_61, %c0_62] : memref<5x9x8x36xf32, #tpu.memory_space<vmem>>, vector<1x1x8x4xf32>
    %83 = vector.shape_cast %82 : vector<1x1x8x4xf32> to vector<8x4xf32>
    %cst_63 = arith.constant dense<0.000000e+00> : vector<8x256xf32>
    %84 = tpu.matmul %83, %81, %cst_63 {dimension_numbers = #tpu.dot_dimension_numbers<[1], [0], [0], [1], [0, 0, 1, 1], [], []>} : vector<8x4xf32>, vector<4x256xf32>, vector<8x256xf32> -> vector<8x256xf32>
    %85 = arith.addf %80, %84 : vector<8x256xf32>
    %c0_64 = arith.constant 0 : index
    %c290 = arith.constant 290 : index
    %86 = vector.load %arg11[%c0_64, %c290] : memref<36x768xf32, #tpu.memory_space<vmem>>, vector<4x256xf32>
    %c0_65 = arith.constant 0 : index
    %c8_66 = arith.constant 8 : index
    %c0_67 = arith.constant 0 : index
    %c0_68 = arith.constant 0 : index
    %87 = vector.load %arg2[%c0_65, %c8_66, %c0_67, %c0_68] : memref<5x9x8x36xf32, #tpu.memory_space<vmem>>, vector<1x1x8x4xf32>
    %88 = vector.shape_cast %87 : vector<1x1x8x4xf32> to vector<8x4xf32>
    %cst_69 = arith.constant dense<0.000000e+00> : vector<8x256xf32>
    %89 = tpu.matmul %88, %86, %cst_69 {dimension_numbers = #tpu.dot_dimension_numbers<[1], [0], [0], [1], [0, 0, 1, 1], [], []>} : vector<8x4xf32>, vector<4x256xf32>, vector<8x256xf32> -> vector<8x256xf32>
    %90 = arith.addf %85, %89 : vector<8x256xf32>
    %c2_i32 = arith.constant 2 : i32
    %91 = vector.broadcast %c2_i32 : i32 to vector<1x256xi32>
    %92 = arith.addi %20, %91 : vector<1x256xi32>
    %c0_i32_70 = arith.constant 0 : i32
    %93 = vector.broadcast %c0_i32_70 : i32 to vector<1x256xi32>
    %94 = arith.cmpi sge, %92, %93 : vector<1x256xi32>
    %c2_i32_71 = arith.constant 2 : i32
    %95 = vector.broadcast %c2_i32_71 : i32 to vector<1x256xi32>
    %96 = arith.addi %20, %95 : vector<1x256xi32>
    %c16_i32_72 = arith.constant 16 : i32
    %97 = vector.broadcast %c16_i32_72 : i32 to vector<1x256xi32>
    %98 = arith.cmpi slt, %96, %97 : vector<1x256xi32>
    %99 = arith.andi %94, %98 : vector<1x256xi1>
    %cst_73 = arith.constant 0.000000e+00 : f32
    %100 = vector.shape_cast %99 : vector<1x256xi1> to vector<1x256xi1>
    %101 = vector.broadcast %100 : vector<1x256xi1> to vector<8x256xi1>
    %102 = vector.broadcast %cst_73 : f32 to vector<8x256xf32>
    %103 = arith.select %101, %90, %102 : vector<8x256xi1>, vector<8x256xf32>
    %104 = arith.addf %76, %103 : vector<8x256xf32>
    %c0_74 = arith.constant 0 : index
    %c0_75 = arith.constant 0 : index
    %c0_76 = arith.constant 0 : index
    %105 = vector.load %arg5[%c0_74, %c0_75, %c0_76] : memref<5x8x1xf32, #tpu.memory_space<vmem>>, vector<1x8x1xf32>
    %106 = vector.shape_cast %105 : vector<1x8x1xf32> to vector<8x1xf32>
    %107 = vector.broadcast %106 : vector<8x1xf32> to vector<8x256xf32>
    %108 = arith.addf %104, %107 : vector<8x256xf32>
    %c0_77 = arith.constant 0 : index
    %c0_78 = arith.constant 0 : index
    %109 = vector.load %arg12[%c0_77, %c0_78] : memref<44x256xf32, #tpu.memory_space<vmem>>, vector<8x256xf32>
    tpu.vector_store %arg12[%c0_77, %c0_78], %108 {strides = array<i32>} : memref<44x256xf32, #tpu.memory_space<vmem>>, vector<8x256xf32>,
    %c0_79 = arith.constant 0 : index
    %c0_80 = arith.constant 0 : index
    %110 = vector.load %arg12[%c0_79, %c0_80] : memref<44x256xf32, #tpu.memory_space<vmem>>, vector<12x256xf32>
    %c1_81 = arith.constant 1 : index
    %c0_82 = arith.constant 0 : index
    %c0_83 = arith.constant 0 : index
    %111 = vector.load %arg3[%c1_81, %c0_82, %c0_83] : memref<5x44x1xf32, #tpu.memory_space<vmem>>, vector<1x12x1xf32>
    %112 = vector.shape_cast %111 : vector<1x12x1xf32> to vector<12x1xf32>
    %113 = vector.broadcast %112 : vector<12x1xf32> to vector<12x256xf32>
    %114 = arith.mulf %110, %113 : vector<12x256xf32>
    %c1_84 = arith.constant 1 : index
    %c0_85 = arith.constant 0 : index
    %c0_86 = arith.constant 0 : index
    %115 = vector.load %arg4[%c1_84, %c0_85, %c0_86] : memref<5x44x1xf32, #tpu.memory_space<vmem>>, vector<1x12x1xf32>
    %116 = vector.shape_cast %115 : vector<1x12x1xf32> to vector<12x1xf32>
    %117 = vector.broadcast %116 : vector<12x1xf32> to vector<12x256xf32>
    %118 = arith.addf %114, %117 : vector<12x256xf32>
    %cst_87 = arith.constant 0.000000e+00 : f32
    %119 = vector.broadcast %cst_87 : f32 to vector<12x256xf32>
    %120 = arith.maximumf %118, %119 : vector<12x256xf32>
    %c0_88 = arith.constant 0 : index
    %c256_89 = arith.constant 256 : index
    %121 = vector.load %arg11[%c0_88, %c256_89] : memref<36x768xf32, #tpu.memory_space<vmem>>, vector<12x256xf32>
    tpu.vector_store %arg11[%c0_88, %c256_89], %120 {strides = array<i32>} : memref<36x768xf32, #tpu.memory_space<vmem>>, vector<12x256xf32>,
    %c0_90 = arith.constant 0 : index
    %c205 = arith.constant 205 : index
    %122 = vector.load %arg11[%c0_90, %c205] : memref<36x768xf32, #tpu.memory_space<vmem>>, vector<12x256xf32>
    %c1_91 = arith.constant 1 : index
    %c0_92 = arith.constant 0 : index
    %c0_93 = arith.constant 0 : index
    %c0_94 = arith.constant 0 : index
    %123 = vector.load %arg2[%c1_91, %c0_92, %c0_93, %c0_94] : memref<5x9x8x36xf32, #tpu.memory_space<vmem>>, vector<1x1x8x12xf32>
    %124 = vector.shape_cast %123 : vector<1x1x8x12xf32> to vector<8x12xf32>
    %cst_95 = arith.constant dense<0.000000e+00> : vector<8x256xf32>
    %125 = tpu.matmul %124, %122, %cst_95 {dimension_numbers = #tpu.dot_dimension_numbers<[1], [0], [0], [1], [0, 0, 1, 1], [], []>} : vector<8x12xf32>, vector<12x256xf32>, vector<8x256xf32> -> vector<8x256xf32>
    %c0_96 = arith.constant 0 : index
    %c253 = arith.constant 253 : index
    %126 = vector.load %arg11[%c0_96, %c253] : memref<36x768xf32, #tpu.memory_space<vmem>>, vector<12x256xf32>
    %c1_97 = arith.constant 1 : index
    %c3_98 = arith.constant 3 : index
    %c0_99 = arith.constant 0 : index
    %c0_100 = arith.constant 0 : index
    %127 = vector.load %arg2[%c1_97, %c3_98, %c0_99, %c0_100] : memref<5x9x8x36xf32, #tpu.memory_space<vmem>>, vector<1x1x8x12xf32>
    %128 = vector.shape_cast %127 : vector<1x1x8x12xf32> to vector<8x12xf32>
    %cst_101 = arith.constant dense<0.000000e+00> : vector<8x256xf32>
    %129 = tpu.matmul %128, %126, %cst_101 {dimension_numbers = #tpu.dot_dimension_numbers<[1], [0], [0], [1], [0, 0, 1, 1], [], []>} : vector<8x12xf32>, vector<12x256xf32>, vector<8x256xf32> -> vector<8x256xf32>
    %130 = arith.addf %125, %129 : vector<8x256xf32>
    %c0_102 = arith.constant 0 : index
    %c301 = arith.constant 301 : index
    %131 = vector.load %arg11[%c0_102, %c301] : memref<36x768xf32, #tpu.memory_space<vmem>>, vector<12x256xf32>
    %c1_103 = arith.constant 1 : index
    %c6_104 = arith.constant 6 : index
    %c0_105 = arith.constant 0 : index
    %c0_106 = arith.constant 0 : index
    %132 = vector.load %arg2[%c1_103, %c6_104, %c0_105, %c0_106] : memref<5x9x8x36xf32, #tpu.memory_space<vmem>>, vector<1x1x8x12xf32>
    %133 = vector.shape_cast %132 : vector<1x1x8x12xf32> to vector<8x12xf32>
    %cst_107 = arith.constant dense<0.000000e+00> : vector<8x256xf32>
    %134 = tpu.matmul %133, %131, %cst_107 {dimension_numbers = #tpu.dot_dimension_numbers<[1], [0], [0], [1], [0, 0, 1, 1], [], []>} : vector<8x12xf32>, vector<12x256xf32>, vector<8x256xf32> -> vector<8x256xf32>
    %135 = arith.addf %130, %134 : vector<8x256xf32>
    %c-3_i32 = arith.constant -3 : i32
    %136 = vector.broadcast %c-3_i32 : i32 to vector<1x256xi32>
    %137 = arith.addi %20, %136 : vector<1x256xi32>
    %c0_i32_108 = arith.constant 0 : i32
    %138 = vector.broadcast %c0_i32_108 : i32 to vector<1x256xi32>
    %139 = arith.cmpi sge, %137, %138 : vector<1x256xi32>
    %c-3_i32_109 = arith.constant -3 : i32
    %140 = vector.broadcast %c-3_i32_109 : i32 to vector<1x256xi32>
    %141 = arith.addi %20, %140 : vector<1x256xi32>
    %c16_i32_110 = arith.constant 16 : i32
    %142 = vector.broadcast %c16_i32_110 : i32 to vector<1x256xi32>
    %143 = arith.cmpi slt, %141, %142 : vector<1x256xi32>
    %144 = arith.andi %139, %143 : vector<1x256xi1>
    %cst_111 = arith.constant 0.000000e+00 : f32
    %145 = vector.shape_cast %144 : vector<1x256xi1> to vector<1x256xi1>
    %146 = vector.broadcast %145 : vector<1x256xi1> to vector<8x256xi1>
    %147 = vector.broadcast %cst_111 : f32 to vector<8x256xf32>
    %148 = arith.select %146, %135, %147 : vector<8x256xi1>, vector<8x256xf32>
    %c0_112 = arith.constant 0 : index
    %c208 = arith.constant 208 : index
    %149 = vector.load %arg11[%c0_112, %c208] : memref<36x768xf32, #tpu.memory_space<vmem>>, vector<12x256xf32>
    %c1_113 = arith.constant 1 : index
    %c1_114 = arith.constant 1 : index
    %c0_115 = arith.constant 0 : index
    %c0_116 = arith.constant 0 : index
    %150 = vector.load %arg2[%c1_113, %c1_114, %c0_115, %c0_116] : memref<5x9x8x36xf32, #tpu.memory_space<vmem>>, vector<1x1x8x12xf32>
    %151 = vector.shape_cast %150 : vector<1x1x8x12xf32> to vector<8x12xf32>
    %cst_117 = arith.constant dense<0.000000e+00> : vector<8x256xf32>
    %152 = tpu.matmul %151, %149, %cst_117 {dimension_numbers = #tpu.dot_dimension_numbers<[1], [0], [0], [1], [0, 0, 1, 1], [], []>} : vector<8x12xf32>, vector<12x256xf32>, vector<8x256xf32> -> vector<8x256xf32>
    %c1_118 = arith.constant 1 : index
    %c4_119 = arith.constant 4 : index
    %c0_120 = arith.constant 0 : index
    %c0_121 = arith.constant 0 : index
    %153 = vector.load %arg2[%c1_118, %c4_119, %c0_120, %c0_121] : memref<5x9x8x36xf32, #tpu.memory_space<vmem>>, vector<1x1x8x12xf32>
    %154 = vector.shape_cast %153 : vector<1x1x8x12xf32> to vector<8x12xf32>
    %cst_122 = arith.constant dense<0.000000e+00> : vector<8x256xf32>
    %155 = tpu.matmul %154, %120, %cst_122 {dimension_numbers = #tpu.dot_dimension_numbers<[1], [0], [0], [1], [0, 0, 1, 1], [], []>} : vector<8x12xf32>, vector<12x256xf32>, vector<8x256xf32> -> vector<8x256xf32>
    %156 = arith.addf %152, %155 : vector<8x256xf32>
    %c0_123 = arith.constant 0 : index
    %c304 = arith.constant 304 : index
    %157 = vector.load %arg11[%c0_123, %c304] : memref<36x768xf32, #tpu.memory_space<vmem>>, vector<12x256xf32>
    %c1_124 = arith.constant 1 : index
    %c7_125 = arith.constant 7 : index
    %c0_126 = arith.constant 0 : index
    %c0_127 = arith.constant 0 : index
    %158 = vector.load %arg2[%c1_124, %c7_125, %c0_126, %c0_127] : memref<5x9x8x36xf32, #tpu.memory_space<vmem>>, vector<1x1x8x12xf32>
    %159 = vector.shape_cast %158 : vector<1x1x8x12xf32> to vector<8x12xf32>
    %cst_128 = arith.constant dense<0.000000e+00> : vector<8x256xf32>
    %160 = tpu.matmul %159, %157, %cst_128 {dimension_numbers = #tpu.dot_dimension_numbers<[1], [0], [0], [1], [0, 0, 1, 1], [], []>} : vector<8x12xf32>, vector<12x256xf32>, vector<8x256xf32> -> vector<8x256xf32>
    %161 = arith.addf %156, %160 : vector<8x256xf32>
    %162 = arith.addf %148, %161 : vector<8x256xf32>
    %c0_129 = arith.constant 0 : index
    %c211 = arith.constant 211 : index
    %163 = vector.load %arg11[%c0_129, %c211] : memref<36x768xf32, #tpu.memory_space<vmem>>, vector<12x256xf32>
    %c1_130 = arith.constant 1 : index
    %c2_131 = arith.constant 2 : index
    %c0_132 = arith.constant 0 : index
    %c0_133 = arith.constant 0 : index
    %164 = vector.load %arg2[%c1_130, %c2_131, %c0_132, %c0_133] : memref<5x9x8x36xf32, #tpu.memory_space<vmem>>, vector<1x1x8x12xf32>
    %165 = vector.shape_cast %164 : vector<1x1x8x12xf32> to vector<8x12xf32>
    %cst_134 = arith.constant dense<0.000000e+00> : vector<8x256xf32>
    %166 = tpu.matmul %165, %163, %cst_134 {dimension_numbers = #tpu.dot_dimension_numbers<[1], [0], [0], [1], [0, 0, 1, 1], [], []>} : vector<8x12xf32>, vector<12x256xf32>, vector<8x256xf32> -> vector<8x256xf32>
    %c0_135 = arith.constant 0 : index
    %c259 = arith.constant 259 : index
    %167 = vector.load %arg11[%c0_135, %c259] : memref<36x768xf32, #tpu.memory_space<vmem>>, vector<12x256xf32>
    %c1_136 = arith.constant 1 : index
    %c5_137 = arith.constant 5 : index
    %c0_138 = arith.constant 0 : index
    %c0_139 = arith.constant 0 : index
    %168 = vector.load %arg2[%c1_136, %c5_137, %c0_138, %c0_139] : memref<5x9x8x36xf32, #tpu.memory_space<vmem>>, vector<1x1x8x12xf32>
    %169 = vector.shape_cast %168 : vector<1x1x8x12xf32> to vector<8x12xf32>
    %cst_140 = arith.constant dense<0.000000e+00> : vector<8x256xf32>
    %170 = tpu.matmul %169, %167, %cst_140 {dimension_numbers = #tpu.dot_dimension_numbers<[1], [0], [0], [1], [0, 0, 1, 1], [], []>} : vector<8x12xf32>, vector<12x256xf32>, vector<8x256xf32> -> vector<8x256xf32>
    %171 = arith.addf %166, %170 : vector<8x256xf32>
    %c0_141 = arith.constant 0 : index
    %c307 = arith.constant 307 : index
    %172 = vector.load %arg11[%c0_141, %c307] : memref<36x768xf32, #tpu.memory_space<vmem>>, vector<12x256xf32>
    %c1_142 = arith.constant 1 : index
    %c8_143 = arith.constant 8 : index
    %c0_144 = arith.constant 0 : index
    %c0_145 = arith.constant 0 : index
    %173 = vector.load %arg2[%c1_142, %c8_143, %c0_144, %c0_145] : memref<5x9x8x36xf32, #tpu.memory_space<vmem>>, vector<1x1x8x12xf32>
    %174 = vector.shape_cast %173 : vector<1x1x8x12xf32> to vector<8x12xf32>
    %cst_146 = arith.constant dense<0.000000e+00> : vector<8x256xf32>
    %175 = tpu.matmul %174, %172, %cst_146 {dimension_numbers = #tpu.dot_dimension_numbers<[1], [0], [0], [1], [0, 0, 1, 1], [], []>} : vector<8x12xf32>, vector<12x256xf32>, vector<8x256xf32> -> vector<8x256xf32>
    %176 = arith.addf %171, %175 : vector<8x256xf32>
    %c3_i32 = arith.constant 3 : i32
    %177 = vector.broadcast %c3_i32 : i32 to vector<1x256xi32>
    %178 = arith.addi %20, %177 : vector<1x256xi32>
    %c0_i32_147 = arith.constant 0 : i32
    %179 = vector.broadcast %c0_i32_147 : i32 to vector<1x256xi32>
    %180 = arith.cmpi sge, %178, %179 : vector<1x256xi32>
    %c3_i32_148 = arith.constant 3 : i32
    %181 = vector.broadcast %c3_i32_148 : i32 to vector<1x256xi32>
    %182 = arith.addi %20, %181 : vector<1x256xi32>
    %c16_i32_149 = arith.constant 16 : i32
    %183 = vector.broadcast %c16_i32_149 : i32 to vector<1x256xi32>
    %184 = arith.cmpi slt, %182, %183 : vector<1x256xi32>
    %185 = arith.andi %180, %184 : vector<1x256xi1>
    %cst_150 = arith.constant 0.000000e+00 : f32
    %186 = vector.shape_cast %185 : vector<1x256xi1> to vector<1x256xi1>
    %187 = vector.broadcast %186 : vector<1x256xi1> to vector<8x256xi1>
    %188 = vector.broadcast %cst_150 : f32 to vector<8x256xf32>
    %189 = arith.select %187, %176, %188 : vector<8x256xi1>, vector<8x256xf32>
    %190 = arith.addf %162, %189 : vector<8x256xf32>
    %c1_151 = arith.constant 1 : index
    %c0_152 = arith.constant 0 : index
    %c0_153 = arith.constant 0 : index
    %191 = vector.load %arg5[%c1_151, %c0_152, %c0_153] : memref<5x8x1xf32, #tpu.memory_space<vmem>>, vector<1x8x1xf32>
    %192 = vector.shape_cast %191 : vector<1x8x1xf32> to vector<8x1xf32>
    %193 = vector.broadcast %192 : vector<8x1xf32> to vector<8x256xf32>
    %194 = arith.addf %190, %193 : vector<8x256xf32>
    %c12 = arith.constant 12 : index
    %c0_154 = arith.constant 0 : index
    %195 = vector.load %arg12[%c12, %c0_154] : memref<44x256xf32, #tpu.memory_space<vmem>>, vector<8x256xf32>
    tpu.vector_store %arg12[%c12, %c0_154], %194 {strides = array<i32>} : memref<44x256xf32, #tpu.memory_space<vmem>>, vector<8x256xf32>,
    %c0_155 = arith.constant 0 : index
    %c0_156 = arith.constant 0 : index
    %196 = vector.load %arg12[%c0_155, %c0_156] : memref<44x256xf32, #tpu.memory_space<vmem>>, vector<20x256xf32>
    %c2_157 = arith.constant 2 : index
    %c0_158 = arith.constant 0 : index
    %c0_159 = arith.constant 0 : index
    %197 = vector.load %arg3[%c2_157, %c0_158, %c0_159] : memref<5x44x1xf32, #tpu.memory_space<vmem>>, vector<1x20x1xf32>
    %198 = vector.shape_cast %197 : vector<1x20x1xf32> to vector<20x1xf32>
    %199 = vector.broadcast %198 : vector<20x1xf32> to vector<20x256xf32>
    %200 = arith.mulf %196, %199 : vector<20x256xf32>
    %c2_160 = arith.constant 2 : index
    %c0_161 = arith.constant 0 : index
    %c0_162 = arith.constant 0 : index
    %201 = vector.load %arg4[%c2_160, %c0_161, %c0_162] : memref<5x44x1xf32, #tpu.memory_space<vmem>>, vector<1x20x1xf32>
    %202 = vector.shape_cast %201 : vector<1x20x1xf32> to vector<20x1xf32>
    %203 = vector.broadcast %202 : vector<20x1xf32> to vector<20x256xf32>
    %204 = arith.addf %200, %203 : vector<20x256xf32>
    %cst_163 = arith.constant 0.000000e+00 : f32
    %205 = vector.broadcast %cst_163 : f32 to vector<20x256xf32>
    %206 = arith.maximumf %204, %205 : vector<20x256xf32>
    %c0_164 = arith.constant 0 : index
    %c256_165 = arith.constant 256 : index
    %207 = vector.load %arg11[%c0_164, %c256_165] : memref<36x768xf32, #tpu.memory_space<vmem>>, vector<20x256xf32>
    tpu.vector_store %arg11[%c0_164, %c256_165], %206 {strides = array<i32>} : memref<36x768xf32, #tpu.memory_space<vmem>>, vector<20x256xf32>,
    %c0_166 = arith.constant 0 : index
    %c171 = arith.constant 171 : index
    %208 = vector.load %arg11[%c0_166, %c171] : memref<36x768xf32, #tpu.memory_space<vmem>>, vector<20x256xf32>
    %c2_167 = arith.constant 2 : index
    %c0_168 = arith.constant 0 : index
    %c0_169 = arith.constant 0 : index
    %c0_170 = arith.constant 0 : index
    %209 = vector.load %arg2[%c2_167, %c0_168, %c0_169, %c0_170] : memref<5x9x8x36xf32, #tpu.memory_space<vmem>>, vector<1x1x8x20xf32>
    %210 = vector.shape_cast %209 : vector<1x1x8x20xf32> to vector<8x20xf32>
    %cst_171 = arith.constant dense<0.000000e+00> : vector<8x256xf32>
    %211 = tpu.matmul %210, %208, %cst_171 {dimension_numbers = #tpu.dot_dimension_numbers<[1], [0], [0], [1], [0, 0, 1, 1], [], []>} : vector<8x20xf32>, vector<20x256xf32>, vector<8x256xf32> -> vector<8x256xf32>
    %c0_172 = arith.constant 0 : index
    %c251 = arith.constant 251 : index
    %212 = vector.load %arg11[%c0_172, %c251] : memref<36x768xf32, #tpu.memory_space<vmem>>, vector<20x256xf32>
    %c2_173 = arith.constant 2 : index
    %c3_174 = arith.constant 3 : index
    %c0_175 = arith.constant 0 : index
    %c0_176 = arith.constant 0 : index
    %213 = vector.load %arg2[%c2_173, %c3_174, %c0_175, %c0_176] : memref<5x9x8x36xf32, #tpu.memory_space<vmem>>, vector<1x1x8x20xf32>
    %214 = vector.shape_cast %213 : vector<1x1x8x20xf32> to vector<8x20xf32>
    %cst_177 = arith.constant dense<0.000000e+00> : vector<8x256xf32>
    %215 = tpu.matmul %214, %212, %cst_177 {dimension_numbers = #tpu.dot_dimension_numbers<[1], [0], [0], [1], [0, 0, 1, 1], [], []>} : vector<8x20xf32>, vector<20x256xf32>, vector<8x256xf32> -> vector<8x256xf32>
    %216 = arith.addf %211, %215 : vector<8x256xf32>
    %c0_178 = arith.constant 0 : index
    %c331 = arith.constant 331 : index
    %217 = vector.load %arg11[%c0_178, %c331] : memref<36x768xf32, #tpu.memory_space<vmem>>, vector<20x256xf32>
    %c2_179 = arith.constant 2 : index
    %c6_180 = arith.constant 6 : index
    %c0_181 = arith.constant 0 : index
    %c0_182 = arith.constant 0 : index
    %218 = vector.load %arg2[%c2_179, %c6_180, %c0_181, %c0_182] : memref<5x9x8x36xf32, #tpu.memory_space<vmem>>, vector<1x1x8x20xf32>
    %219 = vector.shape_cast %218 : vector<1x1x8x20xf32> to vector<8x20xf32>
    %cst_183 = arith.constant dense<0.000000e+00> : vector<8x256xf32>
    %220 = tpu.matmul %219, %217, %cst_183 {dimension_numbers = #tpu.dot_dimension_numbers<[1], [0], [0], [1], [0, 0, 1, 1], [], []>} : vector<8x20xf32>, vector<20x256xf32>, vector<8x256xf32> -> vector<8x256xf32>
    %221 = arith.addf %216, %220 : vector<8x256xf32>
    %c-5_i32 = arith.constant -5 : i32
    %222 = vector.broadcast %c-5_i32 : i32 to vector<1x256xi32>
    %223 = arith.addi %20, %222 : vector<1x256xi32>
    %c0_i32_184 = arith.constant 0 : i32
    %224 = vector.broadcast %c0_i32_184 : i32 to vector<1x256xi32>
    %225 = arith.cmpi sge, %223, %224 : vector<1x256xi32>
    %c-5_i32_185 = arith.constant -5 : i32
    %226 = vector.broadcast %c-5_i32_185 : i32 to vector<1x256xi32>
    %227 = arith.addi %20, %226 : vector<1x256xi32>
    %c16_i32_186 = arith.constant 16 : i32
    %228 = vector.broadcast %c16_i32_186 : i32 to vector<1x256xi32>
    %229 = arith.cmpi slt, %227, %228 : vector<1x256xi32>
    %230 = arith.andi %225, %229 : vector<1x256xi1>
    %cst_187 = arith.constant 0.000000e+00 : f32
    %231 = vector.shape_cast %230 : vector<1x256xi1> to vector<1x256xi1>
    %232 = vector.broadcast %231 : vector<1x256xi1> to vector<8x256xi1>
    %233 = vector.broadcast %cst_187 : f32 to vector<8x256xf32>
    %234 = arith.select %232, %221, %233 : vector<8x256xi1>, vector<8x256xf32>
    %c0_188 = arith.constant 0 : index
    %c176 = arith.constant 176 : index
    %235 = vector.load %arg11[%c0_188, %c176] : memref<36x768xf32, #tpu.memory_space<vmem>>, vector<20x256xf32>
    %c2_189 = arith.constant 2 : index
    %c1_190 = arith.constant 1 : index
    %c0_191 = arith.constant 0 : index
    %c0_192 = arith.constant 0 : index
    %236 = vector.load %arg2[%c2_189, %c1_190, %c0_191, %c0_192] : memref<5x9x8x36xf32, #tpu.memory_space<vmem>>, vector<1x1x8x20xf32>
    %237 = vector.shape_cast %236 : vector<1x1x8x20xf32> to vector<8x20xf32>
    %cst_193 = arith.constant dense<0.000000e+00> : vector<8x256xf32>
    %238 = tpu.matmul %237, %235, %cst_193 {dimension_numbers = #tpu.dot_dimension_numbers<[1], [0], [0], [1], [0, 0, 1, 1], [], []>} : vector<8x20xf32>, vector<20x256xf32>, vector<8x256xf32> -> vector<8x256xf32>
    %c2_194 = arith.constant 2 : index
    %c4_195 = arith.constant 4 : index
    %c0_196 = arith.constant 0 : index
    %c0_197 = arith.constant 0 : index
    %239 = vector.load %arg2[%c2_194, %c4_195, %c0_196, %c0_197] : memref<5x9x8x36xf32, #tpu.memory_space<vmem>>, vector<1x1x8x20xf32>
    %240 = vector.shape_cast %239 : vector<1x1x8x20xf32> to vector<8x20xf32>
    %cst_198 = arith.constant dense<0.000000e+00> : vector<8x256xf32>
    %241 = tpu.matmul %240, %206, %cst_198 {dimension_numbers = #tpu.dot_dimension_numbers<[1], [0], [0], [1], [0, 0, 1, 1], [], []>} : vector<8x20xf32>, vector<20x256xf32>, vector<8x256xf32> -> vector<8x256xf32>
    %242 = arith.addf %238, %241 : vector<8x256xf32>
    %c0_199 = arith.constant 0 : index
    %c336 = arith.constant 336 : index
    %243 = vector.load %arg11[%c0_199, %c336] : memref<36x768xf32, #tpu.memory_space<vmem>>, vector<20x256xf32>
    %c2_200 = arith.constant 2 : index
    %c7_201 = arith.constant 7 : index
    %c0_202 = arith.constant 0 : index
    %c0_203 = arith.constant 0 : index
    %244 = vector.load %arg2[%c2_200, %c7_201, %c0_202, %c0_203] : memref<5x9x8x36xf32, #tpu.memory_space<vmem>>, vector<1x1x8x20xf32>
    %245 = vector.shape_cast %244 : vector<1x1x8x20xf32> to vector<8x20xf32>
    %cst_204 = arith.constant dense<0.000000e+00> : vector<8x256xf32>
    %246 = tpu.matmul %245, %243, %cst_204 {dimension_numbers = #tpu.dot_dimension_numbers<[1], [0], [0], [1], [0, 0, 1, 1], [], []>} : vector<8x20xf32>, vector<20x256xf32>, vector<8x256xf32> -> vector<8x256xf32>
    %247 = arith.addf %242, %246 : vector<8x256xf32>
    %248 = arith.addf %234, %247 : vector<8x256xf32>
    %c0_205 = arith.constant 0 : index
    %c181 = arith.constant 181 : index
    %249 = vector.load %arg11[%c0_205, %c181] : memref<36x768xf32, #tpu.memory_space<vmem>>, vector<20x256xf32>
    %c2_206 = arith.constant 2 : index
    %c2_207 = arith.constant 2 : index
    %c0_208 = arith.constant 0 : index
    %c0_209 = arith.constant 0 : index
    %250 = vector.load %arg2[%c2_206, %c2_207, %c0_208, %c0_209] : memref<5x9x8x36xf32, #tpu.memory_space<vmem>>, vector<1x1x8x20xf32>
    %251 = vector.shape_cast %250 : vector<1x1x8x20xf32> to vector<8x20xf32>
    %cst_210 = arith.constant dense<0.000000e+00> : vector<8x256xf32>
    %252 = tpu.matmul %251, %249, %cst_210 {dimension_numbers = #tpu.dot_dimension_numbers<[1], [0], [0], [1], [0, 0, 1, 1], [], []>} : vector<8x20xf32>, vector<20x256xf32>, vector<8x256xf32> -> vector<8x256xf32>
    %c0_211 = arith.constant 0 : index
    %c261 = arith.constant 261 : index
    %253 = vector.load %arg11[%c0_211, %c261] : memref<36x768xf32, #tpu.memory_space<vmem>>, vector<20x256xf32>
    %c2_212 = arith.constant 2 : index
    %c5_213 = arith.constant 5 : index
    %c0_214 = arith.constant 0 : index
    %c0_215 = arith.constant 0 : index
    %254 = vector.load %arg2[%c2_212, %c5_213, %c0_214, %c0_215] : memref<5x9x8x36xf32, #tpu.memory_space<vmem>>, vector<1x1x8x20xf32>
    %255 = vector.shape_cast %254 : vector<1x1x8x20xf32> to vector<8x20xf32>
    %cst_216 = arith.constant dense<0.000000e+00> : vector<8x256xf32>
    %256 = tpu.matmul %255, %253, %cst_216 {dimension_numbers = #tpu.dot_dimension_numbers<[1], [0], [0], [1], [0, 0, 1, 1], [], []>} : vector<8x20xf32>, vector<20x256xf32>, vector<8x256xf32> -> vector<8x256xf32>
    %257 = arith.addf %252, %256 : vector<8x256xf32>
    %c0_217 = arith.constant 0 : index
    %c341 = arith.constant 341 : index
    %258 = vector.load %arg11[%c0_217, %c341] : memref<36x768xf32, #tpu.memory_space<vmem>>, vector<20x256xf32>
    %c2_218 = arith.constant 2 : index
    %c8_219 = arith.constant 8 : index
    %c0_220 = arith.constant 0 : index
    %c0_221 = arith.constant 0 : index
    %259 = vector.load %arg2[%c2_218, %c8_219, %c0_220, %c0_221] : memref<5x9x8x36xf32, #tpu.memory_space<vmem>>, vector<1x1x8x20xf32>
    %260 = vector.shape_cast %259 : vector<1x1x8x20xf32> to vector<8x20xf32>
    %cst_222 = arith.constant dense<0.000000e+00> : vector<8x256xf32>
    %261 = tpu.matmul %260, %258, %cst_222 {dimension_numbers = #tpu.dot_dimension_numbers<[1], [0], [0], [1], [0, 0, 1, 1], [], []>} : vector<8x20xf32>, vector<20x256xf32>, vector<8x256xf32> -> vector<8x256xf32>
    %262 = arith.addf %257, %261 : vector<8x256xf32>
    %c5_i32 = arith.constant 5 : i32
    %263 = vector.broadcast %c5_i32 : i32 to vector<1x256xi32>
    %264 = arith.addi %20, %263 : vector<1x256xi32>
    %c0_i32_223 = arith.constant 0 : i32
    %265 = vector.broadcast %c0_i32_223 : i32 to vector<1x256xi32>
    %266 = arith.cmpi sge, %264, %265 : vector<1x256xi32>
    %c5_i32_224 = arith.constant 5 : i32
    %267 = vector.broadcast %c5_i32_224 : i32 to vector<1x256xi32>
    %268 = arith.addi %20, %267 : vector<1x256xi32>
    %c16_i32_225 = arith.constant 16 : i32
    %269 = vector.broadcast %c16_i32_225 : i32 to vector<1x256xi32>
    %270 = arith.cmpi slt, %268, %269 : vector<1x256xi32>
    %271 = arith.andi %266, %270 : vector<1x256xi1>
    %cst_226 = arith.constant 0.000000e+00 : f32
    %272 = vector.shape_cast %271 : vector<1x256xi1> to vector<1x256xi1>
    %273 = vector.broadcast %272 : vector<1x256xi1> to vector<8x256xi1>
    %274 = vector.broadcast %cst_226 : f32 to vector<8x256xf32>
    %275 = arith.select %273, %262, %274 : vector<8x256xi1>, vector<8x256xf32>
    %276 = arith.addf %248, %275 : vector<8x256xf32>
    %c2_227 = arith.constant 2 : index
    %c0_228 = arith.constant 0 : index
    %c0_229 = arith.constant 0 : index
    %277 = vector.load %arg5[%c2_227, %c0_228, %c0_229] : memref<5x8x1xf32, #tpu.memory_space<vmem>>, vector<1x8x1xf32>
    %278 = vector.shape_cast %277 : vector<1x8x1xf32> to vector<8x1xf32>
    %279 = vector.broadcast %278 : vector<8x1xf32> to vector<8x256xf32>
    %280 = arith.addf %276, %279 : vector<8x256xf32>
    %c20 = arith.constant 20 : index
    %c0_230 = arith.constant 0 : index
    %281 = vector.load %arg12[%c20, %c0_230] : memref<44x256xf32, #tpu.memory_space<vmem>>, vector<8x256xf32>
    tpu.vector_store %arg12[%c20, %c0_230], %280 {strides = array<i32>} : memref<44x256xf32, #tpu.memory_space<vmem>>, vector<8x256xf32>,
    %c0_231 = arith.constant 0 : index
    %c0_232 = arith.constant 0 : index
    %282 = vector.load %arg12[%c0_231, %c0_232] : memref<44x256xf32, #tpu.memory_space<vmem>>, vector<28x256xf32>
    %c3_233 = arith.constant 3 : index
    %c0_234 = arith.constant 0 : index
    %c0_235 = arith.constant 0 : index
    %283 = vector.load %arg3[%c3_233, %c0_234, %c0_235] : memref<5x44x1xf32, #tpu.memory_space<vmem>>, vector<1x28x1xf32>
    %284 = vector.shape_cast %283 : vector<1x28x1xf32> to vector<28x1xf32>
    %285 = vector.broadcast %284 : vector<28x1xf32> to vector<28x256xf32>
    %286 = arith.mulf %282, %285 : vector<28x256xf32>
    %c3_236 = arith.constant 3 : index
    %c0_237 = arith.constant 0 : index
    %c0_238 = arith.constant 0 : index
    %287 = vector.load %arg4[%c3_236, %c0_237, %c0_238] : memref<5x44x1xf32, #tpu.memory_space<vmem>>, vector<1x28x1xf32>
    %288 = vector.shape_cast %287 : vector<1x28x1xf32> to vector<28x1xf32>
    %289 = vector.broadcast %288 : vector<28x1xf32> to vector<28x256xf32>
    %290 = arith.addf %286, %289 : vector<28x256xf32>
    %cst_239 = arith.constant 0.000000e+00 : f32
    %291 = vector.broadcast %cst_239 : f32 to vector<28x256xf32>
    %292 = arith.maximumf %290, %291 : vector<28x256xf32>
    %c0_240 = arith.constant 0 : index
    %c256_241 = arith.constant 256 : index
    %293 = vector.load %arg11[%c0_240, %c256_241] : memref<36x768xf32, #tpu.memory_space<vmem>>, vector<28x256xf32>
    tpu.vector_store %arg11[%c0_240, %c256_241], %292 {strides = array<i32>} : memref<36x768xf32, #tpu.memory_space<vmem>>, vector<28x256xf32>,
    %c0_242 = arith.constant 0 : index
    %c137 = arith.constant 137 : index
    %294 = vector.load %arg11[%c0_242, %c137] : memref<36x768xf32, #tpu.memory_space<vmem>>, vector<28x256xf32>
    %c3_243 = arith.constant 3 : index
    %c0_244 = arith.constant 0 : index
    %c0_245 = arith.constant 0 : index
    %c0_246 = arith.constant 0 : index
    %295 = vector.load %arg2[%c3_243, %c0_244, %c0_245, %c0_246] : memref<5x9x8x36xf32, #tpu.memory_space<vmem>>, vector<1x1x8x28xf32>
    %296 = vector.shape_cast %295 : vector<1x1x8x28xf32> to vector<8x28xf32>
    %cst_247 = arith.constant dense<0.000000e+00> : vector<8x256xf32>
    %297 = tpu.matmul %296, %294, %cst_247 {dimension_numbers = #tpu.dot_dimension_numbers<[1], [0], [0], [1], [0, 0, 1, 1], [], []>} : vector<8x28xf32>, vector<28x256xf32>, vector<8x256xf32> -> vector<8x256xf32>
    %c0_248 = arith.constant 0 : index
    %c249 = arith.constant 249 : index
    %298 = vector.load %arg11[%c0_248, %c249] : memref<36x768xf32, #tpu.memory_space<vmem>>, vector<28x256xf32>
    %c3_249 = arith.constant 3 : index
    %c3_250 = arith.constant 3 : index
    %c0_251 = arith.constant 0 : index
    %c0_252 = arith.constant 0 : index
    %299 = vector.load %arg2[%c3_249, %c3_250, %c0_251, %c0_252] : memref<5x9x8x36xf32, #tpu.memory_space<vmem>>, vector<1x1x8x28xf32>
    %300 = vector.shape_cast %299 : vector<1x1x8x28xf32> to vector<8x28xf32>
    %cst_253 = arith.constant dense<0.000000e+00> : vector<8x256xf32>
    %301 = tpu.matmul %300, %298, %cst_253 {dimension_numbers = #tpu.dot_dimension_numbers<[1], [0], [0], [1], [0, 0, 1, 1], [], []>} : vector<8x28xf32>, vector<28x256xf32>, vector<8x256xf32> -> vector<8x256xf32>
    %302 = arith.addf %297, %301 : vector<8x256xf32>
    %c0_254 = arith.constant 0 : index
    %c361 = arith.constant 361 : index
    %303 = vector.load %arg11[%c0_254, %c361] : memref<36x768xf32, #tpu.memory_space<vmem>>, vector<28x256xf32>
    %c3_255 = arith.constant 3 : index
    %c6_256 = arith.constant 6 : index
    %c0_257 = arith.constant 0 : index
    %c0_258 = arith.constant 0 : index
    %304 = vector.load %arg2[%c3_255, %c6_256, %c0_257, %c0_258] : memref<5x9x8x36xf32, #tpu.memory_space<vmem>>, vector<1x1x8x28xf32>
    %305 = vector.shape_cast %304 : vector<1x1x8x28xf32> to vector<8x28xf32>
    %cst_259 = arith.constant dense<0.000000e+00> : vector<8x256xf32>
    %306 = tpu.matmul %305, %303, %cst_259 {dimension_numbers = #tpu.dot_dimension_numbers<[1], [0], [0], [1], [0, 0, 1, 1], [], []>} : vector<8x28xf32>, vector<28x256xf32>, vector<8x256xf32> -> vector<8x256xf32>
    %307 = arith.addf %302, %306 : vector<8x256xf32>
    %c-7_i32 = arith.constant -7 : i32
    %308 = vector.broadcast %c-7_i32 : i32 to vector<1x256xi32>
    %309 = arith.addi %20, %308 : vector<1x256xi32>
    %c0_i32_260 = arith.constant 0 : i32
    %310 = vector.broadcast %c0_i32_260 : i32 to vector<1x256xi32>
    %311 = arith.cmpi sge, %309, %310 : vector<1x256xi32>
    %c-7_i32_261 = arith.constant -7 : i32
    %312 = vector.broadcast %c-7_i32_261 : i32 to vector<1x256xi32>
    %313 = arith.addi %20, %312 : vector<1x256xi32>
    %c16_i32_262 = arith.constant 16 : i32
    %314 = vector.broadcast %c16_i32_262 : i32 to vector<1x256xi32>
    %315 = arith.cmpi slt, %313, %314 : vector<1x256xi32>
    %316 = arith.andi %311, %315 : vector<1x256xi1>
    %cst_263 = arith.constant 0.000000e+00 : f32
    %317 = vector.shape_cast %316 : vector<1x256xi1> to vector<1x256xi1>
    %318 = vector.broadcast %317 : vector<1x256xi1> to vector<8x256xi1>
    %319 = vector.broadcast %cst_263 : f32 to vector<8x256xf32>
    %320 = arith.select %318, %307, %319 : vector<8x256xi1>, vector<8x256xf32>
    %c0_264 = arith.constant 0 : index
    %c144 = arith.constant 144 : index
    %321 = vector.load %arg11[%c0_264, %c144] : memref<36x768xf32, #tpu.memory_space<vmem>>, vector<28x256xf32>
    %c3_265 = arith.constant 3 : index
    %c1_266 = arith.constant 1 : index
    %c0_267 = arith.constant 0 : index
    %c0_268 = arith.constant 0 : index
    %322 = vector.load %arg2[%c3_265, %c1_266, %c0_267, %c0_268] : memref<5x9x8x36xf32, #tpu.memory_space<vmem>>, vector<1x1x8x28xf32>
    %323 = vector.shape_cast %322 : vector<1x1x8x28xf32> to vector<8x28xf32>
    %cst_269 = arith.constant dense<0.000000e+00> : vector<8x256xf32>
    %324 = tpu.matmul %323, %321, %cst_269 {dimension_numbers = #tpu.dot_dimension_numbers<[1], [0], [0], [1], [0, 0, 1, 1], [], []>} : vector<8x28xf32>, vector<28x256xf32>, vector<8x256xf32> -> vector<8x256xf32>
    %c3_270 = arith.constant 3 : index
    %c4_271 = arith.constant 4 : index
    %c0_272 = arith.constant 0 : index
    %c0_273 = arith.constant 0 : index
    %325 = vector.load %arg2[%c3_270, %c4_271, %c0_272, %c0_273] : memref<5x9x8x36xf32, #tpu.memory_space<vmem>>, vector<1x1x8x28xf32>
    %326 = vector.shape_cast %325 : vector<1x1x8x28xf32> to vector<8x28xf32>
    %cst_274 = arith.constant dense<0.000000e+00> : vector<8x256xf32>
    %327 = tpu.matmul %326, %292, %cst_274 {dimension_numbers = #tpu.dot_dimension_numbers<[1], [0], [0], [1], [0, 0, 1, 1], [], []>} : vector<8x28xf32>, vector<28x256xf32>, vector<8x256xf32> -> vector<8x256xf32>
    %328 = arith.addf %324, %327 : vector<8x256xf32>
    %c0_275 = arith.constant 0 : index
    %c368 = arith.constant 368 : index
    %329 = vector.load %arg11[%c0_275, %c368] : memref<36x768xf32, #tpu.memory_space<vmem>>, vector<28x256xf32>
    %c3_276 = arith.constant 3 : index
    %c7_277 = arith.constant 7 : index
    %c0_278 = arith.constant 0 : index
    %c0_279 = arith.constant 0 : index
    %330 = vector.load %arg2[%c3_276, %c7_277, %c0_278, %c0_279] : memref<5x9x8x36xf32, #tpu.memory_space<vmem>>, vector<1x1x8x28xf32>
    %331 = vector.shape_cast %330 : vector<1x1x8x28xf32> to vector<8x28xf32>
    %cst_280 = arith.constant dense<0.000000e+00> : vector<8x256xf32>
    %332 = tpu.matmul %331, %329, %cst_280 {dimension_numbers = #tpu.dot_dimension_numbers<[1], [0], [0], [1], [0, 0, 1, 1], [], []>} : vector<8x28xf32>, vector<28x256xf32>, vector<8x256xf32> -> vector<8x256xf32>
    %333 = arith.addf %328, %332 : vector<8x256xf32>
    %334 = arith.addf %320, %333 : vector<8x256xf32>
    %c0_281 = arith.constant 0 : index
    %c151 = arith.constant 151 : index
    %335 = vector.load %arg11[%c0_281, %c151] : memref<36x768xf32, #tpu.memory_space<vmem>>, vector<28x256xf32>
    %c3_282 = arith.constant 3 : index
    %c2_283 = arith.constant 2 : index
    %c0_284 = arith.constant 0 : index
    %c0_285 = arith.constant 0 : index
    %336 = vector.load %arg2[%c3_282, %c2_283, %c0_284, %c0_285] : memref<5x9x8x36xf32, #tpu.memory_space<vmem>>, vector<1x1x8x28xf32>
    %337 = vector.shape_cast %336 : vector<1x1x8x28xf32> to vector<8x28xf32>
    %cst_286 = arith.constant dense<0.000000e+00> : vector<8x256xf32>
    %338 = tpu.matmul %337, %335, %cst_286 {dimension_numbers = #tpu.dot_dimension_numbers<[1], [0], [0], [1], [0, 0, 1, 1], [], []>} : vector<8x28xf32>, vector<28x256xf32>, vector<8x256xf32> -> vector<8x256xf32>
    %c0_287 = arith.constant 0 : index
    %c263 = arith.constant 263 : index
    %339 = vector.load %arg11[%c0_287, %c263] : memref<36x768xf32, #tpu.memory_space<vmem>>, vector<28x256xf32>
    %c3_288 = arith.constant 3 : index
    %c5_289 = arith.constant 5 : index
    %c0_290 = arith.constant 0 : index
    %c0_291 = arith.constant 0 : index
    %340 = vector.load %arg2[%c3_288, %c5_289, %c0_290, %c0_291] : memref<5x9x8x36xf32, #tpu.memory_space<vmem>>, vector<1x1x8x28xf32>
    %341 = vector.shape_cast %340 : vector<1x1x8x28xf32> to vector<8x28xf32>
    %cst_292 = arith.constant dense<0.000000e+00> : vector<8x256xf32>
    %342 = tpu.matmul %341, %339, %cst_292 {dimension_numbers = #tpu.dot_dimension_numbers<[1], [0], [0], [1], [0, 0, 1, 1], [], []>} : vector<8x28xf32>, vector<28x256xf32>, vector<8x256xf32> -> vector<8x256xf32>
    %343 = arith.addf %338, %342 : vector<8x256xf32>
    %c0_293 = arith.constant 0 : index
    %c375 = arith.constant 375 : index
    %344 = vector.load %arg11[%c0_293, %c375] : memref<36x768xf32, #tpu.memory_space<vmem>>, vector<28x256xf32>
    %c3_294 = arith.constant 3 : index
    %c8_295 = arith.constant 8 : index
    %c0_296 = arith.constant 0 : index
    %c0_297 = arith.constant 0 : index
    %345 = vector.load %arg2[%c3_294, %c8_295, %c0_296, %c0_297] : memref<5x9x8x36xf32, #tpu.memory_space<vmem>>, vector<1x1x8x28xf32>
    %346 = vector.shape_cast %345 : vector<1x1x8x28xf32> to vector<8x28xf32>
    %cst_298 = arith.constant dense<0.000000e+00> : vector<8x256xf32>
    %347 = tpu.matmul %346, %344, %cst_298 {dimension_numbers = #tpu.dot_dimension_numbers<[1], [0], [0], [1], [0, 0, 1, 1], [], []>} : vector<8x28xf32>, vector<28x256xf32>, vector<8x256xf32> -> vector<8x256xf32>
    %348 = arith.addf %343, %347 : vector<8x256xf32>
    %c7_i32 = arith.constant 7 : i32
    %349 = vector.broadcast %c7_i32 : i32 to vector<1x256xi32>
    %350 = arith.addi %20, %349 : vector<1x256xi32>
    %c0_i32_299 = arith.constant 0 : i32
    %351 = vector.broadcast %c0_i32_299 : i32 to vector<1x256xi32>
    %352 = arith.cmpi sge, %350, %351 : vector<1x256xi32>
    %c7_i32_300 = arith.constant 7 : i32
    %353 = vector.broadcast %c7_i32_300 : i32 to vector<1x256xi32>
    %354 = arith.addi %20, %353 : vector<1x256xi32>
    %c16_i32_301 = arith.constant 16 : i32
    %355 = vector.broadcast %c16_i32_301 : i32 to vector<1x256xi32>
    %356 = arith.cmpi slt, %354, %355 : vector<1x256xi32>
    %357 = arith.andi %352, %356 : vector<1x256xi1>
    %cst_302 = arith.constant 0.000000e+00 : f32
    %358 = vector.shape_cast %357 : vector<1x256xi1> to vector<1x256xi1>
    %359 = vector.broadcast %358 : vector<1x256xi1> to vector<8x256xi1>
    %360 = vector.broadcast %cst_302 : f32 to vector<8x256xf32>
    %361 = arith.select %359, %348, %360 : vector<8x256xi1>, vector<8x256xf32>
    %362 = arith.addf %334, %361 : vector<8x256xf32>
    %c3_303 = arith.constant 3 : index
    %c0_304 = arith.constant 0 : index
    %c0_305 = arith.constant 0 : index
    %363 = vector.load %arg5[%c3_303, %c0_304, %c0_305] : memref<5x8x1xf32, #tpu.memory_space<vmem>>, vector<1x8x1xf32>
    %364 = vector.shape_cast %363 : vector<1x8x1xf32> to vector<8x1xf32>
    %365 = vector.broadcast %364 : vector<8x1xf32> to vector<8x256xf32>
    %366 = arith.addf %362, %365 : vector<8x256xf32>
    %c28 = arith.constant 28 : index
    %c0_306 = arith.constant 0 : index
    %367 = vector.load %arg12[%c28, %c0_306] : memref<44x256xf32, #tpu.memory_space<vmem>>, vector<8x256xf32>
    tpu.vector_store %arg12[%c28, %c0_306], %366 {strides = array<i32>} : memref<44x256xf32, #tpu.memory_space<vmem>>, vector<8x256xf32>,
    %c0_307 = arith.constant 0 : index
    %c0_308 = arith.constant 0 : index
    %368 = vector.load %arg12[%c0_307, %c0_308] : memref<44x256xf32, #tpu.memory_space<vmem>>, vector<36x256xf32>
    %c4_309 = arith.constant 4 : index
    %c0_310 = arith.constant 0 : index
    %c0_311 = arith.constant 0 : index
    %369 = vector.load %arg3[%c4_309, %c0_310, %c0_311] : memref<5x44x1xf32, #tpu.memory_space<vmem>>, vector<1x36x1xf32>
    %370 = vector.shape_cast %369 : vector<1x36x1xf32> to vector<36x1xf32>
    %371 = vector.broadcast %370 : vector<36x1xf32> to vector<36x256xf32>
    %372 = arith.mulf %368, %371 : vector<36x256xf32>
    %c4_312 = arith.constant 4 : index
    %c0_313 = arith.constant 0 : index
    %c0_314 = arith.constant 0 : index
    %373 = vector.load %arg4[%c4_312, %c0_313, %c0_314] : memref<5x44x1xf32, #tpu.memory_space<vmem>>, vector<1x36x1xf32>
    %374 = vector.shape_cast %373 : vector<1x36x1xf32> to vector<36x1xf32>
    %375 = vector.broadcast %374 : vector<36x1xf32> to vector<36x256xf32>
    %376 = arith.addf %372, %375 : vector<36x256xf32>
    %cst_315 = arith.constant 0.000000e+00 : f32
    %377 = vector.broadcast %cst_315 : f32 to vector<36x256xf32>
    %378 = arith.maximumf %376, %377 : vector<36x256xf32>
    %c0_316 = arith.constant 0 : index
    %c256_317 = arith.constant 256 : index
    %379 = vector.load %arg11[%c0_316, %c256_317] : memref<36x768xf32, #tpu.memory_space<vmem>>, vector<36x256xf32>
    tpu.vector_store %arg11[%c0_316, %c256_317], %378 {strides = array<i32>} : memref<36x768xf32, #tpu.memory_space<vmem>>, vector<36x256xf32>,
    %c0_318 = arith.constant 0 : index
    %c103 = arith.constant 103 : index
    %380 = vector.load %arg11[%c0_318, %c103] : memref<36x768xf32, #tpu.memory_space<vmem>>, vector<36x256xf32>
    %c4_319 = arith.constant 4 : index
    %c0_320 = arith.constant 0 : index
    %c0_321 = arith.constant 0 : index
    %c0_322 = arith.constant 0 : index
    %381 = vector.load %arg2[%c4_319, %c0_320, %c0_321, %c0_322] : memref<5x9x8x36xf32, #tpu.memory_space<vmem>>, vector<1x1x8x36xf32>
    %382 = vector.shape_cast %381 : vector<1x1x8x36xf32> to vector<8x36xf32>
    %cst_323 = arith.constant dense<0.000000e+00> : vector<8x256xf32>
    %383 = tpu.matmul %382, %380, %cst_323 {dimension_numbers = #tpu.dot_dimension_numbers<[1], [0], [0], [1], [0, 0, 1, 1], [], []>} : vector<8x36xf32>, vector<36x256xf32>, vector<8x256xf32> -> vector<8x256xf32>
    %c0_324 = arith.constant 0 : index
    %c247 = arith.constant 247 : index
    %384 = vector.load %arg11[%c0_324, %c247] : memref<36x768xf32, #tpu.memory_space<vmem>>, vector<36x256xf32>
    %c4_325 = arith.constant 4 : index
    %c3_326 = arith.constant 3 : index
    %c0_327 = arith.constant 0 : index
    %c0_328 = arith.constant 0 : index
    %385 = vector.load %arg2[%c4_325, %c3_326, %c0_327, %c0_328] : memref<5x9x8x36xf32, #tpu.memory_space<vmem>>, vector<1x1x8x36xf32>
    %386 = vector.shape_cast %385 : vector<1x1x8x36xf32> to vector<8x36xf32>
    %cst_329 = arith.constant dense<0.000000e+00> : vector<8x256xf32>
    %387 = tpu.matmul %386, %384, %cst_329 {dimension_numbers = #tpu.dot_dimension_numbers<[1], [0], [0], [1], [0, 0, 1, 1], [], []>} : vector<8x36xf32>, vector<36x256xf32>, vector<8x256xf32> -> vector<8x256xf32>
    %388 = arith.addf %383, %387 : vector<8x256xf32>
    %c0_330 = arith.constant 0 : index
    %c391 = arith.constant 391 : index
    %389 = vector.load %arg11[%c0_330, %c391] : memref<36x768xf32, #tpu.memory_space<vmem>>, vector<36x256xf32>
    %c4_331 = arith.constant 4 : index
    %c6_332 = arith.constant 6 : index
    %c0_333 = arith.constant 0 : index
    %c0_334 = arith.constant 0 : index
    %390 = vector.load %arg2[%c4_331, %c6_332, %c0_333, %c0_334] : memref<5x9x8x36xf32, #tpu.memory_space<vmem>>, vector<1x1x8x36xf32>
    %391 = vector.shape_cast %390 : vector<1x1x8x36xf32> to vector<8x36xf32>
    %cst_335 = arith.constant dense<0.000000e+00> : vector<8x256xf32>
    %392 = tpu.matmul %391, %389, %cst_335 {dimension_numbers = #tpu.dot_dimension_numbers<[1], [0], [0], [1], [0, 0, 1, 1], [], []>} : vector<8x36xf32>, vector<36x256xf32>, vector<8x256xf32> -> vector<8x256xf32>
    %393 = arith.addf %388, %392 : vector<8x256xf32>
    %c-9_i32 = arith.constant -9 : i32
    %394 = vector.broadcast %c-9_i32 : i32 to vector<1x256xi32>
    %395 = arith.addi %20, %394 : vector<1x256xi32>
    %c0_i32_336 = arith.constant 0 : i32
    %396 = vector.broadcast %c0_i32_336 : i32 to vector<1x256xi32>
    %397 = arith.cmpi sge, %395, %396 : vector<1x256xi32>
    %c-9_i32_337 = arith.constant -9 : i32
    %398 = vector.broadcast %c-9_i32_337 : i32 to vector<1x256xi32>
    %399 = arith.addi %20, %398 : vector<1x256xi32>
    %c16_i32_338 = arith.constant 16 : i32
    %400 = vector.broadcast %c16_i32_338 : i32 to vector<1x256xi32>
    %401 = arith.cmpi slt, %399, %400 : vector<1x256xi32>
    %402 = arith.andi %397, %401 : vector<1x256xi1>
    %cst_339 = arith.constant 0.000000e+00 : f32
    %403 = vector.shape_cast %402 : vector<1x256xi1> to vector<1x256xi1>
    %404 = vector.broadcast %403 : vector<1x256xi1> to vector<8x256xi1>
    %405 = vector.broadcast %cst_339 : f32 to vector<8x256xf32>
    %406 = arith.select %404, %393, %405 : vector<8x256xi1>, vector<8x256xf32>
    %c0_340 = arith.constant 0 : index
    %c112 = arith.constant 112 : index
    %407 = vector.load %arg11[%c0_340, %c112] : memref<36x768xf32, #tpu.memory_space<vmem>>, vector<36x256xf32>
    %c4_341 = arith.constant 4 : index
    %c1_342 = arith.constant 1 : index
    %c0_343 = arith.constant 0 : index
    %c0_344 = arith.constant 0 : index
    %408 = vector.load %arg2[%c4_341, %c1_342, %c0_343, %c0_344] : memref<5x9x8x36xf32, #tpu.memory_space<vmem>>, vector<1x1x8x36xf32>
    %409 = vector.shape_cast %408 : vector<1x1x8x36xf32> to vector<8x36xf32>
    %cst_345 = arith.constant dense<0.000000e+00> : vector<8x256xf32>
    %410 = tpu.matmul %409, %407, %cst_345 {dimension_numbers = #tpu.dot_dimension_numbers<[1], [0], [0], [1], [0, 0, 1, 1], [], []>} : vector<8x36xf32>, vector<36x256xf32>, vector<8x256xf32> -> vector<8x256xf32>
    %c4_346 = arith.constant 4 : index
    %c4_347 = arith.constant 4 : index
    %c0_348 = arith.constant 0 : index
    %c0_349 = arith.constant 0 : index
    %411 = vector.load %arg2[%c4_346, %c4_347, %c0_348, %c0_349] : memref<5x9x8x36xf32, #tpu.memory_space<vmem>>, vector<1x1x8x36xf32>
    %412 = vector.shape_cast %411 : vector<1x1x8x36xf32> to vector<8x36xf32>
    %cst_350 = arith.constant dense<0.000000e+00> : vector<8x256xf32>
    %413 = tpu.matmul %412, %378, %cst_350 {dimension_numbers = #tpu.dot_dimension_numbers<[1], [0], [0], [1], [0, 0, 1, 1], [], []>} : vector<8x36xf32>, vector<36x256xf32>, vector<8x256xf32> -> vector<8x256xf32>
    %414 = arith.addf %410, %413 : vector<8x256xf32>
    %c0_351 = arith.constant 0 : index
    %c400 = arith.constant 400 : index
    %415 = vector.load %arg11[%c0_351, %c400] : memref<36x768xf32, #tpu.memory_space<vmem>>, vector<36x256xf32>
    %c4_352 = arith.constant 4 : index
    %c7_353 = arith.constant 7 : index
    %c0_354 = arith.constant 0 : index
    %c0_355 = arith.constant 0 : index
    %416 = vector.load %arg2[%c4_352, %c7_353, %c0_354, %c0_355] : memref<5x9x8x36xf32, #tpu.memory_space<vmem>>, vector<1x1x8x36xf32>
    %417 = vector.shape_cast %416 : vector<1x1x8x36xf32> to vector<8x36xf32>
    %cst_356 = arith.constant dense<0.000000e+00> : vector<8x256xf32>
    %418 = tpu.matmul %417, %415, %cst_356 {dimension_numbers = #tpu.dot_dimension_numbers<[1], [0], [0], [1], [0, 0, 1, 1], [], []>} : vector<8x36xf32>, vector<36x256xf32>, vector<8x256xf32> -> vector<8x256xf32>
    %419 = arith.addf %414, %418 : vector<8x256xf32>
    %420 = arith.addf %406, %419 : vector<8x256xf32>
    %c0_357 = arith.constant 0 : index
    %c121 = arith.constant 121 : index
    %421 = vector.load %arg11[%c0_357, %c121] : memref<36x768xf32, #tpu.memory_space<vmem>>, vector<36x256xf32>
    %c4_358 = arith.constant 4 : index
    %c2_359 = arith.constant 2 : index
    %c0_360 = arith.constant 0 : index
    %c0_361 = arith.constant 0 : index
    %422 = vector.load %arg2[%c4_358, %c2_359, %c0_360, %c0_361] : memref<5x9x8x36xf32, #tpu.memory_space<vmem>>, vector<1x1x8x36xf32>
    %423 = vector.shape_cast %422 : vector<1x1x8x36xf32> to vector<8x36xf32>
    %cst_362 = arith.constant dense<0.000000e+00> : vector<8x256xf32>
    %424 = tpu.matmul %423, %421, %cst_362 {dimension_numbers = #tpu.dot_dimension_numbers<[1], [0], [0], [1], [0, 0, 1, 1], [], []>} : vector<8x36xf32>, vector<36x256xf32>, vector<8x256xf32> -> vector<8x256xf32>
    %c0_363 = arith.constant 0 : index
    %c265 = arith.constant 265 : index
    %425 = vector.load %arg11[%c0_363, %c265] : memref<36x768xf32, #tpu.memory_space<vmem>>, vector<36x256xf32>
    %c4_364 = arith.constant 4 : index
    %c5_365 = arith.constant 5 : index
    %c0_366 = arith.constant 0 : index
    %c0_367 = arith.constant 0 : index
    %426 = vector.load %arg2[%c4_364, %c5_365, %c0_366, %c0_367] : memref<5x9x8x36xf32, #tpu.memory_space<vmem>>, vector<1x1x8x36xf32>
    %427 = vector.shape_cast %426 : vector<1x1x8x36xf32> to vector<8x36xf32>
    %cst_368 = arith.constant dense<0.000000e+00> : vector<8x256xf32>
    %428 = tpu.matmul %427, %425, %cst_368 {dimension_numbers = #tpu.dot_dimension_numbers<[1], [0], [0], [1], [0, 0, 1, 1], [], []>} : vector<8x36xf32>, vector<36x256xf32>, vector<8x256xf32> -> vector<8x256xf32>
    %429 = arith.addf %424, %428 : vector<8x256xf32>
    %c0_369 = arith.constant 0 : index
    %c409 = arith.constant 409 : index
    %430 = vector.load %arg11[%c0_369, %c409] : memref<36x768xf32, #tpu.memory_space<vmem>>, vector<36x256xf32>
    %c4_370 = arith.constant 4 : index
    %c8_371 = arith.constant 8 : index
    %c0_372 = arith.constant 0 : index
    %c0_373 = arith.constant 0 : index
    %431 = vector.load %arg2[%c4_370, %c8_371, %c0_372, %c0_373] : memref<5x9x8x36xf32, #tpu.memory_space<vmem>>, vector<1x1x8x36xf32>
    %432 = vector.shape_cast %431 : vector<1x1x8x36xf32> to vector<8x36xf32>
    %cst_374 = arith.constant dense<0.000000e+00> : vector<8x256xf32>
    %433 = tpu.matmul %432, %430, %cst_374 {dimension_numbers = #tpu.dot_dimension_numbers<[1], [0], [0], [1], [0, 0, 1, 1], [], []>} : vector<8x36xf32>, vector<36x256xf32>, vector<8x256xf32> -> vector<8x256xf32>
    %434 = arith.addf %429, %433 : vector<8x256xf32>
    %c9_i32 = arith.constant 9 : i32
    %435 = vector.broadcast %c9_i32 : i32 to vector<1x256xi32>
    %436 = arith.addi %20, %435 : vector<1x256xi32>
    %c0_i32_375 = arith.constant 0 : i32
    %437 = vector.broadcast %c0_i32_375 : i32 to vector<1x256xi32>
    %438 = arith.cmpi sge, %436, %437 : vector<1x256xi32>
    %c9_i32_376 = arith.constant 9 : i32
    %439 = vector.broadcast %c9_i32_376 : i32 to vector<1x256xi32>
    %440 = arith.addi %20, %439 : vector<1x256xi32>
    %c16_i32_377 = arith.constant 16 : i32
    %441 = vector.broadcast %c16_i32_377 : i32 to vector<1x256xi32>
    %442 = arith.cmpi slt, %440, %441 : vector<1x256xi32>
    %443 = arith.andi %438, %442 : vector<1x256xi1>
    %cst_378 = arith.constant 0.000000e+00 : f32
    %444 = vector.shape_cast %443 : vector<1x256xi1> to vector<1x256xi1>
    %445 = vector.broadcast %444 : vector<1x256xi1> to vector<8x256xi1>
    %446 = vector.broadcast %cst_378 : f32 to vector<8x256xf32>
    %447 = arith.select %445, %434, %446 : vector<8x256xi1>, vector<8x256xf32>
    %448 = arith.addf %420, %447 : vector<8x256xf32>
    %c4_379 = arith.constant 4 : index
    %c0_380 = arith.constant 0 : index
    %c0_381 = arith.constant 0 : index
    %449 = vector.load %arg5[%c4_379, %c0_380, %c0_381] : memref<5x8x1xf32, #tpu.memory_space<vmem>>, vector<1x8x1xf32>
    %450 = vector.shape_cast %449 : vector<1x8x1xf32> to vector<8x1xf32>
    %451 = vector.broadcast %450 : vector<8x1xf32> to vector<8x256xf32>
    %452 = arith.addf %448, %451 : vector<8x256xf32>
    %c36 = arith.constant 36 : index
    %c0_382 = arith.constant 0 : index
    %453 = vector.load %arg12[%c36, %c0_382] : memref<44x256xf32, #tpu.memory_space<vmem>>, vector<8x256xf32>
    tpu.vector_store %arg12[%c36, %c0_382], %452 {strides = array<i32>} : memref<44x256xf32, #tpu.memory_space<vmem>>, vector<8x256xf32>,
    %c0_383 = arith.constant 0 : index
    %c0_384 = arith.constant 0 : index
    %454 = vector.load %arg12[%c0_383, %c0_384] : memref<44x256xf32, #tpu.memory_space<vmem>>, vector<44x256xf32>
    %c0_385 = arith.constant 0 : index
    %c0_386 = arith.constant 0 : index
    %455 = vector.load %arg6[%c0_385, %c0_386] : memref<44x1xf32, #tpu.memory_space<vmem>>, vector<44x1xf32>
    %456 = vector.broadcast %455 : vector<44x1xf32> to vector<44x256xf32>
    %457 = arith.mulf %454, %456 : vector<44x256xf32>
    %c0_387 = arith.constant 0 : index
    %c0_388 = arith.constant 0 : index
    %458 = vector.load %arg7[%c0_387, %c0_388] : memref<44x1xf32, #tpu.memory_space<vmem>>, vector<44x1xf32>
    %459 = vector.broadcast %458 : vector<44x1xf32> to vector<44x256xf32>
    %460 = arith.addf %457, %459 : vector<44x256xf32>
    %cst_389 = arith.constant 0.000000e+00 : f32
    %461 = vector.broadcast %cst_389 : f32 to vector<44x256xf32>
    %462 = arith.maximumf %460, %461 : vector<44x256xf32>
    %c0_390 = arith.constant 0 : index
    %c0_391 = arith.constant 0 : index
    %463 = vector.load %arg8[%c0_390, %c0_391] : memref<6x44xf32, #tpu.memory_space<vmem>>, vector<6x44xf32>
    %cst_392 = arith.constant dense<0.000000e+00> : vector<6x256xf32>
    %464 = tpu.matmul %463, %462, %cst_392 {dimension_numbers = #tpu.dot_dimension_numbers<[1], [0], [0], [1], [0, 0, 1, 1], [], []>} : vector<6x44xf32>, vector<44x256xf32>, vector<6x256xf32> -> vector<6x256xf32>
    %c0_393 = arith.constant 0 : index
    %c0_394 = arith.constant 0 : index
    %465 = vector.load %arg9[%c0_393, %c0_394] : memref<6x1xf32, #tpu.memory_space<vmem>>, vector<6x1xf32>
    %466 = vector.broadcast %465 : vector<6x1xf32> to vector<6x256xf32>
    %467 = arith.addf %464, %466 : vector<6x256xf32>
    %c0_395 = arith.constant 0 : index
    %c0_396 = arith.constant 0 : index
    %c0_397 = arith.constant 0 : index
    %468 = vector.load %arg10[%c0_395, %c0_396, %c0_397] : memref<1x6x256xf32, #tpu.memory_space<vmem>>, vector<1x6x256xf32>
    %469 = vector.shape_cast %468 : vector<1x6x256xf32> to vector<6x256xf32>
    %470 = vector.shape_cast %467 : vector<6x256xf32> to vector<1x6x256xf32>
    tpu.vector_store %arg10[%c0_395, %c0_396, %c0_397], %470 {strides = array<i32>} : memref<1x6x256xf32, #tpu.memory_space<vmem>>, vector<1x6x256xf32>,
    return
  }
  func.func @transform_0(%arg0: i32) -> (i32, i32, i32) {
    %c0_i32 = arith.constant 0 : i32
    %c0_i32_0 = arith.constant 0 : i32
    %c0_i32_1 = arith.constant 0 : i32
    return %arg0, %c0_i32, %c0_i32_0 : i32, i32, i32
  }
  func.func @transform_1(%arg0: i32) -> (i32, i32, i32, i32) {
    %c0_i32 = arith.constant 0 : i32
    %c0_i32_0 = arith.constant 0 : i32
    %c0_i32_1 = arith.constant 0 : i32
    %c0_i32_2 = arith.constant 0 : i32
    %c0_i32_3 = arith.constant 0 : i32
    return %c0_i32, %c0_i32_0, %c0_i32_1, %c0_i32_2 : i32, i32, i32, i32
  }
  func.func @transform_2(%arg0: i32) -> (i32, i32, i32) {
    %c0_i32 = arith.constant 0 : i32
    %c0_i32_0 = arith.constant 0 : i32
    %c0_i32_1 = arith.constant 0 : i32
    %c0_i32_2 = arith.constant 0 : i32
    return %c0_i32, %c0_i32_0, %c0_i32_1 : i32, i32, i32
  }
  func.func @transform_3(%arg0: i32) -> (i32, i32, i32) {
    %c0_i32 = arith.constant 0 : i32
    %c0_i32_0 = arith.constant 0 : i32
    %c0_i32_1 = arith.constant 0 : i32
    %c0_i32_2 = arith.constant 0 : i32
    return %c0_i32, %c0_i32_0, %c0_i32_1 : i32, i32, i32
  }
  func.func @transform_4(%arg0: i32) -> (i32, i32, i32) {
    %c0_i32 = arith.constant 0 : i32
    %c0_i32_0 = arith.constant 0 : i32
    %c0_i32_1 = arith.constant 0 : i32
    %c0_i32_2 = arith.constant 0 : i32
    return %c0_i32, %c0_i32_0, %c0_i32_1 : i32, i32, i32
  }
  func.func @transform_5(%arg0: i32) -> (i32, i32) {
    %c0_i32 = arith.constant 0 : i32
    %c0_i32_0 = arith.constant 0 : i32
    %c0_i32_1 = arith.constant 0 : i32
    return %c0_i32, %c0_i32_0 : i32, i32
  }
  func.func @transform_6(%arg0: i32) -> (i32, i32) {
    %c0_i32 = arith.constant 0 : i32
    %c0_i32_0 = arith.constant 0 : i32
    %c0_i32_1 = arith.constant 0 : i32
    return %c0_i32, %c0_i32_0 : i32, i32
  }
  func.func @transform_7(%arg0: i32) -> (i32, i32) {
    %c0_i32 = arith.constant 0 : i32
    %c0_i32_0 = arith.constant 0 : i32
    %c0_i32_1 = arith.constant 0 : i32
    return %c0_i32, %c0_i32_0 : i32, i32
  }
  func.func @transform_8(%arg0: i32) -> (i32, i32) {
    %c0_i32 = arith.constant 0 : i32
    %c0_i32_0 = arith.constant 0 : i32
    %c0_i32_1 = arith.constant 0 : i32
    return %c0_i32, %c0_i32_0 : i32, i32
  }
  func.func @transform_9(%arg0: i32) -> (i32, i32, i32) {
    %c0_i32 = arith.constant 0 : i32
    %c0_i32_0 = arith.constant 0 : i32
    %c0_i32_1 = arith.constant 0 : i32
    return %arg0, %c0_i32, %c0_i32_0 : i32, i32, i32
  }
}

</mosaic_0001>

<bundles_post_ra>
// kernel: tpu_custom_call.1
= control target key start
LH: loop header
LB: loop body
LE: loop exit
PB: predicated region body
PF: predicated region fallthrough
CT: control target
= control target key end

     0   :  { %s7697_s30 = smov 0   ;;  %s9348_s0 = inlined_call_operand.vmem [shape: f32[2,4,256], index: 0, kind: input, shape index: {}]   ;;  %s9349_s1 = inlined_call_operand.vmem [shape: f32[5,9,8,36], index: 1, kind: input, shape index: {}]   ;;  %s9350_s2 = inlined_call_operand.vmem [shape: f32[5,44,1], index: 2, kind: input, shape index: {}]   ;;  %s9351_s3 = inlined_call_operand.vmem [shape: f32[5,44,1], index: 3, kind: input, shape index: {}]   ;;  %s9352_s4 = inlined_call_operand.vmem [shape: f32[5,8,1], index: 4, kind: input, shape index: {}]   ;;  %s9353_s5 = inlined_call_operand.vmem [shape: f32[44,1], index: 5, kind: input, shape index: {}]   ;;  %s9354_s6 = inlined_call_operand.vmem [shape: f32[44,1], index: 6, kind: input, shape index: {}]   ;;  %s9355_s7 = inlined_call_operand.vmem [shape: f32[6,44], index: 7, kind: input, shape index: {}]   ;;  %s9356_s8 = inlined_call_operand.vmem [shape: f32[6,1], index: 8, kind: input, shape index: {}]   ;;  %s9357_s9 = inlined_call_operand.vmem [shape: f32[2,6,256], index: 9, kind: output, shape index: {}]  }
   0x1 LB: > { %s6252_s10 = sadd.s32 4294967295, %s7610_s30   ;;  %p6256_p0 = scmp.ge.s32.totalorder %s7610_s30, 1  ;;  %s7610_s30 = sphi %s7697_s30, %s19_s30  }
   0x2   : > { %p287_p1 = scmp.lt.s32.totalorder %s7610_s30, 3 }
   0x4   : > { %p288_p2 = pnand %p6256_p0, %p287_p1 }
   0x5   : > { %v388_v0 = vld [vmem:[%s9350_s2] sm:$0xf] (!%p288_p2)  ;;  %p323_p3 = scmp.lt.s32.totalorder (!%p288_p2), %s6252_s10, 1  ;;  %v7612_v1 = vmov (!%p288_p2), 0   ;;  %v7613_v2 = vmov (!%p288_p2), 0.0   ;;  %s7614_s19 = smov (!%p288_p2), 2  }
   0x6   : > { %291 = sbr.rel (%p288_p2) target bundleno = 2426 (0x97a), region = 56  ;;  %6848 = vset.pattern.permute.xlu0 (!%p288_p2), %v7612_v1  ;;  %6849 = vset.pattern.permute.xlu1 (!%p288_p2), %v7612_v1  ;;  %334 = vst [vmem:[#allocation2 + $0x8] sm:$0xff] (!%p288_p2), %v7613_v2  ;;  %336 = vst [vmem:[#allocation2 + $0x38] sm:$0xff] (!%p288_p2), %v7613_v2  ;;  %v396_v3 = vld [vmem:[%s9351_s3] sm:$0xf] (!%p288_p2)  ;;  %s7615_s20 = smov (!%p288_p2), 34  }
   0x7   : > { %391 = vperm.xlu0 (!%p288_p2), %6848, %v388_v0   ;;  %338 = vst [vmem:[#allocation2 + $0x68] sm:$0xff] (!%p288_p2), %v7613_v2  ;;  %340 = vst [vmem:[#allocation2 + $0x98] sm:$0xff] (!%p288_p2), %v7613_v2  ;;  %499 = vmatprep.mubr.f32.mxu0 (!%p288_p2), %v7613_v2  ;;  %s7616_s21 = smov (!%p288_p2), 126   ;;  %s7617_s22 = smov (!%p288_p2), 32   ;;  %vm430_vm0 = vcmask (!%p288_p2), 1043456   ;;  %vm426_vm1 = vcmask (!%p288_p2), 31744  }
   0x8   : > { %341 = vst [vmem:[#allocation2 + $0xc0] sm:$0xf] (!%p288_p2), %v7613_v2  ;;  %342 = vst [vmem:[#allocation2 + $0xc8] sm:$0xf] (!%p288_p2), %v7613_v2  ;;  %781 = vmatprep.mubr.f32.mxu1 (!%p288_p2), %v7613_v2  ;;  %s7618_s23 = smov (!%p288_p2), 98   ;;  %v6273_v22 = vld [vmem:[%s9349_s1 + $0x20] sm:$0xff] (!%p288_p2) }
   0x9   : > { %343 = vst [vmem:[#allocation2 + $0x20] sm:$0xff] (!%p288_p2), %v7613_v2  ;;  %345 = vst [vmem:[#allocation2 + $0x50] sm:$0xff] (!%p288_p2), %v7613_v2  ;;  %s7619_s26 = smov (!%p288_p2), 30   ;;  %s7620_s27 = smov (!%p288_p2), 96   ;;  %v1253_v23 = vld [vmem:[%s9352_s4] sm:$0xff] (!%p288_p2)  ;;  %v6296_v27 = vld [vmem:[%s9350_s2 + $0x30] sm:$0xff] (!%p288_p2) }
   0xa   : > { %347 = vst [vmem:[#allocation2 + $0x80] sm:$0xff] (!%p288_p2), %v7613_v2  ;;  %349 = vst [vmem:[#allocation2 + $0xb0] sm:$0xff] (!%p288_p2), %v7613_v2  ;;  %s7621_s28 = smov (!%p288_p2), 94   ;;  %v6297_v24 = vld [vmem:[%s9350_s2 + $0x38] sm:$0xf] (!%p288_p2)  ;;  %v6298_v29 = vld [vmem:[%s9351_s3 + $0x30] sm:$0xff] (!%p288_p2) }
   0xb   : > { %351 = vst [vmem:[#allocation2 + $0xe0] sm:$0xf] (!%p288_p2), %v7613_v2  ;;  %352 = vst [vmem:[#allocation2 + $0xe8] sm:$0xf] (!%p288_p2), %v7613_v2  ;;  %399 = vperm.xlu0 (!%p288_p2), %6848, %v396_v3   ;;  %v6299_v25 = vld [vmem:[%s9351_s3 + $0x38] sm:$0xf] (!%p288_p2) }
   0xc   : > { %vm423_vm2 = vcmask (!%p288_p2), 15360   ;;  %v6261_v39 = vld [vmem:[%s9349_s1 + $0x18] sm:$0xff] (!%p288_p2)  ;;  %vm512_vm3 = vcmask (!%p288_p2), 277504   ;;  %vm607_vm4 = vcmask (!%p288_p2), 801792   ;;  %v411_v46 = vld [vmem:[%s9349_s1] sm:$0xff] (!%p288_p2)  ;;  %vm978_vm5 = vcmask (!%p288_p2), 1031168  }
   0xd   : > { %s9372_s10 = smov (!%p323_p3, %s6252_s10), 1  ;;  %v408_v6 = vld [vmem:[#allocation2 + $0x8] sm:$0xf]  ;;  %v1312_v26 = vld [vmem:[#allocation2 + $0x38] sm:$0xf]  ;;  %v6268_v53 = vld [vmem:[%s9349_s1 + $0x30] sm:$0xff] }
   0xe   : > { %s6477_s15 = sshll.u32 %s9372_s10, 3  ;;  %506 = vrot.lane.b32.xlu1 %v408_v6, %s7615_s20  ;;  %v7763_v28 = vpack.i.bf16 %v1312_v26, %v7613_v2  ;;  %v6285_v57 = vld [vmem:[%s9349_s1 + $0x28] sm:$0xff]  ;;  %vm794_vm6 = vcmask 261120   ;;  %vm1065_vm7 = vcmask 244736   ;;  %v6284_v3 = vld [vmem:[%s9349_s1 + $0x10] sm:$0xff]  ;;  %vm883_vm8 = vcmask 785408  }
   0xf   : > { %s327_s18 = scalar_lea.vmem %s9348_s0, %s6477_s15  ;;  %417 = vrot.lane.b32.xlu0 %v408_v6, %s7614_s19  ;;  %v6272_v61 = vld [vmem:[%s9349_s1 + $0x8] sm:$0xff]  ;;  %vm1154_vm9 = vcmask 769024   ;;  %vm7625_vm14 = vmmov 1   ;;  %s7628_s24 = smov 45  }
  0x10   : > { %v380_v4 = vld [vmem:[%s327_s18] sm:$0xff]  ;;  %s7622_s18 = smov 51   ;;  %vm7855_vm15 = vmpackc.low %vm430_vm0, %vm7625_vm14  ;;  %s7629_s25 = smov 80   ;;  %vm2373_vm14 = vcmask 39936  }
  0x11   : > { %v382_v5 = vcombine.high %v380_v4, %v380_v4  ;;  %384 = vst [vmem:[#allocation3 + $0x10] sm:$0xf] %v380_v4  ;;  %v595_v7 = vld [vmem:[#allocation2 + $0x20] sm:$0xf]  ;;  %s7636_s14 = smov 43   ;;  %s7644_s17 = smov 9  }
  0x12   : > { %s7645_s16 = smov 25   ;;  %s6478_s12 = sshll.u32 %s9372_s10, 4 }
  0x13   : > { %385 = vst [vmem:[#allocation3 + $0x18] sm:$0xf] %v382_v5  ;;  %976 = vrot.lane.b32.xlu0 %v595_v7, %s7616_s21 }
  0x17   : > { %788 = vrot.lane.b32.xlu0 %v408_v6, %s7617_s22 }
  0x18   : > { %v386_v9 = vld [vmem:[#allocation3 + $0x10] sm:$0xf] }
  0x1a   : > { %v387_v10 = vld [vmem:[#allocation3 + $0x18] sm:$0xf] }
  0x80   : > { %v507_v32 = vpop.permute.xlu1 %506 }
  0x86   : > { %v392_v8 = vpop.permute.xlu0 %391 }
  0x87   : > { %v394_v11 = vmul.f32 %v392_v8, %v386_v9  ;;  %v395_v12 = vmul.f32 %v392_v8, %v387_v10 }
  0x8a   : > { %v400_v13 = vpop.permute.xlu0 %399 }
  0x8b   : > { %v402_v14 = vadd.f32 %v400_v13, %v394_v11  ;;  %v403_v15 = vadd.f32 %v400_v13, %v395_v12  ;;  %v6292_v13 = vld [vmem:[%s9349_s1 + $0x40] sm:$0xff] }
  0x8d   : > { %v405_v16 = vmax.f32 %v403_v15, 0.0  ;;  %v404_v17 = vmax.f32 %v402_v14, 0.0 }
  0x8e   : > { %v418_v30 = vpop.permute.xlu0 %417 }
  0x8f   : > { %407 = vst [vmem:[#allocation2 + $0x18] sm:$0xf] %v405_v16  ;;  %6274 = vmatprep.subr.msk.mxu1 %vm430_vm0, %v405_v16  ;;  %406 = vst [vmem:[#allocation2 + $0x10] sm:$0xf] %v404_v17  ;;  %v1265_v16 = vld [vmem:[#allocation3 + $0x10] sm:$0xf] }
  0x90   : > { %6275 = vmatpush1.msk.msra.mxu1 %vm430_vm0, %v404_v17  ;;  %v1266_v17 = vld [vmem:[#allocation3 + $0x18] sm:$0xf] }
  0x91   : > { %6276 = vmatmul.mubr.msk.f32.vlgmr.msra.gmra.mrb[0].mxu1 %vm426_vm1, %v6273_v22 }
  0x92   : > { %868 = vmatprep.mubr.f32.mxu1 %v7613_v2  ;;  %v977_v31 = vpop.permute.xlu0 %976 }
  0x96   : > { %v409_v18 = vld [vmem:[#allocation2 + $0x10] sm:$0xf]  ;;  %v410_v19 = vld [vmem:[#allocation2 + $0x18] sm:$0xf]  ;;  %v789_v33 = vpop.permute.xlu0 %788 }
  0x97   : > { %419 = vrot.lane.b32.xlu1 %v409_v18, %s7614_s19  ;;  %510 = vrot.lane.b32.xlu0 %v410_v19, %s7615_s20  ;;  %v594_v20 = vld [vmem:[#allocation2 + $0x18] sm:$0xf]  ;;  %v593_v21 = vld [vmem:[#allocation2 + $0x10] sm:$0xf] }
  0x9b   : > { %603 = vrot.lane.b32.xlu0 %v594_v20, %s7618_s23  ;;  %421 = vrot.lane.b32.xlu1 %v410_v19, %s7614_s19 }
  0x9f   : > { %601 = vrot.lane.b32.xlu0 %v593_v21, %s7618_s23  ;;  %605 = vrot.lane.b32.xlu1 %v595_v7, %s7618_s23  ;;  %s7627_s23 = smov 48  }
  0xa3   : > { %790 = vrot.lane.b32.xlu0 %v409_v18, %s7617_s22  ;;  %508 = vrot.lane.b32.xlu1 %v409_v18, %s7615_s20  ;;  %s7624_s20 = smov 83  }
  0xa7   : > { %1063 = vrot.lane.b32.xlu0 %v410_v19, %s7619_s26  ;;  %1059 = vrot.lane.b32.xlu1 %v408_v6, %s7619_s26 }
  0xab   : > { %879 = vrot.lane.b32.xlu0 %v594_v20, %s7620_s27  ;;  %974 = vrot.lane.b32.xlu1 %v594_v20, %s7616_s21 }
  0xaf   : > { %877 = vrot.lane.b32.xlu0 %v593_v21, %s7620_s27  ;;  %972 = vrot.lane.b32.xlu1 %v593_v21, %s7616_s21  ;;  %s7623_s21 = smov 3  }
  0xb3   : > { %1152 = vrot.lane.b32.xlu0 %v595_v7, %s7621_s28  ;;  %792 = vrot.lane.b32.xlu1 %v410_v19, %s7617_s22  ;;  %s7626_s22 = smov 125  }
  0xb7   : > { %1256 = vperm.xlu0 %6848, %v1253_v23   ;;  %1061 = vrot.lane.b32.xlu1 %v409_v18, %s7619_s26  ;;  %s7630_s26 = smov 77  }
  0xbb   : > { %1277 = vperm.xlu0 %6848, %v6297_v24   ;;  %881 = vrot.lane.b32.xlu1 %v595_v7, %s7620_s27  ;;  %v6280_v7 = vld [vmem:[%s9349_s1 + $0x38] sm:$0xff]  ;;  %s7634_s27 = smov 75  }
  0xbf   : > { %1294 = vperm.xlu0 %6848, %v6299_v25   ;;  %1150 = vrot.lane.b32.xlu1 %v594_v20, %s7621_s28 }
  0xc3   : > { %1148 = vrot.lane.b32.xlu1 %v593_v21, %s7621_s28  ;;  %6856 = vrot.lane.b32.xlu0 %v7763_v28, %s7622_s18  ;;  %s7635_s28 = smov 123  }
  0xc7   : > { %1272 = vperm.xlu1 %6849, %v6296_v27  }
  0xcb   : > { %1289 = vperm.xlu1 %6849, %v6298_v29  }
  0xcf   : > { %6851 = vrot.lane.b32.xlu1 %v7763_v28, %s7623_s21 }
 0x109   : > { %v420_v34 = vpop.permute.xlu1 %419  ;;  %v511_v35 = vpop.permute.xlu0 %510 }
 0x10a   : > { %v424_v40 = vsel %vm423_vm2, %v418_v30, %v420_v34 }
 0x10d   : > { %v604_v36 = vpop.permute.xlu0 %603  ;;  %v422_v37 = vpop.permute.xlu1 %421 }
 0x10e   : > { %v425_v38 = vsel %vm423_vm2, %v420_v34, %v422_v37  ;;  %vm1337_vm2 = vcmask 23552  }
 0x10f   : > { %6262 = vmatprep.subr.msk.mxu0 %vm430_vm0, %v425_v38 }
 0x110   : > { %6263 = vmatpush1.msk.msra.mxu0 %vm430_vm0, %v424_v40 }
 0x111   : > { %6264 = vmatmul.mubr.msk.f32.vlgmr.msra.gmra.mrb[0].mxu0 %vm426_vm1, %v6261_v39  ;;  %v606_v41 = vpop.permute.xlu1 %605  ;;  %v602_v42 = vpop.permute.xlu0 %601 }
 0x112   : > { %586 = vmatprep.mubr.f32.mxu0 %v7613_v2  ;;  %v609_v47 = vsel %vm607_vm4, %v604_v36, %v606_v41  ;;  %v608_v48 = vsel %vm607_vm4, %v602_v42, %v604_v36  ;;  %vm1546_vm4 = vcmask 678912  }
 0x115   : > { %v509_v43 = vpop.permute.xlu1 %508  ;;  %v791_v49 = vpop.permute.xlu0 %790 }
 0x116   : > { %v513_v44 = vsel %vm512_vm3, %v507_v32, %v509_v43  ;;  %v514_v45 = vsel %vm512_vm3, %v509_v43, %v511_v35  ;;  %v795_v62 = vsel %vm794_vm6, %v789_v33, %v791_v49  ;;  %v353_v33 = vlaneseq }
 0x117   : > { %6265 = vmatprep.subr.msk.mxu0 %vm430_vm0, %v514_v45  ;;  %vm1435_vm3 = vcmask 416768  }
 0x118   : > { %6266 = vmatpush1.msk.msra.mxu0 %vm430_vm0, %v513_v44  ;;  %v354_v34 = vand.u32 127, %v353_v33 }
 0x119   : > { %6267 = vmatmul.mubr.msk.f32.vlgmr.msra.gmra.mrb[0].mxu0 %vm426_vm1, %v411_v46  ;;  %6269 = vmatprep.subr.msk.mxu0 %vm430_vm0, %v609_v47  ;;  %v1060_v50 = vpop.permute.xlu1 %1059  ;;  %v1064_v54 = vpop.permute.xlu0 %1063 }
 0x11a   : > { %6270 = vmatpush1.msk.msra.mxu0 %vm430_vm0, %v608_v48  ;;  %681 = vmatprep.mubr.f32.mxu0 %v7613_v2  ;;  %v355_v37 = vadd.s32 128, %v354_v34  ;;  %v7838_v38 = vand.u32 15, %v354_v34 }
 0x11c   : > { %v7840_v39 = vand.u32 15, %v355_v37  ;;  %v690_v40 = vadd.s32 4294967294, %v7838_v38  ;;  %v1237_v47 = vadd.s32 2, %v7838_v38 }
 0x11d   : > { %v975_v51 = vpop.permute.xlu1 %974  ;;  %v880_v58 = vpop.permute.xlu0 %879 }
 0x11e   : > { %v980_v52 = vsel %vm978_vm5, %v975_v51, %v977_v31  ;;  %v1525_v31 = vld [vmem:[#allocation2 + $0x50] sm:$0xf]  ;;  %v691_v41 = vadd.s32 4294967294, %v7840_v39  ;;  %vm692_vm10 = vcmp.ge.s32.totalorder %v690_v40, 0  ;;  %vm1241_vm12 = vcmp.lt.s32.totalorder %v1237_v47, 16 }
 0x11f   : > { %6286 = vmatprep.subr.msk.mxu0 %vm430_vm0, %v980_v52 }
 0x120   : > { %vm693_vm11 = vcmp.ge.s32.totalorder %v691_v41, 0 }
 0x121   : > { %6271 = vmatmul.mubr.msk.f32.vlgmr.msra.gmra.mrb[0].mxu0 %vm426_vm1, %v6268_v53  ;;  %v973_v55 = vpop.permute.xlu1 %972  ;;  %v878_v4 = vpop.permute.xlu0 %877 }
 0x122   : > { %v979_v56 = vsel %vm978_vm5, %v973_v55, %v975_v51  ;;  %1052 = vmatprep.mubr.f32.mxu0 %v7613_v2  ;;  %v884_v8 = vsel %vm883_vm8, %v878_v4, %v880_v58  ;;  %vm1947_vm5 = vcmask 1022976  }
 0x123   : > { %6287 = vmatpush1.msk.msra.mxu0 %vm430_vm0, %v979_v56 }
 0x125   : > { %v793_v59 = vpop.permute.xlu1 %792  ;;  %6288 = vmatmul.mubr.msk.f32.vlgmr.msra.gmra.mrb[2].mxu0 %vm426_vm1, %v6285_v57  ;;  %v1153_v9 = vpop.permute.xlu0 %1152 }
 0x126   : > { %v796_v60 = vsel %vm794_vm6, %v791_v49, %v793_v59  ;;  %1139 = vmatprep.mubr.f32.mxu0 %v7613_v2  ;;  %v1238_v49 = vadd.s32 2, %v7840_v39  ;;  %vm2044_vm6 = vcmask 367616  }
 0x127   : > { %6277 = vmatprep.subr.msk.mxu1 %vm430_vm0, %v796_v60 }
 0x128   : > { %6278 = vmatpush1.msk.msra.mxu1 %vm430_vm0, %v795_v62  ;;  %vm1242_vm13 = vcmp.lt.s32.totalorder %v1238_v49, 16 }
 0x129   : > { %6279 = vmatmul.mubr.msk.f32.vlgmr.msra.gmra.mrb[0].mxu1 %vm426_vm1, %v6272_v61  ;;  %v1062_v63 = vpop.permute.xlu1 %1061 }
 0x12a   : > { %v1066_v0 = vsel %vm1065_vm7, %v1060_v50, %v1062_v63  ;;  %v1067_v1 = vsel %vm1065_vm7, %v1062_v63, %v1064_v54  ;;  %957 = vmatprep.mubr.f32.mxu1 %v7613_v2  ;;  %vm1743_vm7 = vcmask 392192  }
 0x12b   : > { %6289 = vmatprep.subr.msk.mxu0 %vm430_vm0, %v1067_v1 }
 0x12c   : > { %6290 = vmatpush1.msk.msra.mxu0 %vm430_vm0, %v1066_v0 }
 0x12d   : > { %v882_v5 = vpop.permute.xlu1 %881  ;;  %6291 = vmatmul.mubr.msk.f32.vlgmr.msra.gmra.mrb[2].mxu0 %vm426_vm1, %v6284_v3 }
 0x12e   : > { %v885_v6 = vsel %vm883_vm8, %v880_v58, %v882_v5  ;;  %1228 = vmatprep.mubr.f32.mxu0 %v7613_v2  ;;  %vm1842_vm8 = vcmask 654336  }
 0x12f   : > { %6281 = vmatprep.subr.msk.mxu1 %vm430_vm0, %v885_v6 }
 0x130   : > { %6282 = vmatpush1.msk.msra.mxu1 %vm430_vm0, %v884_v8 }
 0x131   : > { %6283 = vmatmul.mubr.msk.f32.vlgmr.msra.gmra.mrb[0].mxu1 %vm426_vm1, %v6280_v7  ;;  %v1151_v10 = vpop.permute.xlu1 %1150 }
 0x132   : > { %v1156_v11 = vsel %vm1154_vm9, %v1151_v10, %v1153_v9  ;;  %1416 = vmatprep.mubr.f32.mxu1 %v7613_v2 }
 0x133   : > { %6293 = vmatprep.subr.msk.mxu0 %vm430_vm0, %v1156_v11  ;;  %v6340_v11 = vld [vmem:[%s9351_s3 + $0x60] sm:$0xff] }
 0x135   : > { %v1149_v12 = vpop.permute.xlu1 %1148 }
 0x136   : > { %v1155_v14 = vsel %vm1154_vm9, %v1149_v12, %v1151_v10  ;;  %v1257_v15 = vpop.permute.xlu0 %1256  ;;  %v6313_v10 = vld [vmem:[%s9349_s1 + $0x68] sm:$0xff]  ;;  %vm2143_vm9 = vcmask 629760  }
 0x137   : > { %6294 = vmatpush1.msk.msra.mxu0 %vm430_vm0, %v1155_v14  ;;  %v6336_v12 = vld [vmem:[%s9352_s4 + $0x8] sm:$0xff] }
 0x138   : > { %6295 = vmatmul.mubr.msk.f32.vlgmr.msra.gmra.mrb[2].mxu0 %vm426_vm1, %v6292_v13  ;;  %vm1344_vm1 = vcmask 97280   ;;  %v6339_v13 = vld [vmem:[%s9350_s2 + $0x70] sm:$0xf]  ;;  %v6338_v14 = vld [vmem:[%s9350_s2 + $0x68] sm:$0xff] }
 0x139   : > { %1724 = vmatprep.mubr.f32.mxu0 %v7613_v2 }
 0x13a   : > { %v1278_v18 = vpop.permute.xlu0 %1277 }
 0x13b   : > { %v1282_v19 = vmul.f32 %v1278_v18, %v1265_v16  ;;  %v1283_v20 = vmul.f32 %v1278_v18, %v1266_v17  ;;  %v2339_v16 = vld [vmem:[#allocation2 + $0x68] sm:$0xf]  ;;  %v6342_v17 = vld [vmem:[%s9351_s3 + $0x70] sm:$0xf]  ;;  %v7911_v18 = vld [vmem:[#allocation2 + $0x80] sm:$0xf] }
 0x13e   : > { %v1295_v21 = vpop.permute.xlu0 %1294 }
 0x13f   : > { %v1299_v22 = vadd.f32 %v1295_v21, %v1282_v19  ;;  %v1300_v23 = vadd.f32 %v1295_v21, %v1283_v20 }
 0x141   : > { %v1303_v24 = vmax.f32 %v1299_v22, 0.0  ;;  %v1304_v25 = vmax.f32 %v1300_v23, 0.0 }
 0x142   : > { %v6857_v19 = vpop.permute.xlu0 %6856 }
 0x143   : > { %1307 = vst [vmem:[#allocation2 + $0x40] sm:$0xf] %v1303_v24  ;;  %1308 = vst [vmem:[#allocation2 + $0x48] sm:$0xf] %v1304_v25 }
 0x146   : > { %v1273_v51 = vpop.permute.xlu1 %1272 }
 0x14a   : > { %v1313_v26 = vld [vmem:[#allocation2 + $0x40] sm:$0xf]  ;;  %v1314_v27 = vld [vmem:[#allocation2 + $0x48] sm:$0xf]  ;;  %v1290_v60 = vpop.permute.xlu1 %1289 }
 0x14b   : > { %v7828_v29 = vpack.i.bf16 %v1314_v27, %v1313_v26  ;;  %v1524_v30 = vld [vmem:[#allocation2 + $0x48] sm:$0xf]  ;;  %v1523_v7 = vld [vmem:[#allocation2 + $0x40] sm:$0xf] }
 0x14c   : > { %v7834_v32 = vpack.i.bf16 %v1525_v31, %v1524_v30 }
 0x14d   : > { %6861 = vrot.lane.b32.xlu0 %v7828_v29, %s7623_s21  ;;  %6866 = vrot.lane.b32.xlu1 %v7828_v29, %s7622_s18 }
 0x14e   : > { %v6852_v21 = vpop.permute.xlu1 %6851 }
 0x151   : > { %6871 = vrot.lane.b32.xlu0 %v7834_v32, %s7624_s20 }
 0x1bf   : > { %v6862_v20 = vpop.permute.xlu0 %6861  ;;  %v6867_v23 = vpop.permute.xlu1 %6866 }
 0x1c0   : > { %v6864_v26 = vunpack.i.h.bf16 %v6862_v20  ;;  %v6869_v33 = vunpack.i.h.bf16 %v6867_v23  ;;  %v6868_v34 = vunpack.i.l.bf16 %v6867_v23 }
 0x1c3   : > { %v7925_v22 = vpop.permute.xlu0 %6871 }
 0x1f4   : > { %v683_v35 = vpop.f32.mrb[0].mxu0 }
 0x1f5   : > { %v685_v36 = vpop.f32.mrb[1].mxu0  ;;  %v702_v42 = vsel %vm692_vm10, %v683_v35, 0.0 }
 0x1f6   : > { %v703_v44 = vsel %vm693_vm11, %v685_v36, 0.0 }
 0x204   : > { %v959_v43 = vpop.f32.mrb[0].mxu1 }
 0x205   : > { %v966_v45 = vadd.f32 %v959_v43, %v702_v42  ;;  %v961_v46 = vpop.f32.mrb[1].mxu1 }
 0x206   : > { %v967_v48 = vadd.f32 %v961_v46, %v703_v44  ;;  %v6858_v46 = vunpack.i.l.bf16 %v6857_v19 }
 0x20b   : > { %v1230_v50 = vpop.f32.mrb[2].mxu0 }
 0x20c   : > { %v1249_v52 = vsel %vm1241_vm12, %v1230_v50, 0.0  ;;  %v1232_v53 = vpop.f32.mrb[3].mxu0  ;;  %v1439_v50 = vsel %vm1435_vm3, %v6868_v34, %v6869_v33 }
 0x20d   : > { %v1251_v54 = vadd.f32 %v1249_v52, %v966_v45  ;;  %v1250_v55 = vsel %vm1242_vm13, %v1232_v53, 0.0  ;;  %v6859_v45 = vunpack.i.h.bf16 %v6857_v19 }
 0x20e   : > { %v1252_v56 = vadd.f32 %v1250_v55, %v967_v48 }
 0x20f   : > { %v7846_v57 = vadd.f32 %v1257_v15, %v1251_v54  ;;  %v6301_v54 = vld [vmem:[%s9349_s1 + $0x60] sm:$0xff]  ;;  %v1438_v55 = vsel %vm1435_vm3, %v6859_v45, %v6868_v34 }
 0x210   : > { %v7848_v58 = vadd.f32 %v1257_v15, %v1252_v56  ;;  %v6341_v15 = vld [vmem:[%s9351_s3 + $0x68] sm:$0xff] }
 0x211   : > { %1261 = vst [vmem:[#allocation3] sm:$0xff] %v7846_v57  ;;  %v1280_v59 = vmul.f32 %v1273_v51, %v7846_v57 }
 0x212   : > { %1262 = vst [vmem:[#allocation3 + $0x8] sm:$0xff] %v7848_v58  ;;  %v1281_v61 = vmul.f32 %v1273_v51, %v7848_v58 }
 0x213   : > { %v1297_v62 = vadd.f32 %v1290_v60, %v1280_v59 }
 0x214   : > { %v1298_v63 = vadd.f32 %v1290_v60, %v1281_v61  ;;  %v6874_v61 = vunpack.i.h.bf16 %v7925_v22 }
 0x215   : > { %v1301_v0 = vmax.f32 %v1297_v62, 0.0  ;;  %v6873_v62 = vunpack.i.l.bf16 %v7925_v22 }
 0x216   : > { %v1302_v1 = vmax.f32 %v1298_v63, 0.0 }
 0x217   : > { %v6500_v6 = vpack.c.bf16 %v1303_v24, %v1301_v0  ;;  %v6895_v8 = vpack.i.bf16 %v1523_v7, %v1301_v0  ;;  %v6854_v24 = vunpack.i.h.bf16 %v6852_v21  ;;  %v1550_v7 = vsel %vm1546_vm4, %v6873_v62, %v6874_v61 }
 0x218   : > { %v6497_v4 = vpack.c.bf16 %v1304_v25, %v1302_v1  ;;  %v6890_v5 = vpack.i.bf16 %v1302_v1, %v1301_v0  ;;  %v6920_v9 = vpack.i.bf16 %v7613_v2, %v1302_v1  ;;  %v6863_v25 = vunpack.i.l.bf16 %v6862_v20 }
 0x21a   : > { %6499 = vmatprep.subr.msk.bf16.mxu0 %vm7855_vm15, %v6497_v4  ;;  %6891 = vrot.lane.b32.xlu0 %v6890_v5, %s7622_s18  ;;  %v1340_v37 = vsel %vm1337_vm2, %v6854_v24, %v6863_v25  ;;  %v1341_v40 = vsel %vm1337_vm2, %v6863_v25, %v6864_v26  ;;  %s7646_s18 = smov 103  }
 0x21b   : > { %6502 = vmatpush1.bf16.msk.msra.mxu0 %vm7855_vm15, %v6500_v6  ;;  %6876 = vrot.lane.b32.xlu1 %v6890_v5, %s7623_s21  ;;  %v6300_v6 = vld [vmem:[%s9349_s1 + $0x48] sm:$0xff] }
 0x21e   : > { %6896 = vrot.lane.b32.xlu0 %v6895_v8, %s7626_s22  ;;  %6316 = vmatmul.mubr.msk.f32.vlgmr.msra.gmra.mrb[4].mxu0 %vm1344_vm1, %v6313_v10 }
 0x21f   : > { %6881 = vrot.lane.b32.xlu1 %v6895_v8, %s7624_s20  ;;  %1821 = vmatprep.mubr.f32.mxu0 %v7613_v2 }
 0x222   : > { %6901 = vrot.lane.b32.xlu0 %v7828_v29, %s7627_s23 }
 0x223   : > { %6886 = vrot.lane.b32.xlu1 %v7834_v32, %s7626_s22 }
 0x226   : > { %6921 = vrot.lane.b32.xlu0 %v6920_v9, %s7626_s22  ;;  %s7631_s22 = smov 85  }
 0x227   : > { %6906 = vrot.lane.b32.xlu1 %v7763_v28, %s7627_s23 }
 0x22a   : > { %6926 = vrot.lane.b32.xlu0 %v7763_v28, %s7628_s24  ;;  %v6337_v28 = vld [vmem:[%s9350_s2 + $0x60] sm:$0xff] }
 0x22b   : > { %6911 = vrot.lane.b32.xlu1 %v6920_v9, %s7624_s20 }
 0x22e   : > { %6936 = vrot.lane.b32.xlu0 %v6890_v5, %s7628_s24 }
 0x22f   : > { %6916 = vrot.lane.b32.xlu1 %v7828_v29, %s7628_s24  ;;  %s7632_s24 = smov 5   ;;  %v6853_v29 = vunpack.i.l.bf16 %v6852_v21 }
 0x232   : > { %6941 = vrot.lane.b32.xlu0 %v7834_v32, %s7629_s25 }
 0x233   : > { %6931 = vrot.lane.b32.xlu1 %v6890_v5, %s7627_s23 }
 0x236   : > { %6961 = vrot.lane.b32.xlu0 %v6920_v9, %s7630_s26 }
 0x237   : > { %6946 = vrot.lane.b32.xlu1 %v6895_v8, %s7629_s25 }
 0x23a   : > { %6966 = vrot.lane.b32.xlu0 %v6895_v8, %s7630_s26 }
 0x23b   : > { %6951 = vrot.lane.b32.xlu1 %v6920_v9, %s7629_s25 }
 0x23e   : > { %2277 = vperm.xlu0 %6848, %v6337_v28  }
 0x23f   : > { %6956 = vrot.lane.b32.xlu1 %v7834_v32, %s7630_s26  ;;  %s7633_s26 = smov 53  }
 0x242   : > { %2302 = vperm.xlu0 %6848, %v6340_v11  }
 0x243   : > { %2250 = vperm.xlu1 %6849, %v6336_v12  }
 0x246   : > { %2287 = vperm.xlu0 %6848, %v6339_v13  }
 0x247   : > { %2282 = vperm.xlu1 %6849, %v6338_v14  }
 0x24a   : > { %6971 = vrot.lane.b32.xlu0 %v7613_v2, %s7631_s22 }
 0x24b   : > { %2307 = vperm.xlu1 %6849, %v6341_v15  }
 0x24e   : > { %2475 = vrot.lane.b32.xlu0 %v2339_v16, %s7631_s22 }
 0x24f   : > { %2312 = vperm.xlu1 %6849, %v6342_v17  }
 0x252   : > { %2367 = vrot.lane.b32.xlu0 %v2339_v16, %s7632_s24 }
 0x253   : > { %6976 = vrot.lane.b32.xlu1 %v7613_v2, %s7632_s24 }
 0x256   : > { %2606 = vrot.lane.b32.xlu0 %v7911_v18, %s7633_s26 }
 0x257   : > { %6986 = vrot.lane.b32.xlu1 %v7613_v2, %s7634_s27 }
 0x25a   : > { %3035 = vrot.lane.b32.xlu0 %v7911_v18, %s7635_s28 }
 0x25b   : > { %3138 = vrot.lane.b32.xlu1 %v2339_v16, %s7634_s27 }
 0x25e   : > { %6981 = vrot.lane.b32.xlu0 %v7613_v2, %s7629_s25 }
 0x262   : > { %2809 = vrot.lane.b32.xlu0 %v2339_v16, %s7629_s25 }
 0x28c   : > { %v6892_v27 = vpop.permute.xlu0 %6891 }
 0x28d   : > { %v6894_v30 = vunpack.i.h.bf16 %v6892_v27  ;;  %v6893_v31 = vunpack.i.l.bf16 %v6892_v27  ;;  %v6877_v32 = vpop.permute.xlu1 %6876 }
 0x28e   : > { %v6879_v35 = vunpack.i.h.bf16 %v6877_v32  ;;  %v6878_v36 = vunpack.i.l.bf16 %v6877_v32 }
 0x28f   : > { %v1437_v41 = vsel %vm1435_vm3, %v6893_v31, %v6894_v30  ;;  %v1436_v51 = vsel %vm1435_vm3, %v6858_v46, %v6893_v31  ;;  %vm2384_vm3 = vcmask 162816  }
 0x290   : > { %v1338_v42 = vsel %vm1337_vm2, %v6853_v29, %v6878_v36  ;;  %v1339_v43 = vsel %vm1337_vm2, %v6878_v36, %v6879_v35  ;;  %v7932_v44 = vpop.permute.xlu0 %6896  ;;  %v6485_v52 = vpack.c.bf16 %v1439_v50, %v1437_v41  ;;  %v6488_v59 = vpack.c.bf16 %v1438_v55, %v1436_v51 }
 0x291   : > { %v6482_v47 = vpack.c.bf16 %v1340_v37, %v1338_v42  ;;  %v6882_v48 = vpop.permute.xlu1 %6881  ;;  %v6479_v49 = vpack.c.bf16 %v1341_v40, %v1339_v43  ;;  %v6899_v13 = vunpack.i.h.bf16 %v7932_v44  ;;  %v6898_v14 = vunpack.i.l.bf16 %v7932_v44  ;;  %v6308_v42 = vld [vmem:[%s9349_s1 + $0x78] sm:$0xff] }
 0x292   : > { %v6884_v0 = vunpack.i.h.bf16 %v6882_v48  ;;  %v6883_v8 = vunpack.i.l.bf16 %v6882_v48  ;;  %vm2608_vm2 = vcmask 433152  }
 0x293   : > { %6481 = vmatprep.subr.msk.bf16.mxu1 %vm7855_vm15, %v6479_v49 }
 0x294   : > { %6484 = vmatpush1.bf16.msk.msra.mxu1 %vm7855_vm15, %v6482_v47  ;;  %v7940_v53 = vpop.permute.xlu0 %6901  ;;  %v1549_v15 = vsel %vm1546_vm4, %v6884_v0, %v6873_v62 }
 0x295   : > { %v6887_v56 = vpop.permute.xlu1 %6886  ;;  %6487 = vmatprep.subr.msk.bf16.mxu1 %vm7855_vm15, %v6485_v52  ;;  %v6904_v16 = vunpack.i.h.bf16 %v7940_v53  ;;  %v6903_v27 = vunpack.i.l.bf16 %v7940_v53 }
 0x296   : > { %v6889_v10 = vunpack.i.h.bf16 %v6887_v56  ;;  %v6888_v28 = vunpack.i.l.bf16 %v6887_v56 }
 0x297   : > { %6304 = vmatmul.mubr.msk.f32.vlgmr.msra.gmra.mrb[2].mxu1 %vm1344_vm1, %v6301_v54  ;;  %v1747_v49 = vsel %vm1743_vm7, %v6903_v27, %v6904_v16 }
 0x298   : > { %6490 = vmatpush1.bf16.msk.msra.mxu1 %vm7855_vm15, %v6488_v59  ;;  %v6922_v60 = vpop.permute.xlu0 %6921  ;;  %1513 = vmatprep.mubr.f32.mxu1 %v7613_v2  ;;  %v1951_v29 = vsel %vm1947_vm5, %v6888_v28, %v6889_v10  ;;  %v1950_v43 = vsel %vm1947_vm5, %v6899_v13, %v6888_v28  ;;  %v6325_v59 = vld [vmem:[%s9349_s1 + $0x70] sm:$0xff] }
 0x299   : > { %v6907_v63 = vpop.permute.xlu1 %6906  ;;  %v6924_v1 = vunpack.i.h.bf16 %v6922_v60  ;;  %v6923_v4 = vunpack.i.l.bf16 %v6922_v60 }
 0x29a   : > { %v6909_v36 = vunpack.i.h.bf16 %v6907_v63  ;;  %v6908_v46 = vunpack.i.l.bf16 %v6907_v63 }
 0x29b   : > { %v1949_v17 = vsel %vm1947_vm5, %v6923_v4, %v6924_v1  ;;  %v1948_v32 = vsel %vm1947_vm5, %v6898_v14, %v6923_v4  ;;  %vm3144_vm5 = vcmask 613376  }
 0x29c   : > { %v6927_v5 = vpop.permute.xlu0 %6926  ;;  %v6515_v35 = vpack.c.bf16 %v1951_v29, %v1949_v17  ;;  %v6518_v45 = vpack.c.bf16 %v1950_v43, %v1948_v32  ;;  %v1746_v53 = vsel %vm1743_vm7, %v6909_v36, %v6903_v27  ;;  %v6324_v17 = vld [vmem:[%s9349_s1 + $0x58] sm:$0xff] }
 0x29d   : > { %v6912_v9 = vpop.permute.xlu1 %6911  ;;  %v6929_v33 = vunpack.i.h.bf16 %v6927_v5  ;;  %v6928_v34 = vunpack.i.l.bf16 %v6927_v5  ;;  %v6312_v5 = vld [vmem:[%s9349_s1 + $0x50] sm:$0xff] }
 0x29e   : > { %v6914_v11 = vunpack.i.h.bf16 %v6912_v9  ;;  %v6913_v12 = vunpack.i.l.bf16 %v6912_v9 }
 0x29f   : > { %6307 = vmatmul.mubr.msk.f32.vlgmr.msra.gmra.mrb[2].mxu1 %vm1344_vm1, %v6300_v6 }
 0x2a0   : > { %v1547_v19 = vsel %vm1546_vm4, %v6883_v8, %v6913_v12  ;;  %v1548_v20 = vsel %vm1546_vm4, %v6913_v12, %v6914_v11  ;;  %v6937_v21 = vpop.permute.xlu0 %6936  ;;  %1624 = vmatprep.mubr.f32.mxu1 %v7613_v2  ;;  %vm3037_vm4 = vcmask 1006592  }
 0x2a1   : > { %v6494_v22 = vpack.c.bf16 %v1549_v15, %v1547_v19  ;;  %v6939_v23 = vunpack.i.h.bf16 %v6937_v21  ;;  %v6938_v24 = vunpack.i.l.bf16 %v6937_v21  ;;  %v6917_v25 = vpop.permute.xlu1 %6916  ;;  %v6491_v26 = vpack.c.bf16 %v1550_v7, %v1548_v20 }
 0x2a2   : > { %v6919_v30 = vunpack.i.h.bf16 %v6917_v25  ;;  %v6918_v31 = vunpack.i.l.bf16 %v6917_v25 }
 0x2a3   : > { %6493 = vmatprep.subr.msk.bf16.mxu1 %vm7855_vm15, %v6491_v26  ;;  %v2046_v37 = vsel %vm2044_vm6, %v6938_v24, %v6939_v23  ;;  %v2045_v50 = vsel %vm2044_vm6, %v6928_v34, %v6938_v24 }
 0x2a4   : > { %v2048_v40 = vsel %vm2044_vm6, %v6918_v31, %v6919_v30  ;;  %6496 = vmatpush1.bf16.msk.msra.mxu1 %vm7855_vm15, %v6494_v22  ;;  %v6942_v41 = vpop.permute.xlu0 %6941  ;;  %v2047_v51 = vsel %vm2044_vm6, %v6929_v33, %v6918_v31  ;;  %v6320_v30 = vld [vmem:[%s9349_s1 + $0x80] sm:$0xff]  ;;  %v6332_v33 = vld [vmem:[%s9349_s1 + $0x88] sm:$0xff]  ;;  %vm3253_vm6 = vcmask 351232  }
 0x2a5   : > { %v6932_v44 = vpop.permute.xlu1 %6931  ;;  %6517 = vmatprep.subr.msk.bf16.mxu1 %vm7855_vm15, %v6515_v35  ;;  %v6521_v52 = vpack.c.bf16 %v2048_v40, %v2046_v37  ;;  %v6524_v63 = vpack.c.bf16 %v2047_v51, %v2045_v50  ;;  %v6944_v0 = vunpack.i.h.bf16 %v6942_v41  ;;  %v6943_v1 = vunpack.i.l.bf16 %v6942_v41 }
 0x2a6   : > { %v6934_v47 = vunpack.i.h.bf16 %v6932_v44  ;;  %v6933_v48 = vunpack.i.l.bf16 %v6932_v44 }
 0x2a7   : > { %6311 = vmatmul.mubr.msk.f32.vlgmr.msra.gmra.mrb[2].mxu1 %vm1344_vm1, %v6308_v42  ;;  %v1846_v28 = vsel %vm1842_vm8, %v6943_v1, %v6944_v0 }
 0x2a8   : > { %v1744_v54 = vsel %vm1743_vm7, %v6908_v46, %v6933_v48  ;;  %v1745_v55 = vsel %vm1743_vm7, %v6933_v48, %v6934_v47  ;;  %6520 = vmatpush1.bf16.msk.msra.mxu1 %vm7855_vm15, %v6518_v45  ;;  %v6962_v56 = vpop.permute.xlu0 %6961  ;;  %2025 = vmatprep.mubr.f32.mxu1 %v7613_v2  ;;  %v1633_v46 = vadd.s32 4294967293, %v7838_v38  ;;  %v1634_v47 = vadd.s32 4294967293, %v7840_v39 }
 0x2a9   : > { %v6506_v60 = vpack.c.bf16 %v1746_v53, %v1744_v54  ;;  %v6947_v61 = vpop.permute.xlu1 %6946  ;;  %6523 = vmatprep.subr.msk.bf16.mxu1 %vm7855_vm15, %v6521_v52  ;;  %v6503_v62 = vpack.c.bf16 %v1747_v49, %v1745_v55  ;;  %v6964_v11 = vunpack.i.h.bf16 %v6962_v56  ;;  %v6963_v12 = vunpack.i.l.bf16 %v6962_v56 }
 0x2aa   : > { %v6949_v4 = vunpack.i.h.bf16 %v6947_v61  ;;  %v6948_v8 = vunpack.i.l.bf16 %v6947_v61  ;;  %vm1635_vm10 = vcmp.ge.s32.totalorder %v1633_v46, 0  ;;  %vm1636_vm11 = vcmp.ge.s32.totalorder %v1634_v47, 0  ;;  %v6386_v46 = vld [vmem:[%s9351_s3 + $0xa0] sm:$0xff]  ;;  %v6383_v47 = vld [vmem:[%s9350_s2 + $0xa8] sm:$0xf] }
 0x2ab   : > { %6505 = vmatprep.subr.msk.bf16.mxu0 %vm7855_vm15, %v6503_v62  ;;  %6328 = vmatmul.mubr.msk.f32.vlgmr.msra.gmra.mrb[4].mxu1 %vm1344_vm1, %v6325_v59  ;;  %v2145_v25 = vsel %vm2143_vm9, %v6963_v12, %v6964_v11  ;;  %v2230_v48 = vadd.s32 3, %v7838_v38  ;;  %v2231_v49 = vadd.s32 3, %v7840_v39 }
 0x2ac   : > { %6508 = vmatpush1.bf16.msk.msra.mxu0 %vm7855_vm15, %v6506_v60  ;;  %6526 = vmatpush1.bf16.msk.msra.mxu1 %vm7855_vm15, %v6524_v63  ;;  %v6967_v6 = vpop.permute.xlu0 %6966  ;;  %v1845_v13 = vsel %vm1842_vm8, %v6949_v4, %v6943_v1 }
 0x2ad   : > { %v6952_v7 = vpop.permute.xlu1 %6951  ;;  %2122 = vmatprep.mubr.f32.mxu1 %v7613_v2  ;;  %v6968_v14 = vunpack.i.l.bf16 %v6967_v6  ;;  %v6969_v22 = vunpack.i.h.bf16 %v6967_v6  ;;  %vm2234_vm12 = vcmp.lt.s32.totalorder %v2230_v48, 16  ;;  %vm2235_vm13 = vcmp.lt.s32.totalorder %v2231_v49, 16 }
 0x2ae   : > { %v6954_v9 = vunpack.i.h.bf16 %v6952_v7  ;;  %v6953_v10 = vunpack.i.l.bf16 %v6952_v7 }
 0x2af   : > { %6319 = vmatmul.mubr.msk.f32.vlgmr.msra.gmra.mrb[4].mxu0 %vm1344_vm1, %v6312_v5  ;;  %v2144_v26 = vsel %vm2143_vm9, %v6968_v14, %v6963_v12 }
 0x2b0   : > { %v1843_v15 = vsel %vm1842_vm8, %v6948_v8, %v6953_v10  ;;  %v1844_v16 = vsel %vm1842_vm8, %v6953_v10, %v6954_v9  ;;  %1920 = vmatprep.mubr.f32.mxu0 %v7613_v2 }
 0x2b1   : > { %v6512_v19 = vpack.c.bf16 %v1845_v13, %v1843_v15  ;;  %v6957_v20 = vpop.permute.xlu1 %6956  ;;  %v6509_v21 = vpack.c.bf16 %v1846_v28, %v1844_v16 }
 0x2b2   : > { %v6959_v23 = vunpack.i.h.bf16 %v6957_v20  ;;  %v6958_v24 = vunpack.i.l.bf16 %v6957_v20 }
 0x2b3   : > { %6511 = vmatprep.subr.msk.bf16.mxu0 %vm7855_vm15, %v6509_v21  ;;  %6331 = vmatmul.mubr.msk.f32.vlgmr.msra.gmra.mrb[4].mxu1 %vm1344_vm1, %v6324_v17 }
 0x2b4   : > { %v2146_v27 = vsel %vm2143_vm9, %v6969_v22, %v6958_v24  ;;  %v2147_v29 = vsel %vm2143_vm9, %v6958_v24, %v6959_v23  ;;  %6514 = vmatpush1.bf16.msk.msra.mxu0 %vm7855_vm15, %v6512_v19  ;;  %2221 = vmatprep.mubr.f32.mxu1 %v7613_v2 }
 0x2b5   : > { %v6530_v31 = vpack.c.bf16 %v2146_v27, %v2144_v26  ;;  %v6527_v32 = vpack.c.bf16 %v2147_v29, %v2145_v25 }
 0x2b7   : > { %6323 = vmatmul.mubr.msk.f32.vlgmr.msra.gmra.mrb[4].mxu0 %vm1344_vm1, %v6320_v30  ;;  %6529 = vmatprep.subr.msk.bf16.mxu1 %vm7855_vm15, %v6527_v32 }
 0x2b8   : > { %6532 = vmatpush1.bf16.msk.msra.mxu1 %vm7855_vm15, %v6530_v31  ;;  %2563 = vmatprep.mubr.f32.mxu0 %v7613_v2 }
 0x2bb   : > { %6335 = vmatmul.mubr.msk.f32.vlgmr.msra.gmra.mrb[4].mxu1 %vm1344_vm1, %v6332_v33  ;;  %v8103_v33 = vld [vmem:[#allocation2 + $0x8] sm:$0xff]  ;;  %vm2481_vm1 = vcmask 695296  }
 0x2bc   : > { %2456 = vmatprep.mubr.f32.mxu1 %v7613_v2 }
 0x2bd   : > { %v2278_v34 = vpop.permute.xlu0 %2277 }
 0x2be   : > { %v2290_v35 = vmul.f32 %v2278_v34, %v7846_v57  ;;  %v2291_v36 = vmul.f32 %v2278_v34, %v7848_v58 }
 0x2c1   : > { %v2303_v37 = vpop.permute.xlu0 %2302 }
 0x2c2   : > { %v2315_v40 = vadd.f32 %v2303_v37, %v2290_v35  ;;  %v2316_v41 = vadd.f32 %v2303_v37, %v2291_v36  ;;  %v2251_v56 = vpop.permute.xlu1 %2250  ;;  %v6380_v36 = vld [vmem:[%s9350_s2 + $0x90] sm:$0xff] }
 0x2c3   : > { %v6379_v37 = vld [vmem:[%s9352_s4 + $0x10] sm:$0xff] }
 0x2c4   : > { %v8043_v42 = vmax.f32 %v2315_v40, 0.0  ;;  %v8045_v43 = vmax.f32 %v2316_v41, 0.0  ;;  %v6384_v40 = vld [vmem:[%s9351_s3 + $0x90] sm:$0xff] }
 0x2c5   : > { %v2288_v9 = vpop.permute.xlu0 %2287 }
 0x2c6   : > { %v6990_v44 = vpack.i.bf16 %v8045_v43, %v8043_v42  ;;  %v8053_v45 = vpack.i.bf16 %v7613_v2, %v8045_v43  ;;  %v2283_v4 = vpop.permute.xlu1 %2282 }
 0x2c8   : > { %6991 = vrot.lane.b32.xlu0 %v6990_v44, %s7631_s22  ;;  %6996 = vrot.lane.b32.xlu1 %v6990_v44, %s7632_s24 }
 0x2ca   : > { %v2308_v8 = vpop.permute.xlu1 %2307 }
 0x2cc   : > { %7001 = vrot.lane.b32.xlu1 %v8053_v45, %s7633_s26 }
 0x2ce   : > { %v2313_v12 = vpop.permute.xlu1 %2312 }
 0x2d0   : > { %7006 = vrot.lane.b32.xlu1 %v8053_v45, %s7635_s28 }
 0x2d2   : > { %v6977_v41 = vpop.permute.xlu1 %6976 }
 0x2d4   : > { %7011 = vrot.lane.b32.xlu1 %v6990_v44, %s7629_s25 }
 0x2d8   : > { %7016 = vrot.lane.b32.xlu1 %v6990_v44, %s7634_s27  ;;  %v6381_v44 = vld [vmem:[%s9350_s2 + $0x98] sm:$0xff] }
 0x2dc   : > { %7021 = vrot.lane.b32.xlu1 %v8053_v45, %s7627_s23 }
 0x37a   : > { %v1626_v57 = vpop.f32.mrb[2].mxu1 }
 0x37b   : > { %v1628_v58 = vpop.f32.mrb[3].mxu1  ;;  %v1645_v50 = vsel %vm1635_vm10, %v1626_v57, 0.0  ;;  %v8140_v57 = vpop.permute.xlu1 %6986 }
 0x37c   : > { %v1646_v52 = vsel %vm1636_vm11, %v1628_v58, 0.0  ;;  %v6385_v58 = vld [vmem:[%s9351_s3 + $0x98] sm:$0xff] }
 0x37f   : > { %v8153_v49 = vpop.permute.xlu1 %3138 }
 0x38a   : > { %v1922_v51 = vpop.f32.mrb[4].mxu0 }
 0x38b   : > { %v1929_v53 = vadd.f32 %v1922_v51, %v1645_v50  ;;  %v1924_v54 = vpop.f32.mrb[5].mxu0  ;;  %v6387_v50 = vld [vmem:[%s9351_s3 + $0xa8] sm:$0xf]  ;;  %v3478_v51 = vld [vmem:[#allocation2 + $0x98] sm:$0xf] }
 0x38c   : > { %v1930_v55 = vadd.f32 %v1924_v54, %v1646_v52  ;;  %v8161_v54 = vpack.i.bf16 %v3478_v51, %v8103_v33 }
 0x38e   : > { %v2223_v59 = vpop.f32.mrb[4].mxu1 }
 0x38f   : > { %v2242_v60 = vsel %vm2234_vm12, %v2223_v59, 0.0  ;;  %v2225_v61 = vpop.f32.mrb[5].mxu1  ;;  %vm3999_vm12 = vcmask 916480  }
 0x390   : > { %v2244_v62 = vadd.f32 %v2242_v60, %v1929_v53  ;;  %v2243_v63 = vsel %vm2235_vm13, %v2225_v61, 0.0  ;;  %v6997_v53 = vpop.permute.xlu1 %6996  ;;  %vm3536_vm13 = vcmask 228352  }
 0x391   : > { %v2245_v0 = vadd.f32 %v2243_v63, %v1930_v55 }
 0x392   : > { %v2253_v1 = vadd.f32 %v2251_v56, %v2244_v62 }
 0x393   : > { %v2254_v5 = vadd.f32 %v2251_v56, %v2245_v0 }
 0x394   : > { %v2257_v6 = vrot.slane %v2253_v1, 4  ;;  %v8167_v56 = vpop.permute.xlu1 %7001 }
 0x395   : > { %v2258_v7 = vrot.slane %v2254_v5, 4 }
 0x396   : > { %2261 = vst [vmem:[#allocation3 + $0x20] ss:$-12 sps:$4 sm:$0xff] %v2257_v6  }
 0x397   : > { %2262 = vst [vmem:[#allocation3 + $0x28] ss:$-12 sps:$4 sm:$0xff] %v2258_v7  }
 0x398   : > { %v8173_v60 = vpop.permute.xlu1 %7006 }
 0x39c   : > { %v8177_v62 = vpop.permute.xlu1 %7011 }
 0x39d   : > { %v2269_v10 = vld [vmem:[#allocation3 + $0x20] sm:$0xf]  ;;  %v8067_v13 = vld [vmem:[#allocation3 + $0x10] sm:$0xff] }
 0x39e   : > { %v2294_v28 = vmul.f32 %v2288_v9, %v2269_v10  ;;  %v2270_v11 = vld [vmem:[#allocation3 + $0x28] sm:$0xf]  ;;  %v2292_v17 = vmul.f32 %v2283_v4, %v8067_v13  ;;  %v8082_v23 = vld [vmem:[#allocation3 + $0x18] sm:$0xff] }
 0x39f   : > { %v2295_v14 = vmul.f32 %v2288_v9, %v2270_v11  ;;  %v2293_v25 = vmul.f32 %v2283_v4, %v8082_v23 }
 0x3a0   : > { %v8069_v15 = vadd.f32 %v2313_v12, %v2294_v28  ;;  %v2317_v21 = vadd.f32 %v2308_v8, %v2292_v17  ;;  %v8181_v0 = vpop.permute.xlu1 %7016  ;;  %v6998_v17 = vunpack.i.l.bf16 %v6997_v53 }
 0x3a1   : > { %v8071_v16 = vadd.f32 %v2313_v12, %v2295_v14  ;;  %v2318_v27 = vadd.f32 %v2308_v8, %v2293_v25  ;;  %v6978_v12 = vunpack.i.l.bf16 %v6977_v41  ;;  %v6999_v14 = vunpack.i.h.bf16 %v6997_v53 }
 0x3a2   : > { %v2325_v19 = vmax.f32 %v8069_v15, 0.0  ;;  %v8080_v22 = vmax.f32 %v2317_v21, 0.0  ;;  %v6979_v25 = vunpack.i.h.bf16 %v6977_v41  ;;  %v7004_v53 = vunpack.i.h.bf16 %v8167_v56 }
 0x3a3   : > { %v2326_v20 = vmax.f32 %v8071_v16, 0.0  ;;  %v8093_v30 = vmax.f32 %v2318_v27, 0.0  ;;  %v6989_v15 = vunpack.i.h.bf16 %v8140_v57 }
 0x3a4   : > { %2331 = vst [vmem:[#allocation2 + $0x70] sm:$0xf] %v2325_v19  ;;  %v7030_v26 = vpack.i.bf16 %v8080_v22, %v8043_v42  ;;  %v8183_v4 = vpop.permute.xlu1 %7021 }
 0x3a5   : > { %2332 = vst [vmem:[#allocation2 + $0x78] sm:$0xf] %v2326_v20  ;;  %v7050_v31 = vpack.i.bf16 %v8093_v30, %v8080_v22  ;;  %v7055_v34 = vpack.i.bf16 %v8103_v33, %v8093_v30 }
 0x3ab   : > { %v2340_v24 = vld [vmem:[#allocation2 + $0x70] sm:$0xf] }
 0x3ac   : > { %2369 = vrot.lane.b32.xlu0 %v2340_v24, %s7632_s24  ;;  %2477 = vrot.lane.b32.xlu1 %v2340_v24, %s7631_s22  ;;  %v2576_v29 = vld [vmem:[#allocation2 + $0x70] sm:$0xf]  ;;  %v2341_v32 = vld [vmem:[#allocation2 + $0x78] sm:$0xf] }
 0x3ad   : > { %v2577_v35 = vld [vmem:[#allocation2 + $0x78] sm:$0xf] }
 0x3b0   : > { %7031 = vrot.lane.b32.xlu0 %v7030_v26, %s7635_s28  ;;  %7026 = vrot.lane.b32.xlu1 %v7030_v26, %s7633_s26 }
 0x3b4   : > { %2811 = vrot.lane.b32.xlu0 %v2340_v24, %s7629_s25  ;;  %2602 = vrot.lane.b32.xlu1 %v2576_v29, %s7633_s26 }
 0x3b8   : > { %7036 = vrot.lane.b32.xlu0 %v7030_v26, %s7627_s23  ;;  %3031 = vrot.lane.b32.xlu1 %v2576_v29, %s7635_s28 }
 0x3bc   : > { %3140 = vrot.lane.b32.xlu1 %v2340_v24, %s7634_s27  ;;  %7051 = vrot.lane.b32.xlu0 %v7050_v31, %s7632_s24 }
 0x3c0   : > { %2479 = vrot.lane.b32.xlu0 %v2341_v32, %s7631_s22  ;;  %7041 = vrot.lane.b32.xlu1 %v7050_v31, %s7631_s22  ;;  %s7638_s22 = smov 119  }
 0x3c4   : > { %7056 = vrot.lane.b32.xlu0 %v7055_v34, %s7633_s26  ;;  %7046 = vrot.lane.b32.xlu1 %v8053_v45, %s7636_s14  ;;  %v8138_v45 = vpop.permute.xlu0 %6971 }
 0x3c5   : > { %v6974_v41 = vunpack.i.h.bf16 %v8138_v45 }
 0x3c8   : > { %7061 = vrot.lane.b32.xlu0 %v7055_v34, %s7635_s28  ;;  %2371 = vrot.lane.b32.xlu1 %v2341_v32, %s7632_s24  ;;  %v8151_v48 = vpop.permute.xlu0 %2475 }
 0x3cc   : > { %7071 = vrot.lane.b32.xlu0 %v7050_v31, %s7629_s25  ;;  %2604 = vrot.lane.b32.xlu1 %v2577_v35, %s7633_s26  ;;  %v8158_v52 = vpop.permute.xlu0 %2367  ;;  %s7639_s26 = smov 105  }
 0x3d0   : > { %7076 = vrot.lane.b32.xlu0 %v7050_v31, %s7634_s27  ;;  %3033 = vrot.lane.b32.xlu1 %v2577_v35, %s7635_s28  ;;  %v8165_v55 = vpop.permute.xlu0 %2606  ;;  %s7642_s28 = smov 112  }
 0x3d4   : > { %2917 = vrot.lane.b32.xlu0 %v2576_v29, %s7627_s23  ;;  %7066 = vrot.lane.b32.xlu1 %v7030_v26, %s7636_s14  ;;  %v8171_v59 = vpop.permute.xlu0 %3035 }
 0x3d8   : > { %3142 = vrot.lane.b32.xlu0 %v2341_v32, %s7634_s27  ;;  %2813 = vrot.lane.b32.xlu1 %v2341_v32, %s7629_s25  ;;  %v8175_v61 = vpop.permute.xlu0 %6981  ;;  %s7640_s27 = smov 23   ;;  %s7641_s25 = smov 121  }
 0x3dc   : > { %7081 = vrot.lane.b32.xlu0 %v7055_v34, %s7627_s23  ;;  %2921 = vrot.lane.b32.xlu1 %v7911_v18, %s7627_s23  ;;  %v8179_v63 = vpop.permute.xlu0 %2809 }
 0x3e0   : > { %7086 = vrot.lane.b32.xlu0 %v7055_v34, %s7636_s14  ;;  %3249 = vrot.lane.b32.xlu1 %v2577_v35, %s7636_s14  ;;  %v6992_v1 = vpop.permute.xlu0 %6991  ;;  %v2374_v34 = vsel %vm2373_vm14, %v6978_v12, %v6998_v17 }
 0x3e1   : > { %v6994_v31 = vunpack.i.h.bf16 %v6992_v1  ;;  %v6993_v32 = vunpack.i.l.bf16 %v6992_v1  ;;  %v7003_v1 = vunpack.i.l.bf16 %v8167_v56 }
 0x3e3   : > { %v2483_v51 = vsel %vm2481_vm1, %v6993_v32, %v6994_v31 }
 0x3e4   : > { %2919 = vrot.lane.b32.xlu0 %v2577_v35, %s7627_s23  ;;  %3247 = vrot.lane.b32.xlu1 %v2576_v29, %s7636_s14  ;;  %v6973_v29 = vunpack.i.l.bf16 %v8138_v45  ;;  %s7643_s23 = smov 16  }
 0x3e8   : > { %3251 = vrot.lane.b32.xlu0 %v7911_v18, %s7636_s14  ;;  %3394 = vperm.xlu1 %6849, %v6380_v36   ;;  %v6382_v18 = vld [vmem:[%s9350_s2 + $0xa0] sm:$0xff]  ;;  %s7637_s14 = smov 7   ;;  %v2375_v36 = vsel %vm2373_vm14, %v6998_v17, %v6999_v14 }
 0x3ec   : > { %3364 = vperm.xlu0 %6848, %v6379_v37   ;;  %3427 = vperm.xlu1 %6849, %v6384_v40  }
 0x3f0   : > { %3399 = vperm.xlu0 %6848, %v6381_v44   ;;  %3404 = vperm.xlu1 %6849, %v6382_v18  }
 0x3f4   : > { %3432 = vperm.xlu0 %6848, %v6385_v58   ;;  %3437 = vperm.xlu1 %6849, %v6386_v46  }
 0x3f8   : > { %3409 = vperm.xlu0 %6848, %v6383_v47  }
 0x3fc   : > { %3442 = vperm.xlu0 %6848, %v6387_v50   ;;  %v2482_v50 = vsel %vm2481_vm1, %v6973_v29, %v6993_v32  ;;  %v6983_v29 = vunpack.i.l.bf16 %v8175_v61 }
 0x400   : > { %7101 = vrot.lane.b32.xlu0 %v8161_v54, %s7637_s14 }
 0x404   : > { %7116 = vrot.lane.b32.xlu0 %v8161_v54, %s7638_s22 }
 0x41e   : > { %v8185_v5 = vpop.permute.xlu0 %2369  ;;  %v8187_v6 = vpop.permute.xlu1 %2477 }
 0x422   : > { %v8189_v7 = vpop.permute.xlu0 %7031  ;;  %v8191_v8 = vpop.permute.xlu1 %7026 }
 0x423   : > { %v7029_v31 = vunpack.i.h.bf16 %v8191_v8  ;;  %v7028_v56 = vunpack.i.l.bf16 %v8191_v8 }
 0x426   : > { %v8193_v9 = vpop.permute.xlu0 %2811  ;;  %v8195_v10 = vpop.permute.xlu1 %2602 }
 0x42a   : > { %v8197_v28 = vpop.permute.xlu0 %7036  ;;  %v8199_v11 = vpop.permute.xlu1 %3031 }
 0x42e   : > { %v8201_v21 = vpop.permute.xlu1 %3140  ;;  %v7052_v24 = vpop.permute.xlu0 %7051 }
 0x42f   : > { %v7054_v26 = vunpack.i.h.bf16 %v7052_v24  ;;  %v7053_v27 = vunpack.i.l.bf16 %v7052_v24 }
 0x431   : > { %v2376_v35 = vsel %vm2373_vm14, %v6979_v25, %v7053_v27  ;;  %v2377_v37 = vsel %vm2373_vm14, %v7053_v27, %v7054_v26 }
 0x432   : > { %v2480_v40 = vpop.permute.xlu0 %2479  ;;  %v7042_v44 = vpop.permute.xlu1 %7041  ;;  %v6533_v18 = vpack.c.bf16 %v2377_v37, %v2375_v36  ;;  %v6535_v58 = vpack.c.bf16 %v2376_v35, %v2374_v34  ;;  %v2610_v34 = vsel %vm2608_vm2, %v7003_v1, %v7004_v53  ;;  %v7009_v35 = vunpack.i.h.bf16 %v8173_v60  ;;  %v6344_v53 = vld [vmem:[%s9349_s1 + $0xa8] sm:$0xff] }
 0x433   : > { %v7044_v46 = vunpack.i.h.bf16 %v7042_v44  ;;  %v7043_v47 = vunpack.i.l.bf16 %v7042_v44  ;;  %v2487_v32 = vsel %vm2481_vm1, %v8187_v6, %v2480_v40  ;;  %v7008_v36 = vunpack.i.l.bf16 %v8173_v60 }
 0x434   : > { %6534 = vmatprep.subr.bf16.mxu1 %v6533_v18  ;;  %v7013_v60 = vunpack.i.l.bf16 %v8177_v62 }
 0x435   : > { %v2484_v12 = vsel %vm2481_vm1, %v6974_v41, %v7043_v47  ;;  %6536 = vmatpush1.bf16.msra.mxu1 %v6535_v58  ;;  %v2485_v14 = vsel %vm2481_vm1, %v7043_v47, %v7044_v46  ;;  %v6343_v46 = vld [vmem:[%s9349_s1 + $0x90] sm:$0xff]  ;;  %v2378_v47 = vsel %vm2373_vm14, %v8158_v52, %v8185_v5 }
 0x436   : > { %v7057_v17 = vpop.permute.xlu0 %7056  ;;  %v8215_v24 = vpop.permute.xlu1 %7046  ;;  %v6537_v45 = vpack.c.bf16 %v2485_v14, %v2483_v51  ;;  %v6539_v25 = vpack.c.bf16 %v2484_v12, %v2482_v50  ;;  %v2486_v50 = vsel %vm2481_vm1, %v8151_v48, %v8187_v6  ;;  %v6545_v51 = vpack.c.bf16 %v8093_v30, %v8045_v43 }
 0x437   : > { %v7059_v26 = vunpack.i.h.bf16 %v7057_v17  ;;  %v7058_v27 = vunpack.i.l.bf16 %v7057_v17  ;;  %v7014_v12 = vunpack.i.h.bf16 %v8177_v62  ;;  %v2609_v14 = vsel %vm2608_vm2, %v7028_v56, %v7003_v1 }
 0x438   : > { %6538 = vmatprep.subr.bf16.mxu0 %v6537_v45  ;;  %v6984_v48 = vunpack.i.h.bf16 %v8175_v61  ;;  %v6547_v30 = vpack.c.bf16 %v8080_v22, %v8043_v42  ;;  %v2815_v61 = vsel %vm1842_vm8, %v6983_v29, %v7013_v60  ;;  %v3039_v42 = vsel %vm3037_vm4, %v7008_v36, %v7009_v35 }
 0x439   : > { %6540 = vmatpush1.bf16.msra.mxu0 %v6539_v25  ;;  %v2612_v18 = vsel %vm2608_vm2, %v7058_v27, %v7059_v26  ;;  %v2611_v58 = vsel %vm2608_vm2, %v7029_v31, %v7058_v27  ;;  %v7034_v25 = vunpack.i.h.bf16 %v8189_v7  ;;  %v7033_v26 = vunpack.i.l.bf16 %v8189_v7 }
 0x43a   : > { %v7062_v37 = vpop.permute.xlu0 %7061  ;;  %v2372_v44 = vpop.permute.xlu1 %2371  ;;  %6348 = vmatprep.subr.msk.mxu0 %vm430_vm0, %v2487_v32  ;;  %v6541_v52 = vpack.c.bf16 %v2612_v18, %v2610_v34  ;;  %v6543_v43 = vpack.c.bf16 %v2611_v58, %v2609_v14  ;;  %v7018_v58 = vunpack.i.l.bf16 %v8181_v0  ;;  %v7023_v14 = vunpack.i.l.bf16 %v8183_v4 }
 0x43b   : > { %v7064_v8 = vunpack.i.h.bf16 %v7062_v37  ;;  %v7063_v41 = vunpack.i.l.bf16 %v7062_v37  ;;  %v2379_v40 = vsel %vm2373_vm14, %v8185_v5, %v2372_v44  ;;  %v6351_v44 = vld [vmem:[%s9349_s1 + $0xc0] sm:$0xff]  ;;  %v3038_v18 = vsel %vm3037_vm4, %v7033_v26, %v7008_v36 }
 0x43c   : > { %6345 = vmatprep.subr.msk.mxu1 %vm430_vm0, %v2379_v40  ;;  %vm3639_vm14 = vcmask 973824   ;;  %vm4360_vm1 = vcmask 859136  }
 0x43d   : > { %6346 = vmatpush1.msk.msra.mxu1 %vm430_vm0, %v2378_v47  ;;  %6349 = vmatpush1.msk.msra.mxu0 %vm430_vm0, %v2486_v50  ;;  %v3041_v45 = vsel %vm3037_vm4, %v7063_v41, %v7064_v8  ;;  %v3040_v29 = vsel %vm3037_vm4, %v7034_v25, %v7063_v41 }
 0x43e   : > { %v7072_v5 = vpop.permute.xlu0 %7071  ;;  %6546 = vmatprep.subr.bf16.mxu1 %v6545_v51  ;;  %v2605_v6 = vpop.permute.xlu1 %2604  ;;  %6350 = vmatmul.mubr.msk.f32.vlgmr.msra.gmra.mrb[6].mxu0 %vm2384_vm3, %v6343_v46  ;;  %v6557_v32 = vpack.c.bf16 %v3041_v45, %v3039_v42  ;;  %v6559_v8 = vpack.c.bf16 %v3040_v29, %v3038_v18  ;;  %v7049_v45 = vunpack.i.h.bf16 %v8215_v24  ;;  %v6363_v18 = vld [vmem:[%s9349_s1 + $0xc8] sm:$0xff] }
 0x43f   : > { %v7074_v62 = vunpack.i.h.bf16 %v7072_v5  ;;  %v7073_v17 = vunpack.i.l.bf16 %v7072_v5  ;;  %6542 = vmatprep.subr.bf16.mxu0 %v6541_v52  ;;  %6347 = vmatmul.mubr.msk.f32.vlgmr.msra.gmra.mrb[6].mxu1 %vm2384_vm3, %v6344_v53  ;;  %v2614_v1 = vsel %vm2608_vm2, %v2605_v6, %v8165_v55  ;;  %v2816_v55 = vsel %vm1842_vm8, %v7013_v60, %v7014_v12 }
 0x440   : > { %6544 = vmatpush1.bf16.msra.mxu0 %v6543_v43  ;;  %6548 = vmatpush1.bf16.msra.mxu1 %v6547_v30  ;;  %v2613_v34 = vsel %vm2608_vm2, %v8195_v10, %v2605_v6  ;;  %v7019_v10 = vunpack.i.h.bf16 %v8181_v0  ;;  %v7024_v12 = vunpack.i.h.bf16 %v8183_v4  ;;  %v7038_v5 = vunpack.i.l.bf16 %v8197_v28 }
 0x441   : > { %v2817_v22 = vsel %vm1842_vm8, %v6984_v48, %v7073_v17  ;;  %6352 = vmatprep.subr.msk.mxu0 %vm430_vm0, %v2614_v1  ;;  %6357 = vmatprep.subr.msk.mxu1 %vm430_vm0, %v2326_v20  ;;  %v2818_v27 = vsel %vm1842_vm8, %v7073_v17, %v7074_v62  ;;  %v6356_v20 = vld [vmem:[%s9349_s1 + $0xb0] sm:$0xff]  ;;  %v2819_v48 = vsel %vm1842_vm8, %v8179_v63, %v8193_v9  ;;  %v7039_v63 = vunpack.i.h.bf16 %v8197_v28 }
 0x442   : > { %v7077_v31 = vpop.permute.xlu0 %7076  ;;  %v3034_v7 = vpop.permute.xlu1 %3033  ;;  %2790 = vmatprep.mubr.f32.mxu1 %v8103_v33  ;;  %v6549_v56 = vpack.c.bf16 %v2818_v27, %v2816_v55  ;;  %2690 = vmatprep.mubr.f32.mxu0 %v8103_v33  ;;  %v6551_v37 = vpack.c.bf16 %v2817_v22, %v2815_v61  ;;  %v3146_v60 = vsel %vm3144_vm5, %v7018_v58, %v7019_v10  ;;  %v7048_v61 = vunpack.i.l.bf16 %v8215_v24  ;;  %v6367_v24 = vld [vmem:[%s9349_s1 + $0xa0] sm:$0xff] }
 0x443   : > { %v7079_v16 = vunpack.i.h.bf16 %v7077_v31  ;;  %v7078_v35 = vunpack.i.l.bf16 %v7077_v31  ;;  %v3043_v0 = vsel %vm3037_vm4, %v3034_v7, %v8171_v59  ;;  %v6368_v59 = vld [vmem:[%s9349_s1 + $0xb8] sm:$0xff]  ;;  %v2924_v17 = vsel %vm1743_vm7, %v7023_v14, %v7024_v12 }
 0x444   : > { %6353 = vmatpush1.msk.msra.mxu0 %vm430_vm0, %v2613_v34  ;;  %6358 = vmatpush1.msk.msra.mxu1 %vm430_vm0, %v2325_v19  ;;  %v6988_v19 = vunpack.i.l.bf16 %v8140_v57  ;;  %v3042_v57 = vsel %vm3037_vm4, %v8199_v11, %v3034_v7  ;;  %v6355_v11 = vld [vmem:[%s9349_s1 + $0x98] sm:$0xff]  ;;  %v2923_v1 = vsel %vm1743_vm7, %v7038_v5, %v7023_v14  ;;  %v3149_v28 = vsel %vm3144_vm5, %v8153_v49, %v8201_v21 }
 0x445   : > { %6550 = vmatprep.subr.bf16.mxu1 %v6549_v56  ;;  %6558 = vmatprep.subr.bf16.mxu0 %v6557_v32  ;;  %v3148_v36 = vsel %vm3144_vm5, %v7078_v35, %v7079_v16  ;;  %v3147_v46 = vsel %vm3144_vm5, %v6989_v15, %v7078_v35  ;;  %vm3782_vm2 = vcmask 187392   ;;  %vm4118_vm4 = vcmask 130048  }
 0x446   : > { %6359 = vmatmul.mubr.msk.f32.vlgmr.msra.gmra.mrb[8].mxu1 %vm2384_vm3, %v6356_v20  ;;  %v8288_v41 = vpop.permute.xlu0 %2917  ;;  %v8290_v40 = vpop.permute.xlu1 %7066  ;;  %6354 = vmatmul.mubr.msk.f32.vlgmr.msra.gmra.mrb[6].mxu0 %vm2384_vm3, %v6351_v44  ;;  %v6561_v51 = vpack.c.bf16 %v3148_v36, %v3146_v60  ;;  %v3145_v53 = vsel %vm3144_vm5, %v6988_v19, %v7018_v58  ;;  %v3379_v19 = vld [vmem:[#allocation3] sm:$0xff] }
 0x447   : > { %6552 = vmatpush1.bf16.msra.mxu1 %v6551_v37  ;;  %6560 = vmatpush1.bf16.msra.mxu0 %v6559_v8  ;;  %v6563_v4 = vpack.c.bf16 %v3147_v46, %v3145_v53  ;;  %v7068_v25 = vunpack.i.l.bf16 %v8290_v40  ;;  %v7069_v29 = vunpack.i.h.bf16 %v8290_v40 }
 0x448   : > { %6369 = vmatprep.subr.msk.mxu0 %vm430_vm0, %v3043_v0  ;;  %3119 = vmatprep.mubr.f32.mxu0 %v8103_v33  ;;  %v3380_v0 = vld [vmem:[#allocation3 + $0x8] sm:$0xff] }
 0x449   : > { %2896 = vmatprep.mubr.f32.mxu1 %v8103_v33  ;;  %v3254_v56 = vsel %vm3253_vm6, %v7068_v25, %v7048_v61 }
 0x44a   : > { %v3143_v47 = vpop.permute.xlu0 %3142  ;;  %v2814_v50 = vpop.permute.xlu1 %2813 }
 0x44b   : > { %v2820_v52 = vsel %vm1842_vm8, %v8193_v9, %v2814_v50  ;;  %6370 = vmatpush1.msk.msra.mxu0 %vm430_vm0, %v3042_v57  ;;  %v3150_v6 = vsel %vm3144_vm5, %v8201_v21, %v3143_v47  ;;  %v3255_v21 = vsel %vm3253_vm6, %v7048_v61, %v7049_v45  ;;  %vm4479_vm5 = vcmask 72704  }
 0x44c   : > { %6562 = vmatprep.subr.bf16.mxu0 %v6561_v51  ;;  %6360 = vmatprep.subr.msk.mxu1 %vm430_vm0, %v2820_v52 }
 0x44d   : > { %6371 = vmatmul.mubr.msk.f32.vlgmr.msra.gmra.mrb[8].mxu0 %vm2384_vm3, %v6368_v59  ;;  %6361 = vmatpush1.msk.msra.mxu1 %vm430_vm0, %v2819_v48 }
 0x44e   : > { %6564 = vmatpush1.bf16.msra.mxu0 %v6563_v4  ;;  %v7082_v43 = vpop.permute.xlu0 %7081  ;;  %v2922_v30 = vpop.permute.xlu1 %2921  ;;  %6362 = vmatmul.mubr.msk.f32.vlgmr.msra.gmra.mrb[8].mxu1 %vm2384_vm3, %v6355_v11 }
 0x44f   : > { %6372 = vmatprep.subr.msk.mxu0 %vm430_vm0, %v3150_v6  ;;  %v7084_v9 = vunpack.i.h.bf16 %v7082_v43  ;;  %v7083_v62 = vunpack.i.l.bf16 %v7082_v43  ;;  %3226 = vmatprep.mubr.f32.mxu0 %v8103_v33 }
 0x450   : > { %3004 = vmatprep.mubr.f32.mxu1 %v8103_v33 }
 0x451   : > { %v2925_v26 = vsel %vm1743_vm7, %v7039_v63, %v7083_v62  ;;  %v2926_v42 = vsel %vm1743_vm7, %v7083_v62, %v7084_v9 }
 0x452   : > { %6373 = vmatpush1.msk.msra.mxu0 %vm430_vm0, %v3149_v28  ;;  %v7087_v22 = vpop.permute.xlu0 %7086  ;;  %v6553_v55 = vpack.c.bf16 %v2926_v42, %v2924_v17  ;;  %v6555_v27 = vpack.c.bf16 %v2925_v26, %v2923_v1  ;;  %v3250_v49 = vpop.permute.xlu1 %3249 }
 0x453   : > { %v7089_v31 = vunpack.i.h.bf16 %v7087_v22  ;;  %v7088_v7 = vunpack.i.l.bf16 %v7087_v22 }
 0x454   : > { %6554 = vmatprep.subr.bf16.mxu1 %v6553_v55 }
 0x455   : > { %v3256_v32 = vsel %vm3253_vm6, %v7069_v29, %v7088_v7  ;;  %6556 = vmatpush1.bf16.msra.mxu1 %v6555_v27  ;;  %6374 = vmatmul.mubr.msk.f32.vlgmr.msra.gmra.mrb[8].mxu0 %vm2384_vm3, %v6367_v24  ;;  %v3257_v34 = vsel %vm3253_vm6, %v7088_v7, %v7089_v31 }
 0x456   : > { %v2920_v16 = vpop.permute.xlu0 %2919  ;;  %v6565_v35 = vpack.c.bf16 %v3257_v34, %v3255_v21  ;;  %v6567_v20 = vpack.c.bf16 %v3256_v32, %v3254_v56  ;;  %3335 = vmatprep.mubr.f32.mxu0 %v8103_v33  ;;  %v3248_v10 = vpop.permute.xlu1 %3247 }
 0x457   : > { %v2927_v37 = vsel %vm1743_vm7, %v8288_v41, %v2920_v16  ;;  %v2928_v44 = vsel %vm1743_vm7, %v2920_v16, %v2922_v30  ;;  %v6375_v41 = vld [vmem:[%s9349_s1 + $0xd0] sm:$0xff]  ;;  %v3258_v40 = vsel %vm3253_vm6, %v3248_v10, %v3250_v49  ;;  %vm3521_vm7 = vcmask 56320  }
 0x458   : > { %6364 = vmatprep.subr.msk.mxu1 %vm430_vm0, %v2928_v44  ;;  %6566 = vmatprep.subr.bf16.mxu0 %v6565_v35 }
 0x459   : > { %6365 = vmatpush1.msk.msra.mxu1 %vm430_vm0, %v2927_v37  ;;  %6568 = vmatpush1.bf16.msra.mxu0 %v6567_v20 }
 0x45a   : > { %v3252_v58 = vpop.permute.xlu0 %3251  ;;  %6366 = vmatmul.mubr.msk.f32.vlgmr.msra.gmra.mrb[8].mxu1 %vm2384_vm3, %v6363_v18 }
 0x45b   : > { %v3259_v8 = vsel %vm3253_vm6, %v3250_v49, %v3252_v58  ;;  %3608 = vmatprep.mubr.f32.mxu1 %v8103_v33  ;;  %vm4922_vm6 = vcmask 203776  }
 0x45c   : > { %6376 = vmatprep.subr.msk.mxu0 %vm430_vm0, %v3259_v8  ;;  %v2699_v8 = vadd.s32 4294967291, %v7838_v38 }
 0x45d   : > { %6377 = vmatpush1.msk.msra.mxu0 %vm430_vm0, %v3258_v40 }
 0x45e   : > { %6378 = vmatmul.mubr.msk.f32.vlgmr.msra.gmra.mrb[8].mxu0 %vm2384_vm3, %v6375_v41  ;;  %v2700_v41 = vadd.s32 4294967291, %v7840_v39  ;;  %vm2701_vm8 = vcmp.ge.s32.totalorder %v2699_v8, 0  ;;  %vm4243_vm3 = vcmask 990208  }
 0x45f   : > { %3968 = vmatprep.mubr.f32.mxu0 %v8103_v33 }
 0x460   : > { %vm2702_vm9 = vcmp.ge.s32.totalorder %v2700_v41, 0 }
 0x467   : > { %v3395_v15 = vpop.permute.xlu1 %3394 }
 0x468   : > { %v3412_v36 = vmul.f32 %v3395_v15, %v3379_v19  ;;  %v3413_v46 = vmul.f32 %v3395_v15, %v3380_v0  ;;  %v3344_v15 = vadd.s32 5, %v7838_v38  ;;  %v3345_v19 = vadd.s32 5, %v7840_v39 }
 0x46a   : > { %vm3348_vm10 = vcmp.lt.s32.totalorder %v3344_v15, 16  ;;  %vm3349_vm11 = vcmp.lt.s32.totalorder %v3345_v19, 16 }
 0x46b   : > { %v8371_v60 = vpop.permute.xlu0 %3364  ;;  %v3428_v57 = vpop.permute.xlu1 %3427 }
 0x46c   : > { %v3445_v47 = vadd.f32 %v3428_v57, %v3412_v36  ;;  %v3446_v50 = vadd.f32 %v3428_v57, %v3413_v46 }
 0x46e   : > { %v3453_v51 = vmax.f32 %v3445_v47, 0.0  ;;  %v3454_v59 = vmax.f32 %v3446_v50, 0.0 }
 0x46f   : > { %v3400_v53 = vpop.permute.xlu0 %3399 }
 0x470   : > { %v7140_v12 = vpack.i.bf16 %v3454_v59, %v3453_v51  ;;  %v3414_v14 = vmul.f32 %v3400_v53, %v8067_v13  ;;  %v3415_v52 = vmul.f32 %v3400_v53, %v8082_v23  ;;  %v8388_v30 = vpack.i.bf16 %v8103_v33, %v3454_v59 }
 0x472   : > { %7141 = vrot.lane.b32.xlu0 %v7140_v12, %s7639_s26  ;;  %7091 = vrot.lane.b32.xlu1 %v7140_v12, %s7637_s14 }
 0x473   : > { %v3433_v11 = vpop.permute.xlu0 %3432 }
 0x474   : > { %v3447_v48 = vadd.f32 %v3433_v11, %v3414_v14  ;;  %v3448_v5 = vadd.f32 %v3433_v11, %v3415_v52 }
 0x476   : > { %v3455_v6 = vmax.f32 %v3447_v48, 0.0  ;;  %v3456_v4 = vmax.f32 %v3448_v5, 0.0  ;;  %7146 = vrot.lane.b32.xlu0 %v7613_v2, %s7639_s26  ;;  %7096 = vrot.lane.b32.xlu1 %v7613_v2, %s7637_s14 }
 0x477   : > { %v8417_v62 = vpop.permute.xlu0 %3409 }
 0x478   : > { %v6601_v43 = vpack.c.bf16 %v3455_v6, %v3453_v51  ;;  %v6599_v13 = vpack.c.bf16 %v3456_v4, %v3454_v59  ;;  %v7175_v23 = vpack.i.bf16 %v3456_v4, %v3455_v6  ;;  %v8394_v63 = vpack.i.bf16 %v8103_v33, %v3456_v4 }
 0x479   : > { %v8410_v9 = vpack.i.bf16 %v3455_v6, %v3453_v51 }
 0x47a   : > { %6600 = vmatprep.subr.bf16.mxu0 %v6599_v13  ;;  %7156 = vrot.lane.b32.xlu0 %v8161_v54, %s7639_s26 }
 0x47b   : > { %6602 = vmatpush1.bf16.msra.mxu0 %v6601_v43  ;;  %7106 = vrot.lane.b32.xlu1 %v7140_v12, %s7638_s22 }
 0x47e   : > { %7176 = vrot.lane.b32.xlu0 %v7175_v23, %s7637_s14 }
 0x47f   : > { %7111 = vrot.lane.b32.xlu1 %v7613_v2, %s7638_s22 }
 0x482   : > { %7181 = vrot.lane.b32.xlu0 %v7175_v23, %s7638_s22 }
 0x483   : > { %7121 = vrot.lane.b32.xlu1 %v8388_v30, %s7640_s27 }
 0x486   : > { %7186 = vrot.lane.b32.xlu0 %v8394_v63, %s7640_s27 }
 0x487   : > { %7126 = vrot.lane.b32.xlu1 %v8388_v30, %s7641_s25 }
 0x48a   : > { %7191 = vrot.lane.b32.xlu0 %v8394_v63, %s7641_s25 }
 0x48b   : > { %7131 = vrot.lane.b32.xlu1 %v7140_v12, %s7642_s28 }
 0x48e   : > { %7196 = vrot.lane.b32.xlu0 %v7175_v23, %s7642_s28 }
 0x48f   : > { %7136 = vrot.lane.b32.xlu1 %v7613_v2, %s7642_s28  ;;  %v8419_v2 = vpop.permute.xlu0 %3442 }
 0x493   : > { %7151 = vrot.lane.b32.xlu1 %v8161_v54, %s7642_s28  ;;  %v8421_v17 = vpop.permute.xlu0 %7101  ;;  %v8423_v54 = vpop.permute.xlu1 %3404 }
 0x497   : > { %7161 = vrot.lane.b32.xlu1 %v8388_v30, %s7643_s23  ;;  %v8425_v1 = vpop.permute.xlu0 %7116  ;;  %v8427_v45 = vpop.permute.xlu1 %3437 }
 0x49b   : > { %7166 = vrot.lane.b32.xlu1 %v8410_v9, %s7640_s27 }
 0x49f   : > { %7171 = vrot.lane.b32.xlu1 %v8410_v9, %s7641_s25 }
 0x4a3   : > { %7201 = vrot.lane.b32.xlu1 %v7175_v23, %s7639_s26 }
 0x4e4   : > { %v8429_v61 = vpop.permute.xlu0 %7141  ;;  %v7092_v28 = vpop.permute.xlu1 %7091 }
 0x4e5   : > { %v7094_v22 = vunpack.i.h.bf16 %v7092_v28  ;;  %v7093_v55 = vunpack.i.l.bf16 %v7092_v28 }
 0x4e7   : > { %v3523_v56 = vsel %vm3521_vm7, %v7093_v55, %v7094_v22 }
 0x4e8   : > { %v8431_v25 = vpop.permute.xlu0 %7146  ;;  %v7097_v26 = vpop.permute.xlu1 %7096 }
 0x4e9   : > { %v7099_v27 = vunpack.i.h.bf16 %v7097_v26  ;;  %v7098_v24 = vunpack.i.l.bf16 %v7097_v26 }
 0x4eb   : > { %v3522_v49 = vsel %vm3521_vm7, %v7098_v24, %v7093_v55 }
 0x4ec   : > { %v8433_v42 = vpop.permute.xlu0 %7156 }
 0x4ed   : > { %v8439_v58 = vpop.permute.xlu1 %7106 }
 0x4f0   : > { %v7177_v29 = vpop.permute.xlu0 %7176 }
 0x4f1   : > { %v7179_v31 = vunpack.i.h.bf16 %v7177_v29  ;;  %v7178_v7 = vunpack.i.l.bf16 %v7177_v29  ;;  %v8443_v40 = vpop.permute.xlu1 %7111 }
 0x4f3   : > { %v3524_v21 = vsel %vm3521_vm7, %v7099_v27, %v7178_v7  ;;  %v3525_v32 = vsel %vm3521_vm7, %v7178_v7, %v7179_v31 }
 0x4f4   : > { %v6569_v34 = vpack.c.bf16 %v3525_v32, %v3523_v56  ;;  %v6571_v16 = vpack.c.bf16 %v3524_v21, %v3522_v49  ;;  %v8447_v46 = vpop.permute.xlu0 %7181 }
 0x4f5   : > { %v8449_v59 = vpop.permute.xlu1 %7121 }
 0x4f6   : > { %6570 = vmatprep.subr.bf16.mxu1 %v6569_v34 }
 0x4f7   : > { %6572 = vmatpush1.bf16.msra.mxu1 %v6571_v16 }
 0x4f8   : > { %v8451_v48 = vpop.permute.xlu0 %7186 }
 0x4f9   : > { %v8455_v43 = vpop.permute.xlu1 %7126 }
 0x4fc   : > { %v8457_v28 = vpop.permute.xlu0 %7191 }
 0x4fd   : > { %v7132_v26 = vpop.permute.xlu1 %7131 }
 0x500   : > { %v7197_v22 = vpop.permute.xlu0 %7196 }
 0x501   : > { %v7199_v21 = vunpack.i.h.bf16 %v7197_v22  ;;  %v7198_v56 = vunpack.i.l.bf16 %v7197_v22  ;;  %v7137_v32 = vpop.permute.xlu1 %7136  ;;  %v6433_v22 = vld [vmem:[%s9351_s3 + $0xd8] sm:$0xff] }
 0x502   : > { %v7139_v8 = vunpack.i.h.bf16 %v7137_v32 }
 0x503   : > { %v4003_v15 = vsel %vm3999_vm12, %v7198_v56, %v7199_v21 }
 0x512   : > { %v2458_v35 = vpop.f32.mrb[6].mxu1 }
 0x513   : > { %v2460_v20 = vpop.f32.mrb[7].mxu1 }
 0x519   : > { %v2692_v37 = vpop.f32.mrb[6].mxu0 }
 0x51a   : > { %v6745_v44 = vadd.f32 %v2692_v37, %v2458_v35  ;;  %v2694_v18 = vpop.f32.mrb[7].mxu0  ;;  %v7134_v37 = vunpack.i.h.bf16 %v7132_v26 }
 0x51b   : > { %v6746_v10 = vadd.f32 %v2694_v18, %v2460_v20 }
 0x51c   : > { %v2711_v0 = vsel %vm2701_vm8, %v6745_v44, 0.0  ;;  %v7133_v44 = vunpack.i.l.bf16 %v7132_v26  ;;  %v6430_v26 = vld [vmem:[%s9351_s3 + $0xc0] sm:$0xff] }
 0x51d   : > { %v2712_v47 = vsel %vm2702_vm9, %v6746_v10, 0.0 }
 0x52d   : > { %v3006_v36 = vpop.f32.mrb[8].mxu1 }
 0x52e   : > { %v3013_v57 = vadd.f32 %v3006_v36, %v2711_v0  ;;  %v3008_v50 = vpop.f32.mrb[9].mxu1  ;;  %v4001_v36 = vsel %vm3999_vm12, %v7133_v44, %v7134_v37  ;;  %v7184_v37 = vunpack.i.h.bf16 %v8447_v46 }
 0x52f   : > { %v3014_v51 = vadd.f32 %v3008_v50, %v2712_v47  ;;  %v6401_v47 = vld [vmem:[%s9349_s1 + $0xf8] sm:$0xff] }
 0x531   : > { %v3337_v53 = vpop.f32.mrb[8].mxu0 }
 0x532   : > { %v3356_v12 = vsel %vm3348_vm10, %v3337_v53, 0.0  ;;  %v3339_v14 = vpop.f32.mrb[9].mxu0 }
 0x533   : > { %v3358_v52 = vadd.f32 %v3356_v12, %v3013_v57  ;;  %v3357_v11 = vsel %vm3349_vm11, %v3339_v14, 0.0  ;;  %v6609_v57 = vpack.c.bf16 %v4003_v15, %v4001_v36  ;;  %v7108_v15 = vunpack.i.l.bf16 %v8439_v58 }
 0x534   : > { %v3359_v5 = vadd.f32 %v3357_v11, %v3014_v51 }
 0x535   : > { %v3367_v6 = vadd.f32 %v8371_v60, %v3358_v52 }
 0x536   : > { %v3368_v4 = vadd.f32 %v8371_v60, %v3359_v5 }
 0x537   : > { %v3371_v13 = vrot.slane %v3367_v6, 4  ;;  %v3743_v6 = vld [vmem:[#allocation2 + $0xb0] sm:$0xf] }
 0x538   : > { %v3372_v23 = vrot.slane %v3368_v4, 4 }
 0x539   : > { %3375 = vst [vmem:[#allocation3 + $0x30] ss:$-12 sps:$4 sm:$0xff] %v3371_v13  }
 0x53a   : > { %3376 = vst [vmem:[#allocation3 + $0x38] ss:$-12 sps:$4 sm:$0xff] %v3372_v23   ;;  %v6428_v23 = vld [vmem:[%s9350_s2 + $0xd8] sm:$0xff] }
 0x540   : > { %v8459_v55 = vld [vmem:[#allocation3 + $0x20] sm:$0xff]  ;;  %v3385_v27 = vld [vmem:[#allocation3 + $0x30] sm:$0xf] }
 0x541   : > { %v8461_v24 = vld [vmem:[#allocation3 + $0x28] sm:$0xff]  ;;  %v3386_v29 = vld [vmem:[#allocation3 + $0x38] sm:$0xf]  ;;  %v3416_v31 = vmul.f32 %v8423_v54, %v8459_v55  ;;  %v3418_v60 = vmul.f32 %v8417_v62, %v3385_v27  ;;  %v6427_v27 = vld [vmem:[%s9350_s2 + $0xd0] sm:$0xff] }
 0x542   : > { %v3417_v7 = vmul.f32 %v8423_v54, %v8461_v24  ;;  %v3419_v49 = vmul.f32 %v8417_v62, %v3386_v29  ;;  %v7138_v54 = vunpack.i.l.bf16 %v7137_v32  ;;  %v6434_v29 = vld [vmem:[%s9351_s3 + $0xe0] sm:$0xf] }
 0x543   : > { %v3449_v34 = vadd.f32 %v8427_v45, %v3416_v31  ;;  %v3451_v16 = vadd.f32 %v8419_v2, %v3418_v60  ;;  %v6432_v31 = vld [vmem:[%s9351_s3 + $0xd0] sm:$0xff]  ;;  %v6429_v60 = vld [vmem:[%s9350_s2 + $0xe0] sm:$0xf] }
 0x544   : > { %v3450_v35 = vadd.f32 %v8427_v45, %v3417_v7  ;;  %v3452_v20 = vadd.f32 %v8419_v2, %v3419_v49  ;;  %v4002_v45 = vsel %vm3999_vm12, %v7139_v8, %v7198_v56  ;;  %v4000_v2 = vsel %vm3999_vm12, %v7138_v54, %v7133_v44  ;;  %v8550_v7 = vpop.permute.xlu1 %7151 }
 0x545   : > { %v3457_v18 = vmax.f32 %v3449_v34, 0.0  ;;  %v3459_v10 = vmax.f32 %v3451_v16, 0.0  ;;  %v6611_v50 = vpack.c.bf16 %v4002_v45, %v4000_v2  ;;  %v7183_v44 = vunpack.i.l.bf16 %v8447_v46 }
 0x546   : > { %v3458_v41 = vmax.f32 %v3450_v35, 0.0  ;;  %v3460_v62 = vmax.f32 %v3452_v20, 0.0  ;;  %v7104_v8 = vunpack.i.h.bf16 %v8421_v17  ;;  %v7103_v54 = vunpack.i.l.bf16 %v8421_v17 }
 0x547   : > { %3467 = vst [vmem:[#allocation2 + $0xa0] sm:$0xf] %v3459_v10  ;;  %v6606_v0 = vpack.c.bf16 %v3459_v10, %v3457_v18  ;;  %v3643_v46 = vsel %vm3639_vm14, %v7183_v44, %v7184_v37 }
 0x548   : > { %3468 = vst [vmem:[#allocation2 + $0xa8] sm:$0xf] %v3460_v62  ;;  %v6603_v19 = vpack.c.bf16 %v3460_v62, %v3458_v41  ;;  %v7215_v11 = vpack.i.bf16 %v3458_v41, %v3457_v18  ;;  %v7255_v13 = vpack.i.bf16 %v8103_v33, %v3458_v41  ;;  %v8552_v49 = vpop.permute.xlu1 %7161  ;;  %v7109_v41 = vunpack.i.h.bf16 %v8439_v58 }
 0x54a   : > { %6605 = vmatprep.subr.msk.bf16.mxu0 %vm7855_vm15, %v6603_v19  ;;  %v7114_v19 = vunpack.i.h.bf16 %v8443_v40 }
 0x54b   : > { %6608 = vmatpush1.bf16.msk.msra.mxu0 %vm7855_vm15, %v6606_v0 }
 0x54c   : > { %6610 = vmatprep.subr.bf16.mxu0 %v6609_v57  ;;  %v8554_v21 = vpop.permute.xlu1 %7166 }
 0x54d   : > { %v7168_v37 = vunpack.i.l.bf16 %v8554_v21 }
 0x54e   : > { %6404 = vmatmul.mubr.msk.f32.vlgmr.msra.gmra.mrb[10].mxu0 %vm3536_vm13, %v6401_v47  ;;  %v3741_v51 = vld [vmem:[#allocation2 + $0xa0] sm:$0xf] }
 0x54f   : > { %v3479_v53 = vld [vmem:[#allocation2 + $0xa0] sm:$0xf]  ;;  %6612 = vmatpush1.bf16.msra.mxu0 %v6611_v50  ;;  %v7205_v12 = vpack.i.bf16 %v3741_v51, %v3457_v18  ;;  %v3480_v14 = vld [vmem:[#allocation2 + $0xa8] sm:$0xf]  ;;  %4085 = vmatprep.mubr.f32.mxu0 %v8103_v33  ;;  %v6424_v33 = vld [vmem:[%s9352_s4 + $0x18] sm:$0xff]  ;;  %v7113_v50 = vunpack.i.l.bf16 %v8443_v40 }
 0x550   : > { %v7225_v52 = vpack.i.bf16 %v3480_v14, %v3479_v53  ;;  %v3742_v5 = vld [vmem:[#allocation2 + $0xa8] sm:$0xf]  ;;  %v8556_v56 = vpop.permute.xlu1 %7171  ;;  %v3642_v14 = vsel %vm3639_vm14, %v7114_v19, %v7183_v44 }
 0x551   : > { %7206 = vrot.lane.b32.xlu0 %v7205_v12, %s7640_s27  ;;  %v7265_v4 = vpack.i.bf16 %v3743_v6, %v3742_v5  ;;  %v7189_v5 = vunpack.i.h.bf16 %v8451_v48  ;;  %v7188_v6 = vunpack.i.l.bf16 %v8451_v48  ;;  %v7148_v48 = vunpack.i.l.bf16 %v8431_v25 }
 0x552   : > { %7226 = vrot.lane.b32.xlu1 %v7225_v52, %s7637_s14 }
 0x554   : > { %v8558_v32 = vpop.permute.xlu1 %7201 }
 0x555   : > { %7211 = vrot.lane.b32.xlu0 %v7205_v12, %s7641_s25 }
 0x556   : > { %7231 = vrot.lane.b32.xlu1 %v8410_v9, %s7643_s23 }
 0x559   : > { %7216 = vrot.lane.b32.xlu0 %v7215_v11, %s7637_s14 }
 0x55a   : > { %7246 = vrot.lane.b32.xlu1 %v7225_v52, %s7638_s22 }
 0x55d   : > { %7221 = vrot.lane.b32.xlu0 %v8394_v63, %s7643_s23 }
 0x55e   : > { %7251 = vrot.lane.b32.xlu1 %v8394_v63, %s7644_s17  ;;  %v6431_v63 = vld [vmem:[%s9351_s3 + $0xc8] sm:$0xff] }
 0x561   : > { %7236 = vrot.lane.b32.xlu0 %v7215_v11, %s7638_s22 }
 0x562   : > { %7266 = vrot.lane.b32.xlu1 %v7265_v4, %s7640_s27 }
 0x565   : > { %7241 = vrot.lane.b32.xlu0 %v8388_v30, %s7644_s17  ;;  %v6426_v30 = vld [vmem:[%s9350_s2 + $0xc8] sm:$0xff] }
 0x566   : > { %7271 = vrot.lane.b32.xlu1 %v7205_v12, %s7643_s23 }
 0x569   : > { %7256 = vrot.lane.b32.xlu0 %v7255_v13, %s7640_s27 }
 0x56a   : > { %7281 = vrot.lane.b32.xlu1 %v7265_v4, %s7641_s25 }
 0x56d   : > { %7261 = vrot.lane.b32.xlu0 %v8410_v9, %s7644_s17  ;;  %v6425_v9 = vld [vmem:[%s9350_s2 + $0xc0] sm:$0xff] }
 0x56e   : > { %7286 = vrot.lane.b32.xlu1 %v7215_v11, %s7642_s28 }
 0x571   : > { %7276 = vrot.lane.b32.xlu0 %v7255_v13, %s7641_s25 }
 0x572   : > { %7301 = vrot.lane.b32.xlu1 %v7225_v52, %s7639_s26 }
 0x575   : > { %7291 = vrot.lane.b32.xlu0 %v7225_v52, %s7642_s28 }
 0x576   : > { %7306 = vrot.lane.b32.xlu1 %v7255_v13, %s7643_s23 }
 0x579   : > { %7296 = vrot.lane.b32.xlu0 %v7215_v11, %s7639_s26  ;;  %v3641_v11 = vsel %vm3639_vm14, %v7108_v15, %v7109_v41  ;;  %v8612_v41 = vld [vmem:[#allocation2 + $0x8] sm:$0xff]  ;;  %s332_s26 = scalar_lea.vmem %s9357_s9, %s6478_s12 }
 0x57a   : > { %7321 = vrot.lane.b32.xlu1 %v7265_v4, %s7644_s17  ;;  %v6579_v40 = vpack.c.bf16 %v3643_v46, %v3641_v11  ;;  %v7204_v11 = vunpack.i.h.bf16 %v8558_v32 }
 0x57d   : > { %7311 = vrot.lane.b32.xlu0 %v7265_v4, %s7643_s23 }
 0x57e   : > { %4594 = vperm.xlu1 %6849, %v6424_v33   ;;  %v7144_v33 = vunpack.i.h.bf16 %v8429_v61 }
 0x581   : > { %7316 = vrot.lane.b32.xlu0 %v7255_v13, %s7644_s17  ;;  %v7118_v13 = vunpack.i.l.bf16 %v8425_v1 }
 0x582   : > { %4632 = vperm.xlu1 %6849, %v6426_v30   ;;  %v7143_v30 = vunpack.i.l.bf16 %v8429_v61  ;;  %v7129_v61 = vunpack.i.h.bf16 %v8455_v43 }
 0x585   : > { %7326 = vrot.lane.b32.xlu0 %v7205_v12, %s7644_s17  ;;  %v7119_v12 = vunpack.i.h.bf16 %v8425_v1  ;;  %v7123_v1 = vunpack.i.l.bf16 %v8449_v59 }
 0x586   : > { %4673 = vperm.xlu1 %6849, %v6431_v63  }
 0x589   : > { %4627 = vperm.xlu0 %6848, %v6425_v9   ;;  %v6389_v9 = vld [vmem:[%s9349_s1 + $0xf0] sm:$0xff] }
 0x58a   : > { %4642 = vperm.xlu1 %6849, %v6428_v23   ;;  %v3640_v23 = vsel %vm3639_vm14, %v7113_v50, %v7108_v15 }
 0x58d   : > { %4668 = vperm.xlu0 %6848, %v6430_v26   ;;  %v7124_v26 = vunpack.i.h.bf16 %v8449_v59  ;;  %v7128_v59 = vunpack.i.l.bf16 %v8455_v43  ;;  %v8619_v43 = vsel %vm4360_vm1, %v7143_v30, %v7144_v33 }
 0x58e   : > { %4683 = vperm.xlu1 %6849, %v6433_v22  }
 0x58f   : > { %v3784_v19 = vsel %vm3782_vm2, %v7123_v1, %v7124_v26 }
 0x591   : > { %4637 = vperm.xlu0 %6848, %v6427_v27  }
 0x592   : > { %4688 = vperm.xlu1 %6849, %v6434_v29  }
 0x595   : > { %4678 = vperm.xlu0 %6848, %v6432_v31  }
 0x599   : > { %4647 = vperm.xlu0 %6848, %v6429_v60   ;;  %v6581_v60 = vpack.c.bf16 %v3642_v14, %v3640_v23  ;;  %v7173_v14 = vunpack.i.l.bf16 %v8556_v56  ;;  %v7163_v23 = vunpack.i.l.bf16 %v8552_v49 }
 0x5c3   : > { %v8560_v34 = vpop.permute.xlu0 %7206 }
 0x5c4   : > { %v7227_v16 = vpop.permute.xlu1 %7226 }
 0x5c5   : > { %v7229_v18 = vunpack.i.h.bf16 %v7227_v16  ;;  %v7228_v10 = vunpack.i.l.bf16 %v7227_v16  ;;  %v7169_v16 = vunpack.i.h.bf16 %v8554_v21 }
 0x5c7   : > { %v8562_v35 = vpop.permute.xlu0 %7211  ;;  %v3528_v2 = vsel %vm3521_vm7, %v7104_v8, %v7228_v10  ;;  %v3529_v57 = vsel %vm3521_vm7, %v7228_v10, %v7229_v18  ;;  %v3786_v18 = vsel %vm3782_vm2, %v7188_v6, %v7189_v5  ;;  %v7203_v5 = vunpack.i.l.bf16 %v8558_v32 }
 0x5c8   : > { %v8564_v20 = vpop.permute.xlu1 %7231 }
 0x5cb   : > { %v7217_v62 = vpop.permute.xlu0 %7216 }
 0x5cc   : > { %v7219_v0 = vunpack.i.h.bf16 %v7217_v62  ;;  %v7218_v36 = vunpack.i.l.bf16 %v7217_v62  ;;  %v7247_v45 = vpop.permute.xlu1 %7246 }
 0x5cd   : > { %v7248_v4 = vunpack.i.l.bf16 %v7247_v45  ;;  %v7249_v63 = vunpack.i.h.bf16 %v7247_v45  ;;  %v7193_v45 = vunpack.i.l.bf16 %v8457_v28 }
 0x5ce   : > { %v3526_v17 = vsel %vm3521_vm7, %v7103_v54, %v7218_v36  ;;  %v3527_v47 = vsel %vm3521_vm7, %v7218_v36, %v7219_v0  ;;  %v7149_v0 = vunpack.i.h.bf16 %v8431_v25  ;;  %v7194_v36 = vunpack.i.h.bf16 %v8457_v28  ;;  %v6388_v28 = vld [vmem:[%s9349_s1 + $0xd8] sm:$0xff] }
 0x5cf   : > { %v6576_v58 = vpack.c.bf16 %v3528_v2, %v3526_v17  ;;  %v8579_v51 = vpop.permute.xlu0 %7221  ;;  %v6573_v53 = vpack.c.bf16 %v3529_v57, %v3527_v47  ;;  %v3646_v44 = vsel %vm3639_vm14, %v7119_v12, %v7248_v4  ;;  %v3647_v10 = vsel %vm3639_vm14, %v7248_v4, %v7249_v63 }
 0x5d0   : > { %v8583_v52 = vpop.permute.xlu1 %7251  ;;  %v6589_v2 = vpack.c.bf16 %v3786_v18, %v3784_v19  ;;  %v3785_v57 = vsel %vm3782_vm2, %v7169_v16, %v7188_v6  ;;  %v3783_v17 = vsel %vm3782_vm2, %v7168_v37, %v7123_v1  ;;  %v7174_v47 = vunpack.i.h.bf16 %v8556_v56 }
 0x5d1   : > { %6575 = vmatprep.subr.msk.bf16.mxu1 %vm7855_vm15, %v6573_v53  ;;  %v7159_v25 = vunpack.i.h.bf16 %v8433_v42  ;;  %v4245_v12 = vsel %vm4243_vm3, %v7128_v59, %v7129_v61  ;;  %v7209_v6 = vunpack.i.h.bf16 %v8560_v34  ;;  %v6591_v63 = vpack.c.bf16 %v3785_v57, %v3783_v17 }
 0x5d2   : > { %6578 = vmatpush1.bf16.msk.msra.mxu1 %vm7855_vm15, %v6576_v58  ;;  %v8632_v58 = vsel %vm4360_vm1, %v7148_v48, %v7143_v30  ;;  %v4246_v48 = vsel %vm4243_vm3, %v7174_v47, %v7193_v45  ;;  %v4247_v32 = vsel %vm4243_vm3, %v7193_v45, %v7194_v36  ;;  %v8663_v16 = vsel %vm4360_vm1, %v7149_v0, %v7203_v5 }
 0x5d3   : > { %v7237_v22 = vpop.permute.xlu0 %7236  ;;  %6580 = vmatprep.subr.bf16.mxu1 %v6579_v40  ;;  %v7208_v40 = vunpack.i.l.bf16 %v8560_v34  ;;  %v7153_v18 = vunpack.i.l.bf16 %v8550_v7  ;;  %v7213_v0 = vunpack.i.l.bf16 %v8562_v35  ;;  %v6641_v45 = vpack.c.bf16 %v8663_v16, %v8632_v58 }
 0x5d4   : > { %v7239_v27 = vunpack.i.h.bf16 %v7237_v22  ;;  %v7238_v29 = vunpack.i.l.bf16 %v7237_v22  ;;  %v7267_v31 = vpop.permute.xlu1 %7266  ;;  %v4244_v22 = vsel %vm4243_vm3, %v7173_v14, %v7128_v59  ;;  %v7223_v59 = vunpack.i.l.bf16 %v8579_v51 }
 0x5d5   : > { %6392 = vmatmul.mubr.msk.f32.vlgmr.msra.gmra.mrb[10].mxu1 %vm3536_vm13, %v6389_v9  ;;  %v7268_v50 = vunpack.i.l.bf16 %v7267_v31  ;;  %v7269_v53 = vunpack.i.h.bf16 %v7267_v31  ;;  %v7164_v9 = vunpack.i.h.bf16 %v8552_v49  ;;  %v4364_v31 = vsel %vm4360_vm1, %v7203_v5, %v7204_v11 }
 0x5d6   : > { %v3644_v8 = vsel %vm3639_vm14, %v7118_v13, %v7238_v29  ;;  %v3645_v54 = vsel %vm3639_vm14, %v7238_v29, %v7239_v27  ;;  %6582 = vmatpush1.bf16.msra.mxu1 %v6581_v60  ;;  %3725 = vmatprep.mubr.f32.mxu1 %v8612_v41  ;;  %v7158_v60 = vunpack.i.l.bf16 %v8433_v42  ;;  %v7154_v49 = vunpack.i.h.bf16 %v8550_v7 }
 0x5d7   : > { %v6586_v21 = vpack.c.bf16 %v3646_v44, %v3644_v8  ;;  %v8615_v62 = vpop.permute.xlu0 %7241  ;;  %v6583_v15 = vpack.c.bf16 %v3647_v10, %v3645_v54  ;;  %v3789_v56 = vsel %vm3782_vm2, %v7209_v6, %v7268_v50  ;;  %v3790_v26 = vsel %vm3782_vm2, %v7268_v50, %v7269_v53 }
 0x5d8   : > { %v8624_v46 = vpop.permute.xlu1 %7271  ;;  %v6629_v44 = vpack.c.bf16 %v4247_v32, %v4245_v12  ;;  %v7224_v10 = vunpack.i.h.bf16 %v8579_v51  ;;  %v6639_v19 = vpack.c.bf16 %v4364_v31, %v8619_v43  ;;  %v8677_v7 = vsel %vm4118_vm4, %v7163_v23, %v7164_v9 }
 0x5d9   : > { %6585 = vmatprep.subr.msk.bf16.mxu1 %vm7855_vm15, %v6583_v15  ;;  %v6631_v15 = vpack.c.bf16 %v4246_v48, %v4244_v22  ;;  %v7214_v51 = vunpack.i.h.bf16 %v8562_v35  ;;  %v7233_v57 = vunpack.i.l.bf16 %v8564_v20  ;;  %v7254_v50 = vunpack.i.h.bf16 %v8583_v52 }
 0x5da   : > { %6588 = vmatpush1.bf16.msk.msra.mxu1 %vm7855_vm15, %v6586_v21  ;;  %v6396_v21 = vld [vmem:[%s9349_s1 + $0x108] sm:$0xff]  ;;  %v4122_v35 = vsel %vm4118_vm4, %v7223_v59, %v7224_v10  ;;  %v7253_v5 = vunpack.i.l.bf16 %v8583_v52 }
 0x5db   : > { %v7257_v4 = vpop.permute.xlu0 %7256  ;;  %6590 = vmatprep.subr.bf16.mxu1 %v6589_v2  ;;  %v7234_v2 = vunpack.i.h.bf16 %v8564_v20  ;;  %v4119_v9 = vsel %vm4118_vm4, %v7233_v57, %v7163_v23  ;;  %v6619_v52 = vpack.c.bf16 %v4122_v35, %v8677_v7  ;;  %v6413_v23 = vld [vmem:[%s9349_s1 + $0x100] sm:$0xff]  ;;  %v7273_v7 = vunpack.i.l.bf16 %v8624_v46  ;;  %v6412_v35 = vld [vmem:[%s9349_s1 + $0xe8] sm:$0xff] }
 0x5dc   : > { %v7259_v13 = vunpack.i.h.bf16 %v7257_v4  ;;  %v7258_v33 = vunpack.i.l.bf16 %v7257_v4  ;;  %v7282_v30 = vpop.permute.xlu1 %7281  ;;  %v4483_v16 = vsel %vm4479_vm5, %v7253_v5, %v7254_v50 }
 0x5dd   : > { %6395 = vmatmul.mubr.msk.f32.vlgmr.msra.gmra.mrb[10].mxu1 %vm3536_vm13, %v6388_v28  ;;  %v7283_v8 = vunpack.i.l.bf16 %v7282_v30  ;;  %v7284_v54 = vunpack.i.h.bf16 %v7282_v30  ;;  %v8694_v20 = vsel %vm4118_vm4, %v7234_v2, %v7223_v59 }
 0x5de   : > { %v3787_v34 = vsel %vm3782_vm2, %v7208_v40, %v7258_v33  ;;  %v3788_v1 = vsel %vm3782_vm2, %v7258_v33, %v7259_v13  ;;  %6592 = vmatpush1.bf16.msra.mxu1 %v6591_v63  ;;  %3868 = vmatprep.mubr.f32.mxu1 %v8612_v41  ;;  %v7244_v13 = vunpack.i.h.bf16 %v8615_v62  ;;  %v7243_v33 = vunpack.i.l.bf16 %v8615_v62 }
 0x5df   : > { %v6596_v61 = vpack.c.bf16 %v3789_v56, %v3787_v34  ;;  %v8657_v27 = vpop.permute.xlu0 %7261  ;;  %v6593_v29 = vpack.c.bf16 %v3790_v26, %v3788_v1  ;;  %v4250_v53 = vsel %vm4243_vm3, %v7214_v51, %v7283_v8  ;;  %v4251_v12 = vsel %vm4243_vm3, %v7283_v8, %v7284_v54 }
 0x5e0   : > { %v7287_v37 = vpop.permute.xlu1 %7286  ;;  %v6621_v31 = vpack.c.bf16 %v8694_v20, %v4119_v9  ;;  %v7263_v10 = vunpack.i.l.bf16 %v8657_v27  ;;  %vm6114_vm2 = vcmask 359424  }
 0x5e1   : > { %6595 = vmatprep.subr.msk.bf16.mxu1 %vm7855_vm15, %v6593_v29  ;;  %v7288_v28 = vunpack.i.l.bf16 %v7287_v37  ;;  %v7289_v14 = vunpack.i.h.bf16 %v7287_v37  ;;  %v7264_v37 = vunpack.i.h.bf16 %v8657_v27  ;;  %v7274_v27 = vunpack.i.h.bf16 %v8624_v46 }
 0x5e2   : > { %6598 = vmatpush1.bf16.msk.msra.mxu1 %vm7855_vm15, %v6596_v61 }
 0x5e3   : > { %v7277_v36 = vpop.permute.xlu0 %7276  ;;  %6630 = vmatprep.subr.bf16.mxu1 %v6629_v44  ;;  %v4004_v48 = vsel %vm3999_vm12, %v7153_v18, %v7288_v28  ;;  %v4005_v26 = vsel %vm3999_vm12, %v7288_v28, %v7289_v14  ;;  %v4481_v18 = vsel %vm4479_vm5, %v7243_v33, %v7244_v13 }
 0x5e4   : > { %v7279_v17 = vunpack.i.h.bf16 %v7277_v36  ;;  %v7278_v47 = vunpack.i.l.bf16 %v7277_v36  ;;  %v7302_v43 = vpop.permute.xlu1 %7301 }
 0x5e5   : > { %6399 = vmatmul.mubr.msk.f32.vlgmr.msra.gmra.mrb[10].mxu1 %vm3536_vm13, %v6396_v21  ;;  %v7303_v56 = vunpack.i.l.bf16 %v7302_v43  ;;  %v7304_v34 = vunpack.i.h.bf16 %v7302_v43 }
 0x5e6   : > { %v4248_v58 = vsel %vm4243_vm3, %v7213_v0, %v7278_v47  ;;  %v4249_v11 = vsel %vm4243_vm3, %v7278_v47, %v7279_v17  ;;  %6632 = vmatpush1.bf16.msra.mxu1 %v6631_v15  ;;  %4329 = vmatprep.mubr.f32.mxu1 %v8612_v41  ;;  %v4480_v17 = vsel %vm4479_vm5, %v7263_v10, %v7243_v33 }
 0x5e7   : > { %v6636_v6 = vpack.c.bf16 %v4250_v53, %v4248_v58  ;;  %v7292_v4 = vpop.permute.xlu0 %7291  ;;  %v6633_v40 = vpack.c.bf16 %v4251_v12, %v4249_v11  ;;  %v4367_v59 = vsel %vm4360_vm1, %v7159_v25, %v7303_v56  ;;  %v4368_v21 = vsel %vm4360_vm1, %v7303_v56, %v7304_v34  ;;  %v6400_v25 = vld [vmem:[%s9349_s1 + $0xe0] sm:$0xff] }
 0x5e8   : > { %v7294_v30 = vunpack.i.h.bf16 %v7292_v4  ;;  %v7293_v63 = vunpack.i.l.bf16 %v7292_v4  ;;  %v7307_v32 = vpop.permute.xlu1 %7306  ;;  %v4611_v34 = vld [vmem:[#allocation3 + $0x10] sm:$0xff] }
 0x5e9   : > { %6635 = vmatprep.subr.msk.bf16.mxu1 %vm7855_vm15, %v6633_v40  ;;  %v7309_v8 = vunpack.i.h.bf16 %v7307_v32  ;;  %v7308_v54 = vunpack.i.l.bf16 %v7307_v32  ;;  %v6408_v40 = vld [vmem:[%s9349_s1 + $0x110] sm:$0xff] }
 0x5ea   : > { %v4006_v1 = vsel %vm3999_vm12, %v7154_v49, %v7293_v63  ;;  %v4007_v62 = vsel %vm3999_vm12, %v7293_v63, %v7294_v30  ;;  %6638 = vmatpush1.bf16.msk.msra.mxu1 %vm7855_vm15, %v6636_v6 }
 0x5eb   : > { %v6616_v22 = vpack.c.bf16 %v4006_v1, %v4004_v48  ;;  %v7297_v61 = vpop.permute.xlu0 %7296  ;;  %6640 = vmatprep.subr.bf16.mxu1 %v6639_v19  ;;  %v6613_v29 = vpack.c.bf16 %v4007_v62, %v4005_v26  ;;  %v4123_v47 = vsel %vm4118_vm4, %v7273_v7, %v7308_v54  ;;  %v4124_v43 = vsel %vm4118_vm4, %v7308_v54, %v7309_v8  ;;  %v4612_v1 = vld [vmem:[#allocation3 + $0x18] sm:$0xff] }
 0x5ec   : > { %v7299_v49 = vunpack.i.h.bf16 %v7297_v61  ;;  %v7298_v44 = vunpack.i.l.bf16 %v7297_v61  ;;  %v7322_v36 = vpop.permute.xlu1 %7321  ;;  %v8784_v54 = vpack.i.bf16 %v8612_v41, %v8612_v41 }
 0x5ed   : > { %6615 = vmatprep.subr.msk.bf16.mxu0 %vm7855_vm15, %v6613_v29  ;;  %6416 = vmatmul.mubr.msk.f32.vlgmr.msra.gmra.mrb[12].mxu1 %vm3536_vm13, %v6413_v23  ;;  %v7324_v46 = vunpack.i.h.bf16 %v7322_v36  ;;  %v7323_v50 = vunpack.i.l.bf16 %v7322_v36 }
 0x5ee   : > { %v4365_v15 = vsel %vm4360_vm1, %v7158_v60, %v7298_v44  ;;  %v4366_v19 = vsel %vm4360_vm1, %v7298_v44, %v7299_v49  ;;  %6618 = vmatpush1.bf16.msk.msra.mxu0 %vm7855_vm15, %v6616_v22  ;;  %6642 = vmatpush1.bf16.msra.mxu1 %v6641_v45  ;;  %v4482_v60 = vsel %vm4479_vm5, %v7264_v37, %v7253_v5  ;;  %v4609_v49 = vld [vmem:[#allocation3] sm:$0xff]  ;;  %v4610_v44 = vld [vmem:[#allocation3 + $0x8] sm:$0xff] }
 0x5ef   : > { %v6643_v51 = vpack.c.bf16 %v4368_v21, %v4366_v19  ;;  %v6646_v0 = vpack.c.bf16 %v4367_v59, %v4365_v15  ;;  %v7312_v42 = vpop.permute.xlu0 %7311  ;;  %6620 = vmatprep.subr.bf16.mxu0 %v6619_v52  ;;  %4446 = vmatprep.mubr.f32.mxu1 %v8612_v41  ;;  %v6649_v45 = vpack.c.bf16 %v4483_v16, %v4481_v18  ;;  %v6420_v52 = vld [vmem:[%s9349_s1 + $0x118] sm:$0xff] }
 0x5f0   : > { %v7314_v2 = vunpack.i.h.bf16 %v7312_v42  ;;  %v7313_v57 = vunpack.i.l.bf16 %v7312_v42  ;;  %v6651_v5 = vpack.c.bf16 %v4482_v60, %v4480_v17  ;;  %v4487_v6 = vsel %vm4479_vm5, %v7323_v50, %v7324_v46  ;;  %v4733_v17 = vld [vmem:[#allocation2 + $0xc0] sm:$0xf] }
 0x5f1   : > { %6407 = vmatmul.mubr.msk.f32.vlgmr.msra.gmra.mrb[10].mxu0 %vm3536_vm13, %v6400_v25  ;;  %6645 = vmatprep.subr.msk.bf16.mxu1 %vm7855_vm15, %v6643_v51 }
 0x5f2   : > { %v4125_v53 = vsel %vm4118_vm4, %v7274_v27, %v7313_v57  ;;  %v4126_v28 = vsel %vm4118_vm4, %v7313_v57, %v7314_v2  ;;  %6622 = vmatpush1.bf16.msra.mxu0 %v6621_v31  ;;  %6648 = vmatpush1.bf16.msk.msra.mxu1 %vm7855_vm15, %v6646_v0 }
 0x5f3   : > { %v6623_v12 = vpack.c.bf16 %v4126_v28, %v4124_v43  ;;  %v6626_v14 = vpack.c.bf16 %v4125_v53, %v4123_v47  ;;  %v7317_v58 = vpop.permute.xlu0 %7316  ;;  %6650 = vmatprep.subr.bf16.mxu1 %v6649_v45  ;;  %4204 = vmatprep.mubr.f32.mxu0 %v8612_v41  ;;  %v4734_v47 = vld [vmem:[#allocation2 + $0xc8] sm:$0xf]  ;;  %v5032_v53 = vld [vmem:[#allocation2 + $0xe0] sm:$0xf] }
 0x5f4   : > { %v7319_v11 = vunpack.i.h.bf16 %v7317_v58  ;;  %v7318_v20 = vunpack.i.l.bf16 %v7317_v58  ;;  %v5033_v28 = vld [vmem:[#allocation2 + $0xe8] sm:$0xf] }
 0x5f5   : > { %6625 = vmatprep.subr.msk.bf16.mxu0 %vm7855_vm15, %v6623_v12  ;;  %6419 = vmatmul.mubr.msk.f32.vlgmr.msra.gmra.mrb[12].mxu1 %vm3536_vm13, %v6412_v35  ;;  %v8824_v35 = vpack.i.bf16 %v5033_v28, %v5032_v53 }
 0x5f6   : > { %v4485_v4 = vsel %vm4479_vm5, %v7318_v20, %v7319_v11  ;;  %6628 = vmatpush1.bf16.msk.msra.mxu0 %vm7855_vm15, %v6626_v14  ;;  %6652 = vmatpush1.bf16.msra.mxu1 %v6651_v5 }
 0x5f7   : > { %v6653_v13 = vpack.c.bf16 %v4487_v6, %v4485_v4  ;;  %v7327_v33 = vpop.permute.xlu0 %7326  ;;  %4565 = vmatprep.mubr.f32.mxu1 %v8612_v41 }
 0x5f8   : > { %v7329_v30 = vunpack.i.h.bf16 %v7327_v33  ;;  %v7328_v63 = vunpack.i.l.bf16 %v7327_v33 }
 0x5f9   : > { %6411 = vmatmul.mubr.msk.f32.vlgmr.msra.gmra.mrb[10].mxu0 %vm3536_vm13, %v6408_v40  ;;  %6655 = vmatprep.subr.msk.bf16.mxu1 %vm7855_vm15, %v6653_v13 }
 0x5fa   : > { %v4486_v9 = vsel %vm4479_vm5, %v7329_v30, %v7323_v50  ;;  %v4484_v48 = vsel %vm4479_vm5, %v7328_v63, %v7318_v20  ;;  %4880 = vmatprep.mubr.f32.mxu0 %v8612_v41  ;;  %v5551_v20 = vld [vmem:[#allocation2 + $0xe0] sm:$0xf] }
 0x5fb   : > { %v6656_v56 = vpack.c.bf16 %v4486_v9, %v4484_v48 }
 0x5fd   : > { %v8768_v32 = vpop.permute.xlu1 %4594  ;;  %6658 = vmatpush1.bf16.msk.msra.mxu1 %vm7855_vm15, %v6656_v56 }
 0x600   : > { %6423 = vmatmul.mubr.msk.f32.vlgmr.msra.gmra.mrb[12].mxu1 %vm3536_vm13, %v6420_v52  ;;  %vm4808_vm13 = vcmask 293888  }
 0x601   : > { %v4633_v26 = vpop.permute.xlu1 %4632  ;;  %5270 = vmatprep.mubr.f32.mxu1 %v8612_v41 }
 0x602   : > { %v4652_v62 = vmul.f32 %v4633_v26, %v4611_v34  ;;  %v4653_v23 = vmul.f32 %v4633_v26, %v4612_v1 }
 0x605   : > { %v4674_v22 = vpop.permute.xlu1 %4673 }
 0x606   : > { %v4693_v61 = vadd.f32 %v4674_v22, %v4652_v62  ;;  %v4694_v29 = vadd.f32 %v4674_v22, %v4653_v23 }
 0x608   : > { %v8777_v31 = vmax.f32 %v4693_v61, 0.0  ;;  %v4704_v16 = vmax.f32 %v4694_v29, 0.0  ;;  %v4628_v37 = vpop.permute.xlu0 %4627 }
 0x609   : > { %v4650_v10 = vmul.f32 %v4628_v37, %v4609_v49  ;;  %v4651_v59 = vmul.f32 %v4628_v37, %v4610_v44  ;;  %v8861_v4 = vpop.permute.xlu1 %4642 }
 0x60a   : > { %4713 = vst [vmem:[#allocation2 + $0x40] sm:$0xff] %v8777_v31  ;;  %4714 = vst [vmem:[#allocation2 + $0x48] sm:$0xff] %v4704_v16  ;;  %v7335_v18 = vpack.i.bf16 %v4704_v16, %v8777_v31  ;;  %v7355_v60 = vpack.i.bf16 %v8777_v31, %v8612_v41  ;;  %v7410_v14 = vpack.i.bf16 %v8612_v41, %v4704_v16 }
 0x60c   : > { %v4669_v8 = vpop.permute.xlu0 %4668  ;;  %7336 = vrot.lane.b32.xlu1 %v7335_v18, %s7644_s17 }
 0x60d   : > { %v4691_v21 = vadd.f32 %v4669_v8, %v4650_v10  ;;  %v4692_v15 = vadd.f32 %v4669_v8, %v4651_v59  ;;  %v8863_v40 = vpop.permute.xlu1 %4683 }
 0x60f   : > { %v4701_v19 = vmax.f32 %v4691_v21, 0.0  ;;  %v4702_v25 = vmax.f32 %v4692_v15, 0.0 }
 0x610   : > { %v4638_v27 = vpop.permute.xlu0 %4637  ;;  %7346 = vrot.lane.b32.xlu1 %v8784_v54, %s7644_s17 }
 0x611   : > { %4711 = vst [vmem:[#allocation2 + $0x10] sm:$0xff] %v4701_v19  ;;  %4712 = vst [vmem:[#allocation2 + $0x18] sm:$0xff] %v4702_v25  ;;  %v6685_v7 = vpack.c.bf16 %v8777_v31, %v4701_v19  ;;  %v6683_v51 = vpack.c.bf16 %v4704_v16, %v4702_v25  ;;  %v7330_v0 = vpack.i.bf16 %v4702_v25, %v4701_v19  ;;  %v8865_v13 = vpop.permute.xlu1 %4688 }
 0x612   : > { %v4654_v36 = vmul.f32 %v4638_v27, %v8459_v55  ;;  %v4655_v42 = vmul.f32 %v4638_v27, %v8461_v24  ;;  %v8805_v24 = vpack.i.bf16 %v4733_v17, %v4734_v47  ;;  %v7350_v46 = vpack.i.bf16 %v4701_v19, %v8612_v41 }
 0x613   : > { %6684 = vmatprep.subr.bf16.mxu1 %v6683_v51  ;;  %7331 = vrot.lane.b32.xlu0 %v7330_v0, %s7644_s17  ;;  %v8814_v50 = vpack.i.bf16 %v4704_v16, %v4702_v25  ;;  %v7405_v12 = vpack.i.bf16 %v8612_v41, %v4702_v25  ;;  %v7415_v58 = vpack.i.bf16 %v8777_v31, %v4701_v19 }
 0x614   : > { %v4679_v2 = vpop.permute.xlu0 %4678  ;;  %6686 = vmatpush1.bf16.msra.mxu1 %v6685_v7  ;;  %7356 = vrot.lane.b32.xlu1 %v7355_v60, %s7645_s16 }
 0x615   : > { %v4695_v57 = vadd.f32 %v4679_v2, %v4654_v36  ;;  %v4696_v45 = vadd.f32 %v4679_v2, %v4655_v42 }
 0x617   : > { %v8795_v43 = vmax.f32 %v4695_v57, 0.0  ;;  %v8797_v55 = vmax.f32 %v4696_v45, 0.0  ;;  %7341 = vrot.lane.b32.xlu0 %v8784_v54, %s7644_s17 }
 0x618   : > { %7361 = vrot.lane.b32.xlu1 %v8784_v54, %s7645_s16  ;;  %v8867_v30 = vpop.permute.xlu0 %4647 }
 0x619   : > { %4715 = vst [vmem:[#allocation2 + $0x70] sm:$0xff] %v8795_v43  ;;  %4716 = vst [vmem:[#allocation2 + $0x78] sm:$0xff] %v8797_v55  ;;  %v8845_v11 = vpack.i.bf16 %v8795_v43, %v8612_v41  ;;  %v7470_v5 = vpack.i.bf16 %v8612_v41, %v8797_v55  ;;  %v7465_v6 = vpack.i.bf16 %v8797_v55, %v8795_v43 }
 0x61b   : > { %7351 = vrot.lane.b32.xlu0 %v7350_v46, %s7645_s16 }
 0x61c   : > { %7371 = vrot.lane.b32.xlu1 %v8805_v24, %s7645_s16 }
 0x61f   : > { %4784 = vrot.lane.b32.xlu0 %v4734_v47, %s7644_s17 }
 0x620   : > { %7376 = vrot.lane.b32.xlu1 %v8784_v54, %s7641_s25 }
 0x623   : > { %7366 = vrot.lane.b32.xlu0 %v8784_v54, %s7645_s16 }
 0x624   : > { %7386 = vrot.lane.b32.xlu1 %v8814_v50, %s7641_s25 }
 0x627   : > { %7381 = vrot.lane.b32.xlu0 %v8784_v54, %s7641_s25 }
 0x628   : > { %7396 = vrot.lane.b32.xlu1 %v8784_v54, %s7641_s25 }
 0x62b   : > { %7391 = vrot.lane.b32.xlu0 %v8784_v54, %s7641_s25 }
 0x62c   : > { %7401 = vrot.lane.b32.xlu1 %v8824_v35, %s7641_s25 }
 0x62f   : > { %7406 = vrot.lane.b32.xlu0 %v7405_v12, %s7638_s22 }
 0x630   : > { %7411 = vrot.lane.b32.xlu1 %v7410_v14, %s7638_s22 }
 0x633   : > { %7426 = vrot.lane.b32.xlu0 %v7355_v60, %s7643_s23 }
 0x634   : > { %7416 = vrot.lane.b32.xlu1 %v7415_v58, %s7638_s22 }
 0x637   : > { %7436 = vrot.lane.b32.xlu0 %v7350_v46, %s7637_s14 }
 0x638   : > { %7421 = vrot.lane.b32.xlu1 %v7350_v46, %s7643_s23 }
 0x63b   : > { %7451 = vrot.lane.b32.xlu0 %v8784_v54, %s7643_s23 }
 0x63c   : > { %7431 = vrot.lane.b32.xlu1 %v8784_v54, %s7643_s23 }
 0x63f   : > { %7456 = vrot.lane.b32.xlu0 %v8845_v11, %s7645_s16 }
 0x640   : > { %5597 = vrot.lane.b32.xlu1 %v5551_v20, %s7638_s22 }
 0x643   : > { %7461 = vrot.lane.b32.xlu0 %v8845_v11, %s7643_s23 }
 0x644   : > { %7441 = vrot.lane.b32.xlu1 %v7355_v60, %s7637_s14 }
 0x647   : > { %7471 = vrot.lane.b32.xlu0 %v7470_v5, %s7638_s22 }
 0x648   : > { %7446 = vrot.lane.b32.xlu1 %v8784_v54, %s7637_s14 }
 0x64c   : > { %7466 = vrot.lane.b32.xlu1 %v7465_v6, %s7644_s17 }
 0x67e   : > { %v7337_v33 = vpop.permute.xlu1 %7336 }
 0x67f   : > { %v7339_v9 = vunpack.i.h.bf16 %v7337_v33  ;;  %v7338_v48 = vunpack.i.l.bf16 %v7337_v33 }
 0x681   : > { %v4793_v62 = vsel %vm4479_vm5, %v7338_v48, %v7339_v9 }
 0x682   : > { %v8869_v63 = vpop.permute.xlu1 %7346 }
 0x685   : > { %v7332_v56 = vpop.permute.xlu0 %7331 }
 0x686   : > { %v7334_v52 = vunpack.i.h.bf16 %v7332_v56  ;;  %v7333_v26 = vunpack.i.l.bf16 %v7332_v56  ;;  %v7357_v34 = vpop.permute.xlu1 %7356 }
 0x687   : > { %v7358_v16 = vunpack.i.l.bf16 %v7357_v34  ;;  %v7359_v49 = vunpack.i.h.bf16 %v7357_v34 }
 0x688   : > { %v4791_v1 = vsel %vm4479_vm5, %v7333_v26, %v7334_v52 }
 0x689   : > { %v7342_v23 = vpop.permute.xlu0 %7341  ;;  %v6659_v22 = vpack.c.bf16 %v4793_v62, %v4791_v1  ;;  %v8887_v51 = vsel %vm4922_vm6, %v7358_v16, %v7359_v49  ;;  %v4574_v62 = vadd.s32 7, %v7838_v38 }
 0x68a   : > { %v7344_v61 = vunpack.i.h.bf16 %v7342_v23  ;;  %v7343_v29 = vunpack.i.l.bf16 %v7342_v23  ;;  %v7362_v31 = vpop.permute.xlu1 %7361 }
 0x68b   : > { %v7364_v37 = vunpack.i.h.bf16 %v7362_v31  ;;  %6660 = vmatprep.subr.bf16.mxu0 %v6659_v22  ;;  %v7363_v10 = vunpack.i.l.bf16 %v7362_v31  ;;  %vm4578_vm10 = vcmp.lt.s32.totalorder %v4574_v62, 16 }
 0x68c   : > { %v4792_v44 = vsel %vm4479_vm5, %v7344_v61, %v7338_v48  ;;  %v4790_v18 = vsel %vm4479_vm5, %v7343_v29, %v7333_v26 }
 0x68d   : > { %v6661_v59 = vpack.c.bf16 %v4792_v44, %v4790_v18  ;;  %v8876_v8 = vsel %vm4922_vm6, %v7364_v37, %v7358_v16  ;;  %v7352_v21 = vpop.permute.xlu0 %7351 }
 0x68e   : > { %v7354_v15 = vunpack.i.h.bf16 %v7352_v21  ;;  %v7353_v19 = vunpack.i.l.bf16 %v7352_v21  ;;  %v8878_v25 = vpop.permute.xlu1 %7371 }
 0x68f   : > { %6662 = vmatpush1.bf16.msra.mxu0 %v6661_v59 }
 0x690   : > { %v8881_v27 = vsel %vm4922_vm6, %v7363_v10, %v7353_v19  ;;  %v8884_v7 = vsel %vm4922_vm6, %v7353_v19, %v7354_v15 }
 0x691   : > { %v8891_v36 = vpop.permute.xlu0 %4784  ;;  %v6667_v42 = vpack.c.bf16 %v8887_v51, %v8884_v7  ;;  %v9362_v7 = vpack.c.bf16 %v8876_v8, %v8881_v27  ;;  %v9173_v51 = vld [vmem:[#allocation2 + $0x8] sm:$0xff]  ;;  %v7374_v8 = vunpack.i.h.bf16 %v8878_v25 }
 0x692   : > { %v7377_v60 = vpop.permute.xlu1 %7376 }
 0x693   : > { %v7378_v2 = vunpack.i.l.bf16 %v7377_v60 }
 0x695   : > { %v8895_v57 = vpop.permute.xlu0 %7366 }
 0x696   : > { %v7387_v45 = vpop.permute.xlu1 %7386 }
 0x697   : > { %v7388_v17 = vunpack.i.l.bf16 %v7387_v45  ;;  %v7389_v53 = vunpack.i.h.bf16 %v7387_v45 }
 0x699   : > { %v8898_v47 = vsel %vm4243_vm3, %v7388_v17, %v7378_v2  ;;  %v7382_v46 = vpop.permute.xlu0 %7381 }
 0x69a   : > { %v7383_v28 = vunpack.i.l.bf16 %v7382_v46  ;;  %v8900_v12 = vpop.permute.xlu1 %7396 }
 0x69c   : > { %v8903_v14 = vsel %vm4243_vm3, %v7389_v53, %v7383_v28 }
 0x69d   : > { %v8907_v20 = vpop.permute.xlu0 %7391 }
 0x69e   : > { %v8909_v5 = vpop.permute.xlu1 %7401 }
 0x6a1   : > { %v7407_v6 = vpop.permute.xlu0 %7406 }
 0x6a2   : > { %v7409_v33 = vunpack.i.h.bf16 %v7407_v6  ;;  %v7408_v9 = vunpack.i.l.bf16 %v7407_v6  ;;  %v7412_v48 = vpop.permute.xlu1 %7411 }
 0x6a3   : > { %v7414_v56 = vunpack.i.h.bf16 %v7412_v48  ;;  %v7413_v52 = vunpack.i.l.bf16 %v7412_v48 }
 0x6a4   : > { %v8912_v26 = vsel %vm3639_vm14, %v7408_v9, %v7409_v33 }
 0x6a5   : > { %v8915_v34 = vsel %vm3639_vm14, %v7413_v52, %v7414_v56  ;;  %v8929_v37 = vpop.permute.xlu0 %7426 }
 0x6a6   : > { %v7417_v1 = vpop.permute.xlu1 %7416 }
 0x6a7   : > { %v7419_v23 = vunpack.i.h.bf16 %v7417_v1  ;;  %v7418_v22 = vunpack.i.l.bf16 %v7417_v1 }
 0x6a9   : > { %v8920_v61 = vsel %vm3639_vm14, %v7419_v23, %v7413_v52  ;;  %v8923_v29 = vsel %vm3639_vm14, %v7418_v22, %v7408_v9  ;;  %v7437_v44 = vpop.permute.xlu0 %7436  ;;  %v7379_v22 = vunpack.i.h.bf16 %v7377_v60  ;;  %v9358_v9 = vunpack.i.l.bf16 %v8907_v20 }
 0x6aa   : > { %v8927_v16 = vpop.permute.xlu1 %7421  ;;  %v7439_v10 = vunpack.i.h.bf16 %v7437_v44  ;;  %v7438_v59 = vunpack.i.l.bf16 %v7437_v44  ;;  %v7384_v44 = vunpack.i.h.bf16 %v7382_v46  ;;  %v3878_v46 = vadd.s32 4294967289, %v7840_v39 }
 0x6ac   : > { %v8936_v53 = vsel %vm3521_vm7, %v7438_v59, %v7439_v10  ;;  %v7399_v10 = vunpack.i.h.bf16 %v8900_v12  ;;  %vm3880_vm9 = vcmp.ge.s32.totalorder %v3878_v46, 0 }
 0x6ae   : > { %v8931_v49 = vpop.permute.xlu1 %7431 }
 0x6b2   : > { %v8933_v18 = vpop.permute.xlu1 %5597 }
 0x6b6   : > { %v7442_v21 = vpop.permute.xlu1 %7441 }
 0x6b7   : > { %v7444_v19 = vunpack.i.h.bf16 %v7442_v21  ;;  %v7443_v45 = vunpack.i.l.bf16 %v7442_v21  ;;  %v9359_v21 = vunpack.i.l.bf16 %v8900_v12 }
 0x6b8   : > { %v3870_v15 = vpop.f32.mrb[10].mxu1 }
 0x6b9   : > { %v3872_v17 = vpop.f32.mrb[11].mxu1  ;;  %v8939_v6 = vsel %vm3521_vm7, %v7443_v45, %v7444_v19  ;;  %v7394_v19 = vunpack.i.h.bf16 %v8907_v20 }
 0x6ba   : > { %v7447_v33 = vpop.permute.xlu1 %7446 }
 0x6bb   : > { %v7449_v48 = vunpack.i.h.bf16 %v7447_v33  ;;  %v7448_v56 = vunpack.i.l.bf16 %v7447_v33  ;;  %v8956_v33 = vsel %vm4243_vm3, %v7378_v2, %v7379_v22  ;;  %v8973_v2 = vsel %vm4243_vm3, %v9359_v21, %v7399_v10 }
 0x6bd   : > { %v8944_v52 = vsel %vm3521_vm7, %v7448_v56, %v7438_v59  ;;  %v8947_v1 = vsel %vm3521_vm7, %v7449_v48, %v7443_v45  ;;  %v8959_v59 = vsel %vm4243_vm3, %v7383_v28, %v7384_v44  ;;  %v3877_v45 = vadd.s32 4294967289, %v7838_v38 }
 0x6be   : > { %v8968_v48 = vsel %vm4243_vm3, %v9358_v9, %v7394_v19  ;;  %v3890_v44 = vsel %vm3880_vm9, %v3872_v17, 0.0  ;;  %v4575_v19 = vadd.s32 7, %v7840_v39 }
 0x6bf   : > { %vm3879_vm8 = vcmp.ge.s32.totalorder %v3877_v45, 0  ;;  %v6679_v28 = vpack.c.bf16 %v8973_v2, %v8968_v48 }
 0x6c0   : > { %v3889_v56 = vsel %vm3879_vm8, %v3870_v15, 0.0  ;;  %vm4579_vm11 = vcmp.lt.s32.totalorder %v4575_v19, 16 }
 0x6cc   : > { %v4206_v22 = vpop.f32.mrb[10].mxu0 }
 0x6cd   : > { %v4213_v23 = vadd.f32 %v4206_v22, %v3889_v56  ;;  %v4208_v31 = vpop.f32.mrb[11].mxu0 }
 0x6ce   : > { %v4214_v58 = vadd.f32 %v4208_v31, %v3890_v44 }
 0x6d3   : > { %v4567_v60 = vpop.f32.mrb[12].mxu1 }
 0x6d4   : > { %v4586_v10 = vsel %vm4578_vm10, %v4567_v60, 0.0  ;;  %v4569_v9 = vpop.f32.mrb[13].mxu1 }
 0x6d5   : > { %v4588_v45 = vadd.f32 %v4586_v10, %v4213_v23  ;;  %v4587_v21 = vsel %vm4579_vm11, %v4569_v9, 0.0 }
 0x6d6   : > { %v4589_v0 = vadd.f32 %v4587_v21, %v4214_v58 }
 0x6d7   : > { %v4597_v46 = vadd.f32 %v8768_v32, %v4588_v45 }
 0x6d8   : > { %v4598_v15 = vadd.f32 %v8768_v32, %v4589_v0 }
 0x6d9   : > { %v4601_v17 = vrot.slane %v4597_v46, 4 }
 0x6da   : > { %v4602_v56 = vrot.slane %v4598_v15, 4 }
 0x6db   : > { %4605 = vst [vmem:[#allocation3 + $0x40] ss:$-12 sps:$4 sm:$0xff] %v4601_v17   ;;  %v7424_v17 = vunpack.i.h.bf16 %v8927_v16 }
 0x6dc   : > { %4606 = vst [vmem:[#allocation3 + $0x48] ss:$-12 sps:$4 sm:$0xff] %v4602_v56   ;;  %v7423_v56 = vunpack.i.l.bf16 %v8927_v16 }
 0x6de   : > { %v5308_v16 = vsel %vm4118_vm4, %v7423_v56, %v7424_v17  ;;  %v6471_v17 = vld [vmem:[%s9352_s4 + $0x20] sm:$0xff] }
 0x6e2   : > { %v4617_v22 = vld [vmem:[#allocation3 + $0x40] sm:$0xf]  ;;  %v8981_v31 = vld [vmem:[#allocation3 + $0x30] sm:$0xff] }
 0x6e3   : > { %v4658_v62 = vmul.f32 %v8867_v30, %v4617_v22  ;;  %v8984_v44 = vld [vmem:[#allocation3 + $0x38] sm:$0xff]  ;;  %v4656_v23 = vmul.f32 %v8861_v4, %v8981_v31  ;;  %v4618_v9 = vld [vmem:[#allocation3 + $0x48] sm:$0xf]  ;;  %v7433_v22 = vunpack.i.l.bf16 %v8931_v49 }
 0x6e4   : > { %v4657_v58 = vmul.f32 %v8861_v4, %v8984_v44  ;;  %v4659_v32 = vmul.f32 %v8867_v30, %v4618_v9  ;;  %v7434_v30 = vunpack.i.h.bf16 %v8931_v49 }
 0x6e5   : > { %v4697_v0 = vadd.f32 %v8863_v40, %v4656_v23  ;;  %v4699_v21 = vadd.f32 %v8865_v13, %v4658_v62  ;;  %v7428_v62 = vunpack.i.l.bf16 %v8929_v37  ;;  %v5307_v9 = vsel %vm4118_vm4, %v7433_v22, %v7423_v56  ;;  %v6051_v56 = vld [vmem:[%s9354_s6 + $0x20] sm:$0xff]  ;;  %v6002_v22 = vld [vmem:[%s9353_s5 + $0x18] sm:$0xff] }
 0x6e6   : > { %v4698_v60 = vadd.f32 %v8863_v40, %v4657_v58  ;;  %v4700_v19 = vadd.f32 %v8865_v13, %v4659_v32  ;;  %v7429_v13 = vunpack.i.h.bf16 %v8929_v37  ;;  %v6448_v37 = vld [vmem:[%s9349_s1 + $0x140] sm:$0xff] }
 0x6e7   : > { %v4707_v10 = vmax.f32 %v4697_v0, 0.0  ;;  %v4709_v45 = vmax.f32 %v4699_v21, 0.0  ;;  %v5309_v49 = vsel %vm4118_vm4, %v7434_v30, %v7428_v62  ;;  %v6108_v30 = vld [vmem:[%s9356_s8] sm:$0x3f] }
 0x6e8   : > { %v4708_v46 = vmax.f32 %v4698_v60, 0.0  ;;  %v4710_v15 = vmax.f32 %v4700_v19, 0.0  ;;  %v5310_v58 = vsel %vm4118_vm4, %v7428_v62, %v7429_v13  ;;  %v6693_v21 = vpack.c.bf16 %v5309_v49, %v5307_v9  ;;  %v7452_v13 = vpop.permute.xlu0 %7451  ;;  %v6004_v62 = vld [vmem:[%s9353_s5 + $0x28] sm:$0xf]  ;;  %v7467_v49 = vpop.permute.xlu1 %7466 }
 0x6e9   : > { %4717 = vst [vmem:[#allocation2 + $0xa0] sm:$0xff] %v4707_v10  ;;  %4719 = vst [vmem:[#allocation2 + $0xd0] sm:$0xf] %v4709_v45  ;;  %v7475_v4 = vpack.i.bf16 %v4707_v10, %v8612_v41  ;;  %v6689_v23 = vpack.c.bf16 %v4707_v10, %v8795_v43  ;;  %v6691_v0 = vpack.c.bf16 %v5310_v58, %v5308_v16 }
 0x6ea   : > { %4718 = vst [vmem:[#allocation2 + $0xa8] sm:$0xff] %v4708_v46  ;;  %v6687_v40 = vpack.c.bf16 %v4708_v46, %v8797_v55  ;;  %4720 = vst [vmem:[#allocation2 + $0xd8] sm:$0xf] %v4710_v15  ;;  %v7480_v19 = vpack.i.bf16 %v4707_v10, %v8795_v43  ;;  %v7540_v43 = vpack.i.bf16 %v8612_v41, %v4708_v46 }
 0x6eb   : > { %7476 = vrot.lane.b32.xlu1 %v7475_v4, %s7645_s16 }
 0x6ec   : > { %6688 = vmatprep.subr.bf16.mxu1 %v6687_v40  ;;  %v6050_v40 = vld [vmem:[%s9354_s6 + $0x18] sm:$0xff]  ;;  %v9111_v16 = vpop.permute.xlu0 %7456 }
 0x6ed   : > { %6690 = vmatpush1.bf16.msra.mxu1 %v6689_v23  ;;  %v6052_v23 = vld [vmem:[%s9354_s6 + $0x28] sm:$0xf] }
 0x6ee   : > { %6449 = vmatprep.subr.msk.mxu1 %vm430_vm0, %v4710_v15  ;;  %v7490_v15 = vpack.i.bf16 %v4708_v46, %v4707_v10  ;;  %v6001_v10 = vld [vmem:[%s9353_s5 + $0x10] sm:$0xff] }
 0x6ef   : > { %7486 = vrot.lane.b32.xlu1 %v7475_v4, %s7643_s23 }
 0x6f0   : > { %v4735_v32 = vld [vmem:[#allocation2 + $0xd0] sm:$0xf]  ;;  %v7462_v9 = vpop.permute.xlu0 %7461 }
 0x6f1   : > { %4786 = vrot.lane.b32.xlu0 %v4735_v32, %s7644_s17  ;;  %6450 = vmatpush1.msk.msra.mxu1 %vm430_vm0, %v4709_v45  ;;  %v4742_v60 = vld [vmem:[#allocation2 + $0xd8] sm:$0xf]  ;;  %v5549_v45 = vld [vmem:[#allocation2 + $0xd0] sm:$0xf] }
 0x6f2   : > { %6692 = vmatprep.subr.bf16.mxu1 %v6691_v0  ;;  %6451 = vmatmul.mubr.msk.f32.vlgmr.msra.gmra.mrb[14].mxu1 %vm4808_vm13, %v6448_v37  ;;  %v7464_v0 = vunpack.i.h.bf16 %v7462_v9 }
 0x6f3   : > { %6694 = vmatpush1.bf16.msra.mxu1 %v6693_v21  ;;  %4788 = vrot.lane.b32.xlu1 %v4742_v60, %s7644_s17  ;;  %v7463_v21 = vunpack.i.l.bf16 %v7462_v9 }
 0x6f4   : > { %5396 = vmatprep.mubr.f32.mxu1 %v8612_v41  ;;  %v5031_v41 = vld [vmem:[#allocation2 + $0xd8] sm:$0xf]  ;;  %v9115_v37 = vpop.permute.xlu0 %7471 }
 0x6f5   : > { %4920 = vrot.lane.b32.xlu0 %v4735_v32, %s7645_s16 }
 0x6f7   : > { %7496 = vrot.lane.b32.xlu1 %v8845_v11, %s7637_s14  ;;  %v7535_v11 = vpack.i.bf16 %v4708_v46, %v8797_v55  ;;  %v5550_v55 = vld [vmem:[#allocation2 + $0xd8] sm:$0xf]  ;;  %v6049_v46 = vld [vmem:[%s9354_s6 + $0x10] sm:$0xff] }
 0x6f9   : > { %7481 = vrot.lane.b32.xlu0 %v7480_v19, %s7638_s22  ;;  %v7454_v19 = vunpack.i.h.bf16 %v7452_v13 }
 0x6fb   : > { %7506 = vrot.lane.b32.xlu1 %v8784_v54, %s7637_s14 }
 0x6fd   : > { %5593 = vrot.lane.b32.xlu0 %v5549_v45, %s7638_s22 }
 0x6ff   : > { %5305 = vrot.lane.b32.xlu1 %v4735_v32, %s7643_s23 }
 0x701   : > { %7491 = vrot.lane.b32.xlu0 %v7490_v15, %s7644_s17 }
 0x703   : > { %7521 = vrot.lane.b32.xlu1 %v8784_v54, %s7642_s28 }
 0x705   : > { %7501 = vrot.lane.b32.xlu0 %v7475_v4, %s7637_s14  ;;  %v6000_v4 = vld [vmem:[%s9353_s5 + $0x8] sm:$0xff] }
 0x707   : > { %7531 = vrot.lane.b32.xlu1 %v8805_v24, %s7637_s14 }
 0x709   : > { %7511 = vrot.lane.b32.xlu0 %v8805_v24, %s7643_s23  ;;  %v5999_v24 = vld [vmem:[%s9353_s5] sm:$0xff] }
 0x70b   : > { %7541 = vrot.lane.b32.xlu1 %v7540_v43, %s7638_s22 }
 0x70d   : > { %7516 = vrot.lane.b32.xlu0 %v8784_v54, %s7642_s28 }
 0x70f   : > { %7546 = vrot.lane.b32.xlu1 %v8784_v54, %s7646_s18 }
 0x711   : > { %7526 = vrot.lane.b32.xlu0 %v8814_v50, %s7642_s28 }
 0x713   : > { %7556 = vrot.lane.b32.xlu1 %v8814_v50, %s7646_s18  ;;  %v6047_v50 = vld [vmem:[%s9354_s6] sm:$0xff] }
 0x715   : > { %7536 = vrot.lane.b32.xlu0 %v7535_v11, %s7641_s25 }
 0x717   : > { %7566 = vrot.lane.b32.xlu1 %v8784_v54, %s7642_s28 }
 0x719   : > { %5075 = vrot.lane.b32.xlu0 %v5031_v41, %s7641_s25 }
 0x71b   : > { %7571 = vrot.lane.b32.xlu1 %v8784_v54, %s7646_s18 }
 0x71d   : > { %5723 = vrot.lane.b32.xlu0 %v4735_v32, %s7637_s14  ;;  %v7453_v32 = vunpack.i.l.bf16 %v7452_v13  ;;  %v7468_v13 = vunpack.i.l.bf16 %v7467_v49 }
 0x71f   : > { %7596 = vrot.lane.b32.xlu1 %v7535_v11, %s7646_s18 }
 0x721   : > { %7551 = vrot.lane.b32.xlu0 %v8784_v54, %s7646_s18 }
 0x723   : > { %5429 = vrot.lane.b32.xlu1 %v5031_v41, %s7642_s28 }
 0x725   : > { %5595 = vrot.lane.b32.xlu0 %v5550_v55, %s7638_s22  ;;  %v5312_v55 = vsel %vm4118_vm4, %v7463_v21, %v7464_v0 }
 0x727   : > { %5847 = vrot.lane.b32.xlu1 %v5031_v41, %s7646_s18 }
 0x729   : > { %7561 = vrot.lane.b32.xlu0 %v8784_v54, %s7642_s28 }
 0x72b   : > { %6007 = vperm.xlu1 %6849, %v5999_v24  }
 0x72d   : > { %7576 = vrot.lane.b32.xlu0 %v8784_v54, %s7646_s18  ;;  %v6003_v54 = vld [vmem:[%s9353_s5 + $0x20] sm:$0xff] }
 0x72f   : > { %6055 = vperm.xlu1 %6849, %v6047_v50  }
 0x731   : > { %7581 = vrot.lane.b32.xlu0 %v7535_v11, %s7642_s28  ;;  %v5311_v11 = vsel %vm4118_vm4, %v7453_v32, %v7463_v21 }
 0x733   : > { %6017 = vperm.xlu1 %6849, %v6001_v10  }
 0x735   : > { %7586 = vrot.lane.b32.xlu0 %v8824_v35, %s7642_s28 }
 0x737   : > { %6065 = vperm.xlu1 %6849, %v6049_v46  }
 0x739   : > { %7591 = vrot.lane.b32.xlu0 %v8824_v35, %s7646_s18  ;;  %v6048_v35 = vld [vmem:[%s9354_s6 + $0x8] sm:$0xff] }
 0x73b   : > { %6027 = vperm.xlu1 %6849, %v6003_v54  }
 0x73d   : > { %5972 = vperm.xlu0 %6848, %v6471_v17  }
 0x73f   : > { %6075 = vperm.xlu1 %6849, %v6051_v56  }
 0x741   : > { %6012 = vperm.xlu0 %6848, %v6000_v4  }
 0x743   : > { %6111 = vperm.xlu1 %6849, %v6108_v30  }
 0x745   : > { %6060 = vperm.xlu0 %6848, %v6048_v35  }
 0x749   : > { %6022 = vperm.xlu0 %6848, %v6002_v22   ;;  %v7348_v22 = vunpack.i.l.bf16 %v8869_v63 }
 0x74b   : > { %v4794_v0 = vsel %vm4479_vm5, %v7348_v22, %v7468_v13 }
 0x74d   : > { %6070 = vperm.xlu0 %6848, %v6050_v40   ;;  %v7469_v40 = vunpack.i.h.bf16 %v7467_v49 }
 0x751   : > { %6032 = vperm.xlu0 %6848, %v6004_v62  }
 0x755   : > { %6080 = vperm.xlu0 %6848, %v6052_v23   ;;  %v7349_v23 = vunpack.i.h.bf16 %v8869_v63 }
 0x75d   : > { %v9113_v58 = vpop.permute.xlu1 %7476 }
 0x75e   : > { %v7479_v49 = vunpack.i.h.bf16 %v9113_v58 }
 0x761   : > { %v7487_v60 = vpop.permute.xlu1 %7486 }
 0x762   : > { %v7489_v45 = vunpack.i.h.bf16 %v7487_v60  ;;  %v7488_v15 = vunpack.i.l.bf16 %v7487_v60  ;;  %v4795_v60 = vsel %vm4479_vm5, %v7468_v13, %v7469_v40 }
 0x763   : > { %v4787_v43 = vpop.permute.xlu0 %4786 }
 0x764   : > { %v5313_v41 = vsel %vm4118_vm4, %v7454_v19, %v7488_v15  ;;  %v5314_v24 = vsel %vm4118_vm4, %v7488_v15, %v7489_v45 }
 0x765   : > { %v6697_v50 = vpack.c.bf16 %v5313_v41, %v5311_v11  ;;  %v4789_v10 = vpop.permute.xlu1 %4788  ;;  %v6695_v46 = vpack.c.bf16 %v5314_v24, %v5312_v55  ;;  %v7478_v55 = vunpack.i.l.bf16 %v9113_v58  ;;  %v7459_v24 = vunpack.i.h.bf16 %v9111_v16 }
 0x766   : > { %v4799_v63 = vsel %vm4479_vm5, %v4787_v43, %v4789_v10  ;;  %v4798_v58 = vsel %vm4479_vm5, %v8891_v36, %v4787_v43  ;;  %v6436_v10 = vld [vmem:[%s9349_s1 + $0x138] sm:$0xff] }
 0x767   : > { %v9121_v54 = vpop.permute.xlu0 %4920  ;;  %6696 = vmatprep.subr.bf16.mxu1 %v6695_v46 }
 0x768   : > { %6698 = vmatpush1.bf16.msra.mxu1 %v6697_v50  ;;  %v7458_v50 = vunpack.i.l.bf16 %v9111_v16  ;;  %v4930_v16 = vsel %vm4922_vm6, %v7478_v55, %v7479_v49  ;;  %v7373_v49 = vunpack.i.l.bf16 %v8878_v25 }
 0x769   : > { %v9123_v17 = vpop.permute.xlu1 %7496 }
 0x76a   : > { %v4928_v36 = vsel %vm4922_vm6, %v7458_v50, %v7459_v24 }
 0x76b   : > { %v9125_v56 = vpop.permute.xlu0 %7481 }
 0x76c   : > { %v7484_v2 = vunpack.i.h.bf16 %v9125_v56 }
 0x76d   : > { %v9127_v4 = vpop.permute.xlu1 %7506 }
 0x76f   : > { %v9129_v30 = vpop.permute.xlu0 %5593 }
 0x771   : > { %v5306_v35 = vpop.permute.xlu1 %5305 }
 0x773   : > { %v7492_v62 = vpop.permute.xlu0 %7491 }
 0x774   : > { %v7494_v9 = vunpack.i.h.bf16 %v7492_v62  ;;  %v7493_v32 = vunpack.i.l.bf16 %v7492_v62 }
 0x775   : > { %v7522_v41 = vpop.permute.xlu1 %7521 }
 0x776   : > { %v4796_v21 = vsel %vm4479_vm5, %v7349_v23, %v7493_v32  ;;  %v4797_v19 = vsel %vm4479_vm5, %v7493_v32, %v7494_v9  ;;  %v7524_v13 = vunpack.i.h.bf16 %v7522_v41  ;;  %v7523_v62 = vunpack.i.l.bf16 %v7522_v41 }
 0x777   : > { %v6665_v45 = vpack.c.bf16 %v4796_v21, %v4794_v0  ;;  %v9137_v15 = vpop.permute.xlu0 %7501  ;;  %v6663_v11 = vpack.c.bf16 %v4797_v19, %v4795_v60  ;;  %v7369_v23 = vunpack.i.h.bf16 %v8895_v57  ;;  %v7368_v32 = vunpack.i.l.bf16 %v8895_v57  ;;  %v6447_v57 = vld [vmem:[%s9349_s1 + $0x128] sm:$0xff] }
 0x779   : > { %6664 = vmatprep.subr.bf16.mxu0 %v6663_v11  ;;  %v9151_v9 = vpop.permute.xlu1 %7531  ;;  %v4929_v60 = vsel %vm4922_vm6, %v7369_v23, %v7478_v55  ;;  %v5438_v11 = vsel %vm3999_vm12, %v7523_v62, %v7524_v13 }
 0x77a   : > { %6666 = vmatpush1.bf16.msra.mxu0 %v6665_v45 }
 0x77b   : > { %v7512_v46 = vpop.permute.xlu0 %7511  ;;  %6437 = vmatprep.subr.msk.mxu0 %vm430_vm0, %v4799_v63 }
 0x77c   : > { %v7514_v22 = vunpack.i.h.bf16 %v7512_v46  ;;  %v7513_v40 = vunpack.i.l.bf16 %v7512_v46 }
 0x77d   : > { %v7542_v24 = vpop.permute.xlu1 %7541 }
 0x77e   : > { %6438 = vmatpush1.msk.msra.mxu0 %vm430_vm0, %v4798_v58  ;;  %v5316_v0 = vsel %vm4118_vm4, %v7513_v40, %v5306_v35  ;;  %v5315_v21 = vsel %vm4118_vm4, %v7514_v22, %v7513_v40  ;;  %v6671_v35 = vpack.c.bf16 %v4930_v16, %v4928_v36  ;;  %v7404_v36 = vunpack.i.h.bf16 %v8909_v5 }
 0x77f   : > { %v7517_v19 = vpop.permute.xlu0 %7516  ;;  %6668 = vmatprep.subr.bf16.mxu0 %v6667_v42  ;;  %6452 = vmatprep.subr.msk.mxu1 %vm430_vm0, %v5316_v0  ;;  %v4927_v42 = vsel %vm4922_vm6, %v7368_v32, %v7458_v50  ;;  %v4932_v50 = vsel %vm4922_vm6, %v7373_v49, %v9121_v54  ;;  %v4931_v32 = vsel %vm4922_vm6, %v7374_v8, %v7373_v49  ;;  %v7503_v8 = vunpack.i.l.bf16 %v9137_v15 }
 0x780   : > { %v7519_v43 = vunpack.i.h.bf16 %v7517_v19  ;;  %v7518_v45 = vunpack.i.l.bf16 %v7517_v19  ;;  %6439 = vmatmul.mubr.msk.f32.vlgmr.msra.gmra.mrb[12].mxu0 %vm4808_vm13, %v6436_v10  ;;  %6453 = vmatpush1.msk.msra.mxu1 %vm430_vm0, %v5315_v21  ;;  %v6673_v55 = vpack.c.bf16 %v4929_v60, %v4927_v42  ;;  %v6435_v10 = vld [vmem:[%s9349_s1 + $0x120] sm:$0xff]  ;;  %v9364_v21 = vunpack.i.l.bf16 %v8907_v20 }
 0x781   : > { %6670 = vmatpush1.bf16.msra.mxu0 %v9362_v7  ;;  %5012 = vmatprep.mubr.f32.mxu0 %v9173_v51  ;;  %v9192_v54 = vpop.permute.xlu1 %7546  ;;  %v9365_v19 = vpack.c.bf16 %v8959_v59, %v8956_v33  ;;  %v7544_v20 = vunpack.i.h.bf16 %v7542_v24  ;;  %v7543_v33 = vunpack.i.l.bf16 %v7542_v24  ;;  %v7474_v59 = vunpack.i.h.bf16 %v9115_v37 }
 0x782   : > { %6672 = vmatprep.subr.bf16.mxu0 %v6671_v35  ;;  %v5436_v41 = vsel %vm3999_vm12, %v7518_v45, %v7519_v43  ;;  %6454 = vmatmul.mubr.msk.f32.vlgmr.msra.gmra.mrb[14].mxu1 %vm4808_vm13, %v6447_v57  ;;  %v7403_v57 = vunpack.i.l.bf16 %v8909_v5  ;;  %v7473_v35 = vunpack.i.l.bf16 %v9115_v37  ;;  %v9367_v49 = vpack.c.bf16 %v8915_v34, %v8912_v26 }
 0x783   : > { %v7527_v63 = vpop.permute.xlu0 %7526  ;;  %v6699_v46 = vpack.c.bf16 %v5438_v11, %v5436_v41  ;;  %5524 = vmatprep.mubr.f32.mxu1 %v9173_v51  ;;  %v5606_v48 = vsel %vm3639_vm14, %v7543_v33, %v7544_v20  ;;  %v5605_v41 = vsel %vm3639_vm14, %v7484_v2, %v7543_v33  ;;  %v7548_v20 = vunpack.i.l.bf16 %v9192_v54 }
 0x784   : > { %v7529_v27 = vunpack.i.h.bf16 %v7527_v63  ;;  %v7528_v22 = vunpack.i.l.bf16 %v7527_v63  ;;  %v5604_v42 = vsel %vm3639_vm14, %v7473_v35, %v7474_v59 }
 0x785   : > { %6674 = vmatpush1.bf16.msra.mxu0 %v6673_v55  ;;  %6700 = vmatprep.subr.bf16.mxu1 %v6699_v46  ;;  %v9215_v11 = vpop.permute.xlu1 %7556  ;;  %v6711_v55 = vpack.c.bf16 %v5606_v48, %v5604_v42  ;;  %v7504_v46 = vunpack.i.h.bf16 %v9137_v15 }
 0x786   : > { %v5437_v40 = vsel %vm3999_vm12, %v7529_v27, %v7523_v62  ;;  %v5435_v13 = vsel %vm3999_vm12, %v7528_v22, %v7518_v45  ;;  %6440 = vmatprep.subr.msk.mxu0 %vm430_vm0, %v4932_v50  ;;  %v9363_v62 = vunpack.i.l.bf16 %v8900_v12  ;;  %v9366_v12 = vpack.c.bf16 %v8903_v14, %v8898_v47  ;;  %v6443_v14 = vld [vmem:[%s9349_s1 + $0x150] sm:$0xff] }
 0x787   : > { %v6701_v23 = vpack.c.bf16 %v5437_v40, %v5435_v13  ;;  %v7537_v58 = vpop.permute.xlu0 %7536  ;;  %v5090_v47 = vsel %vm4243_vm3, %v7403_v57, %v7404_v36  ;;  %v7509_v40 = vunpack.i.h.bf16 %v9127_v4  ;;  %v7508_v13 = vunpack.i.l.bf16 %v9127_v4 }
 0x788   : > { %v7539_v25 = vunpack.i.h.bf16 %v7537_v58  ;;  %v7538_v16 = vunpack.i.l.bf16 %v7537_v58  ;;  %v6460_v58 = vld [vmem:[%s9349_s1 + $0x148] sm:$0xff]  ;;  %v7558_v33 = vunpack.i.l.bf16 %v9215_v11 }
 0x789   : > { %6441 = vmatpush1.msk.msra.mxu0 %vm430_vm0, %v4931_v32  ;;  %6702 = vmatpush1.bf16.msra.mxu1 %v6701_v23  ;;  %v9237_v63 = vpop.permute.xlu1 %7566  ;;  %v5731_v4 = vsel %vm3521_vm7, %v7509_v40, %v7503_v8 }
 0x78a   : > { %v5087_v0 = vsel %vm4243_vm3, %v7539_v25, %v9363_v62  ;;  %v5085_v60 = vsel %vm4243_vm3, %v7538_v16, %v9364_v21  ;;  %6676 = vmatprep.subr.bf16.mxu0 %v9365_v19  ;;  %6442 = vmatmul.mubr.msk.f32.vlgmr.msra.gmra.mrb[12].mxu0 %vm4808_vm13, %v6435_v10  ;;  %v7569_v26 = vunpack.i.h.bf16 %v9237_v63  ;;  %v7568_v34 = vunpack.i.l.bf16 %v9237_v63 }
 0x78b   : > { %v6681_v43 = vpack.c.bf16 %v5087_v0, %v5085_v60  ;;  %6678 = vmatpush1.bf16.msra.mxu0 %v9366_v12  ;;  %v5076_v45 = vpop.permute.xlu0 %5075  ;;  %5170 = vmatprep.mubr.f32.mxu0 %v9173_v51  ;;  %v7533_v0 = vunpack.i.l.bf16 %v9151_v9  ;;  %v9369_v21 = vpack.c.bf16 %v8939_v6, %v8936_v53  ;;  %v7549_v19 = vunpack.i.h.bf16 %v9192_v54 }
 0x78c   : > { %6680 = vmatprep.subr.bf16.mxu0 %v6679_v28  ;;  %v7483_v28 = vunpack.i.l.bf16 %v9125_v56  ;;  %v5089_v37 = vsel %vm4243_vm3, %v5076_v45, %v7403_v57  ;;  %v9368_v56 = vpack.c.bf16 %v8920_v61, %v8923_v29  ;;  %v7499_v61 = vunpack.i.h.bf16 %v9123_v17 }
 0x78d   : > { %v7498_v29 = vunpack.i.l.bf16 %v9123_v17  ;;  %v9255_v15 = vpop.permute.xlu1 %7571  ;;  %v5442_v16 = vsel %vm3999_vm12, %v7568_v34, %v7569_v26  ;;  %v7534_v6 = vunpack.i.h.bf16 %v9151_v9 }
 0x78e   : > { %v5603_v24 = vsel %vm3639_vm14, %v7483_v28, %v7473_v35  ;;  %v7574_v59 = vunpack.i.h.bf16 %v9255_v15  ;;  %v7573_v48 = vunpack.i.l.bf16 %v9255_v15 }
 0x78f   : > { %6682 = vmatpush1.bf16.msra.mxu0 %v6681_v43  ;;  %v9217_v5 = vpop.permute.xlu0 %5723  ;;  %v6713_v27 = vpack.c.bf16 %v5605_v41, %v5603_v24  ;;  %v5730_v32 = vsel %vm3521_vm7, %v7498_v29, %v7499_v61  ;;  %v5729_v62 = vsel %vm3521_vm7, %v7508_v13, %v7498_v29  ;;  %v9370_v43 = vpack.c.bf16 %v8947_v1, %v8944_v52 }
 0x790   : > { %6444 = vmatprep.subr.msk.mxu0 %vm430_vm0, %v5090_v47  ;;  %v6721_v53 = vpack.c.bf16 %v5731_v4, %v5729_v62  ;;  %v7559_v52 = vunpack.i.h.bf16 %v9215_v11  ;;  %v5734_v1 = vsel %vm3521_vm7, %v7533_v0, %v9217_v5  ;;  %v5733_v42 = vsel %vm3521_vm7, %v7534_v6, %v7533_v0  ;;  %v6459_v5 = vld [vmem:[%s9349_s1 + $0x130] sm:$0xff] }
 0x791   : > { %v7597_v35 = vpop.permute.xlu1 %7596 }
 0x792   : > { %v7599_v41 = vunpack.i.h.bf16 %v7597_v35  ;;  %v7598_v63 = vunpack.i.l.bf16 %v7597_v35 }
 0x793   : > { %6445 = vmatpush1.msk.msra.mxu0 %vm430_vm0, %v5089_v37  ;;  %v9229_v7 = vpop.permute.xlu0 %7551 }
 0x794   : > { %6446 = vmatmul.mubr.msk.f32.vlgmr.msra.gmra.mrb[12].mxu0 %vm4808_vm13, %v6443_v14  ;;  %6708 = vmatprep.subr.bf16.mxu0 %v9367_v49  ;;  %v7554_v36 = vunpack.i.h.bf16 %v9229_v7  ;;  %v7553_v57 = vunpack.i.l.bf16 %v9229_v7 }
 0x795   : > { %6710 = vmatpush1.bf16.msra.mxu0 %v9368_v56  ;;  %5688 = vmatprep.mubr.f32.mxu0 %v9173_v51 }
 0x796   : > { %6712 = vmatprep.subr.bf16.mxu0 %v6711_v55 }
 0x797   : > { %v5596_v22 = vpop.permute.xlu0 %5595 }
 0x798   : > { %v5608_v50 = vsel %vm3639_vm14, %v5596_v22, %v8933_v18  ;;  %v5732_v18 = vsel %vm3521_vm7, %v7503_v8, %v7504_v46  ;;  %v5607_v10 = vsel %vm3639_vm14, %v9129_v30, %v5596_v22  ;;  %vm5853_vm14 = vcmask 842752  }
 0x799   : > { %6714 = vmatpush1.bf16.msra.mxu0 %v6713_v27  ;;  %v6719_v30 = vpack.c.bf16 %v5732_v18, %v5730_v32  ;;  %v5855_v54 = vsel %vm5853_vm14, %v7548_v20, %v7549_v19  ;;  %v5857_v2 = vsel %vm5853_vm14, %v7553_v57, %v7554_v36  ;;  %v5856_v28 = vsel %vm5853_vm14, %v7559_v52, %v7553_v57  ;;  %v5430_v27 = vpop.permute.xlu1 %5429  ;;  %v6467_v32 = vld [vmem:[%s9349_s1 + $0x160] sm:$0xff] }
 0x79a   : > { %6461 = vmatprep.subr.msk.mxu0 %vm430_vm0, %v5608_v50  ;;  %v5854_v11 = vsel %vm5853_vm14, %v7558_v33, %v7548_v20  ;;  %v5859_v49 = vsel %vm5853_vm14, %v7573_v48, %v7574_v59  ;;  %v6723_v46 = vpack.c.bf16 %v5857_v2, %v5855_v54 }
 0x79b   : > { %v7562_v23 = vpop.permute.xlu0 %7561  ;;  %v6725_v8 = vpack.c.bf16 %v5856_v28, %v5854_v11 }
 0x79c   : > { %v7564_v17 = vunpack.i.h.bf16 %v7562_v23  ;;  %v7563_v25 = vunpack.i.l.bf16 %v7562_v23 }
 0x79d   : > { %6462 = vmatpush1.msk.msra.mxu0 %vm430_vm0, %v5607_v10 }
 0x79e   : > { %6716 = vmatprep.subr.bf16.mxu0 %v9369_v21  ;;  %6463 = vmatmul.mubr.msk.f32.vlgmr.msra.gmra.mrb[14].mxu0 %vm4808_vm13, %v6460_v58  ;;  %v5440_v60 = vsel %vm3999_vm12, %v7563_v25, %v7564_v17  ;;  %v6455_v58 = vld [vmem:[%s9349_s1 + $0x158] sm:$0xff] }
 0x79f   : > { %6718 = vmatpush1.bf16.msra.mxu0 %v9370_v43  ;;  %v7577_v12 = vpop.permute.xlu0 %7576  ;;  %v6703_v45 = vpack.c.bf16 %v5442_v16, %v5440_v60  ;;  %5814 = vmatprep.mubr.f32.mxu0 %v9173_v51  ;;  %v5988_v60 = vld [vmem:[#allocation3 + $0x8] sm:$0xff] }
 0x7a0   : > { %6720 = vmatprep.subr.bf16.mxu0 %v6719_v30  ;;  %v7579_v47 = vunpack.i.h.bf16 %v7577_v12  ;;  %v7578_v14 = vunpack.i.l.bf16 %v7577_v12  ;;  %v5987_v30 = vld [vmem:[#allocation3] sm:$0xff]  ;;  %v5989_v12 = vld [vmem:[#allocation3 + $0x10] sm:$0xff] }
 0x7a1   : > { %6704 = vmatprep.subr.bf16.mxu1 %v6703_v45  ;;  %v5990_v45 = vld [vmem:[#allocation3 + $0x18] sm:$0xff] }
 0x7a2   : > { %v5861_v55 = vsel %vm5853_vm14, %v7578_v14, %v7579_v47  ;;  %v5860_v50 = vsel %vm5853_vm14, %v7599_v41, %v7578_v14 }
 0x7a3   : > { %6722 = vmatpush1.bf16.msra.mxu0 %v6721_v53  ;;  %v7582_v9 = vpop.permute.xlu0 %7581  ;;  %v6727_v40 = vpack.c.bf16 %v5861_v55, %v5859_v49 }
 0x7a4   : > { %v7584_v37 = vunpack.i.h.bf16 %v7582_v9  ;;  %v7583_v7 = vunpack.i.l.bf16 %v7582_v9  ;;  %6464 = vmatprep.subr.msk.mxu0 %vm430_vm0, %v5734_v1  ;;  %v5992_v9 = vld [vmem:[#allocation3 + $0x28] sm:$0xff] }
 0x7a6   : > { %v5441_v56 = vsel %vm3999_vm12, %v7584_v37, %v7568_v34  ;;  %v5439_v24 = vsel %vm3999_vm12, %v7583_v7, %v7563_v25  ;;  %v5858_v34 = vsel %vm5853_vm14, %v7598_v63, %v7573_v48  ;;  %v5848_v25 = vpop.permute.xlu1 %5847  ;;  %v5991_v48 = vld [vmem:[#allocation3 + $0x20] sm:$0xff] }
 0x7a7   : > { %v6705_v22 = vpack.c.bf16 %v5441_v56, %v5439_v24  ;;  %6465 = vmatpush1.msk.msra.mxu0 %vm430_vm0, %v5733_v42  ;;  %v7587_v26 = vpop.permute.xlu0 %7586  ;;  %v6729_v15 = vpack.c.bf16 %v5860_v50, %v5858_v34 }
 0x7a8   : > { %v7589_v61 = vunpack.i.h.bf16 %v7587_v26  ;;  %v7588_v29 = vunpack.i.l.bf16 %v7587_v26  ;;  %6724 = vmatprep.subr.bf16.mxu0 %v6723_v46  ;;  %6466 = vmatmul.mubr.msk.f32.vlgmr.msra.gmra.mrb[14].mxu0 %vm4808_vm13, %v6459_v5 }
 0x7a9   : > { %6726 = vmatpush1.bf16.msra.mxu0 %v6725_v8  ;;  %6706 = vmatpush1.bf16.msra.mxu1 %v6705_v22 }
 0x7aa   : > { %6728 = vmatprep.subr.bf16.mxu0 %v6727_v40  ;;  %v5444_v13 = vsel %vm3999_vm12, %v7588_v29, %v7589_v61  ;;  %5943 = vmatprep.mubr.f32.mxu0 %v9173_v51  ;;  %v5443_v17 = vsel %vm3999_vm12, %v5430_v27, %v7588_v29  ;;  %v6008_v62 = vpop.permute.xlu1 %6007  ;;  %v5179_v29 = vadd.s32 4294967287, %v7838_v38  ;;  %v5953_v40 = vadd.s32 9, %v7840_v39 }
 0x7ab   : > { %v7592_v23 = vpop.permute.xlu0 %7591  ;;  %6456 = vmatprep.subr.msk.mxu1 %vm430_vm0, %v5444_v13  ;;  %v6035_v36 = vmul.f32 %v6008_v62, %v5987_v30  ;;  %v6036_v57 = vmul.f32 %v6008_v62, %v5988_v60 }
 0x7ac   : > { %v7594_v18 = vunpack.i.h.bf16 %v7592_v23  ;;  %v7593_v10 = vunpack.i.l.bf16 %v7592_v23  ;;  %vm5957_vm1 = vcmp.lt.s32.totalorder %v5953_v40, 16 }
 0x7ad   : > { %6730 = vmatpush1.bf16.msra.mxu0 %v6729_v15  ;;  %6457 = vmatpush1.msk.msra.mxu1 %vm430_vm0, %v5443_v17 }
 0x7ae   : > { %6458 = vmatmul.mubr.msk.f32.vlgmr.msra.gmra.mrb[14].mxu1 %vm4808_vm13, %v6455_v58  ;;  %v5863_v16 = vsel %vm5853_vm14, %v7593_v10, %v7594_v18  ;;  %v5862_v4 = vsel %vm5853_vm14, %v5848_v25, %v7593_v10  ;;  %v6056_v0 = vpop.permute.xlu1 %6055 }
 0x7af   : > { %6468 = vmatprep.subr.msk.mxu0 %vm430_vm0, %v5863_v16  ;;  %6188 = vmatprep.mubr.f32.mxu1 %v9173_v51  ;;  %v6083_v53 = vadd.f32 %v6056_v0, %v6035_v36  ;;  %v6084_v6 = vadd.f32 %v6056_v0, %v6036_v57 }
 0x7b1   : > { %6469 = vmatpush1.msk.msra.mxu0 %vm430_vm0, %v5862_v4  ;;  %v6095_v47 = vmax.f32 %v6083_v53, 0.0  ;;  %v6096_v14 = vmax.f32 %v6084_v6, 0.0  ;;  %vm5181_vm0 = vcmp.ge.s32.totalorder %v5179_v29, 0 }
 0x7b2   : > { %6470 = vmatmul.mubr.msk.f32.vlgmr.msra.gmra.mrb[14].mxu0 %vm4808_vm13, %v6467_v32  ;;  %v6018_v43 = vpop.permute.xlu1 %6017 }
 0x7b3   : > { %v6039_v28 = vmul.f32 %v6018_v43, %v5991_v48  ;;  %v6040_v37 = vmul.f32 %v6018_v43, %v5992_v9 }
 0x7b6   : > { %v6066_v54 = vpop.permute.xlu1 %6065 }
 0x7b7   : > { %v6087_v11 = vadd.f32 %v6066_v54, %v6039_v28  ;;  %v6088_v41 = vadd.f32 %v6066_v54, %v6040_v37  ;;  %v6107_v54 = vld [vmem:[%s9355_s7] sm:$0x3f] }
 0x7b9   : > { %v6099_v24 = vmax.f32 %v6087_v11, 0.0  ;;  %v6100_v46 = vmax.f32 %v6088_v41, 0.0 }
 0x7ba   : > { %v6028_v30 = vpop.permute.xlu1 %6027 }
 0x7bc   : > { %v9324_v21 = vpop.permute.xlu0 %5972 }
 0x7be   : > { %v6076_v53 = vpop.permute.xlu1 %6075 }
 0x7c0   : > { %v6013_v19 = vpop.permute.xlu0 %6012 }
 0x7c1   : > { %v6037_v20 = vmul.f32 %v6013_v19, %v5989_v12  ;;  %v6038_v51 = vmul.f32 %v6013_v19, %v5990_v45 }
 0x7c4   : > { %v6061_v33 = vpop.permute.xlu0 %6060 }
 0x7c5   : > { %v6085_v59 = vadd.f32 %v6061_v33, %v6037_v20  ;;  %v6086_v35 = vadd.f32 %v6061_v33, %v6038_v51 }
 0x7c7   : > { %v6097_v52 = vmax.f32 %v6085_v59, 0.0  ;;  %v6098_v1 = vmax.f32 %v6086_v35, 0.0 }
 0x7c8   : > { %v6023_v2 = vpop.permute.xlu0 %6022 }
 0x7c9   : > { %v6733_v7 = vpack.c.bf16 %v6097_v52, %v6095_v47  ;;  %v6731_v42 = vpack.c.bf16 %v6098_v1, %v6096_v14  ;;  %v6041_v5 = vmul.f32 %v6023_v2, %v8981_v31  ;;  %v6042_v49 = vmul.f32 %v6023_v2, %v8984_v44  ;;  %v6112_v2 = vpop.permute.xlu1 %6111 }
 0x7ca   : > { %v5180_v31 = vadd.s32 4294967287, %v7840_v39  ;;  %v5952_v44 = vadd.s32 9, %v7838_v38 }
 0x7cb   : > { %6732 = vmatprep.subr.bf16.mxu1 %v6731_v42 }
 0x7cc   : > { %v6071_v55 = vpop.permute.xlu0 %6070  ;;  %6734 = vmatpush1.bf16.msra.mxu1 %v6733_v7  ;;  %vm5182_vm7 = vcmp.ge.s32.totalorder %v5180_v31, 0  ;;  %vm5956_vm12 = vcmp.lt.s32.totalorder %v5952_v44, 16 }
 0x7cd   : > { %v6089_v63 = vadd.f32 %v6071_v55, %v6041_v5  ;;  %v6090_v56 = vadd.f32 %v6071_v55, %v6042_v49 }
 0x7cf   : > { %v6101_v8 = vmax.f32 %v6089_v63, 0.0  ;;  %v6102_v27 = vmax.f32 %v6090_v56, 0.0 }
 0x7d0   : > { %v6033_v60 = vpop.permute.xlu0 %6032 }
 0x7d1   : > { %v6737_v22 = vpack.c.bf16 %v6101_v8, %v6099_v24  ;;  %v6735_v26 = vpack.c.bf16 %v6102_v27, %v6100_v46 }
 0x7d3   : > { %6736 = vmatprep.subr.bf16.mxu1 %v6735_v26 }
 0x7d4   : > { %6738 = vmatpush1.bf16.msra.mxu1 %v6737_v22  ;;  %v6081_v6 = vpop.permute.xlu0 %6080 }
 0x867   : > { %v5172_v50 = vpop.f32.mrb[12].mxu0 }
 0x868   : > { %v5174_v61 = vpop.f32.mrb[13].mxu0  ;;  %v5191_v34 = vsel %vm5181_vm0, %v5172_v50, 0.0 }
 0x869   : > { %v5192_v15 = vsel %vm5182_vm7, %v5174_v61, 0.0 }
 0x881   : > { %v5526_v13 = vpop.f32.mrb[14].mxu1 }
 0x882   : > { %v5533_v23 = vadd.f32 %v5526_v13, %v5191_v34  ;;  %v5528_v58 = vpop.f32.mrb[15].mxu1 }
 0x883   : > { %v5534_v18 = vadd.f32 %v5528_v58, %v5192_v15 }
 0x885   : > { %v5945_v10 = vpop.f32.mrb[14].mxu0 }
 0x886   : > { %v5964_v17 = vsel %vm5956_vm12, %v5945_v10, 0.0  ;;  %v5947_v25 = vpop.f32.mrb[15].mxu0 }
 0x887   : > { %v5966_v16 = vadd.f32 %v5964_v17, %v5533_v23  ;;  %v5965_v4 = vsel %vm5957_vm1, %v5947_v25, 0.0 }
 0x888   : > { %v5967_v32 = vadd.f32 %v5965_v4, %v5534_v18 }
 0x889   : > { %v5975_v62 = vadd.f32 %v9324_v21, %v5966_v16 }
 0x88a   : > { %v5976_v38 = vadd.f32 %v9324_v21, %v5967_v32 }
 0x88b   : > { %v5979_v0 = vrot.slane %v5975_v62, 4 }
 0x88c   : > { %v5980_v39 = vrot.slane %v5976_v38, 4 }
 0x88d   : > { %5983 = vst [vmem:[#allocation3 + $0x50] ss:$-12 sps:$4 sm:$0xff] %v5979_v0  }
 0x88e   : > { %5984 = vst [vmem:[#allocation3 + $0x58] ss:$-12 sps:$4 sm:$0xff] %v5980_v39  }
 0x894   : > { %v5995_v19 = vld [vmem:[#allocation3 + $0x40] sm:$0xff]  ;;  %v5997_v36 = vld [vmem:[#allocation3 + $0x50] sm:$0xf] }
 0x895   : > { %v5996_v57 = vld [vmem:[#allocation3 + $0x48] sm:$0xff]  ;;  %v5998_v43 = vld [vmem:[#allocation3 + $0x58] sm:$0xf]  ;;  %v6043_v12 = vmul.f32 %v6028_v30, %v5995_v19  ;;  %v6045_v45 = vmul.f32 %v6033_v60, %v5997_v36 }
 0x896   : > { %v6044_v20 = vmul.f32 %v6028_v30, %v5996_v57  ;;  %v6046_v51 = vmul.f32 %v6033_v60, %v5998_v43 }
 0x897   : > { %v6091_v33 = vadd.f32 %v6076_v53, %v6043_v12  ;;  %v6093_v59 = vadd.f32 %v6081_v6, %v6045_v45 }
 0x898   : > { %v6092_v21 = vadd.f32 %v6076_v53, %v6044_v20  ;;  %v6094_v35 = vadd.f32 %v6081_v6, %v6046_v51 }
 0x899   : > { %v6103_v47 = vmax.f32 %v6091_v33, 0.0  ;;  %v6105_v14 = vmax.f32 %v6093_v59, 0.0 }
 0x89a   : > { %v6104_v52 = vmax.f32 %v6092_v21, 0.0  ;;  %v6106_v1 = vmax.f32 %v6094_v35, 0.0 }
 0x89b   : > { %v6742_v9 = vpack.c.bf16 %v6105_v14, %v6103_v47 }
 0x89c   : > { %v6739_v48 = vpack.c.bf16 %v6106_v1, %v6104_v52 }
 0x89e   : > { %6741 = vmatprep.subr.msk.bf16.mxu1 %vm7855_vm15, %v6739_v48 }
 0x89f   : > { %6744 = vmatpush1.bf16.msk.msra.mxu1 %vm7855_vm15, %v6742_v9 }
 0x8a2   : > { %6474 = vmatmul.mubr.msk.f32.vlgmr.msra.gmra.mrb[16].mxu1 %vm6114_vm2, %v6107_v54 }
 0x975   : > { %v6190_v28 = vpop.f32.mrb[16].mxu1 }
 0x976   : > { %v6191_v37 = vadd.f32 %v6190_v28, %v6112_v2  ;;  %v6192_v7 = vpop.f32.mrb[17].mxu1 }
 0x977   : > { %v6193_v42 = vadd.f32 %v6192_v7, %v6112_v2 }
 0x978   : > { %6195 = vst [vmem:[%s332_s26] sm:$0x3f] %v6191_v37 }
 0x979   : > { %6196 = vst [vmem:[%s332_s26 + $0x8] sm:$0x3f] %v6193_v42 }
 0x97a PF: > { %s19_s30 = sadd.s32 1, %s7610_s30  }
 0x97b   : > { %p16_p4 = scmp.ge.s32.totalorder %s19_s30, 4  }
 0x97d   :  { %18 = sbr.rel (!%p16_p4) target bundleno = 1 (0x1), region = 142 }

</bundles_post_ra>
